<compile_context>
chip_gen: v7x
topology: tpu7x:2x2x1
jax: 0.10.0
libtpu: 0.0.40
codegen_flags: <defaults>
</compile_context>

<pallas_src>
import math

import numpy as np
import jax
import jax.numpy as jnp
from jax.experimental import pallas as pl
from jax.experimental.pallas import tpu as pltpu


# ----------------------------------------------------------------------------
# Init-time weight packing (hoisted out of the jitted forward)
# ----------------------------------------------------------------------------
def _conv_row_toeplitz(w, w_in, stride):
    """Conv2d weight [CO, CI, KH, KW] -> B[KH, w_in*CI, OW*CO] with
    B[kh, wi*CI+ci, ow*CO+co] = w[co, ci, kh, wi - stride*ow] (valid taps)."""
    co_n, ci_n, kh_n, kw_n = w.shape
    ow_n = (w_in - kw_n) // stride + 1
    b = np.zeros((kh_n, w_in * ci_n, ow_n * co_n), np.float32)
    wt = np.transpose(np.asarray(w, np.float32), (2, 3, 1, 0))   # [KH, KW, CI, CO]
    for kh in range(kh_n):
        for ow in range(ow_n):
            for kw in range(kw_n):
                wi = stride * ow + kw
                b[kh, wi * ci_n:(wi + 1) * ci_n, ow * co_n:(ow + 1) * co_n] = wt[kh, kw]
    return b


def _deconv_row_toeplitz(w, w_in, stride):
    """ConvTranspose2d weight [CI, CO, KH, KW] -> B[KH, w_in*CI, OW*CO] with
    B[kh, iw*CI+ci, (stride*iw+kw)*CO+co] = w[ci, co, kh, kw]."""
    ci_n, co_n, kh_n, kw_n = w.shape
    ow_n = stride * (w_in - 1) + kw_n
    b = np.zeros((kh_n, w_in * ci_n, ow_n * co_n), np.float32)
    wt = np.transpose(np.asarray(w, np.float32), (2, 3, 0, 1))   # [KH, KW, CI, CO]
    for kh in range(kh_n):
        for iw in range(w_in):
            for kw in range(kw_n):
                ow = stride * iw + kw
                b[kh, iw * ci_n:(iw + 1) * ci_n, ow * co_n:(ow + 1) * co_n] = wt[kh, kw]
    return b


def _bias_row(bias, ow):
    """bias[CO] -> [1, OW*CO] row with value bias[co] at column ow*CO+co."""
    b = np.asarray(bias, np.float32)
    return jnp.asarray(np.tile(b, ow)[None, :])


def init_rvae_params(key, latent_dim, total_cluster, hidden, fgx, fgy):
    scanx = fgx % 4 + 3
    scany = fgy % 4 + 3
    H0, W0 = fgx, fgy
    H1, W1 = H0 - scanx + 1, W0 - scany + 1
    H3, W3 = (H1 - 4) // 2 + 1, (W1 - 4) // 2 + 1
    H4, W4 = (H3 - 4) // 2 + 1, (W3 - 4) // 2 + 1
    enbedimx = int(((fgx - scanx + 1) / 2 - 1) / 2 - 1)
    enbedimy = int(((fgy - scany + 1) / 2 - 1) / 2 - 1)
    assert (H4, W4) == (enbedimx, enbedimy), "embedding-dim formula mismatch"
    # encoder/decoder spatial mirror (guarantees the fused decoder shapes line up)
    assert H1 == 2 * H3 + 2 and H3 == 2 * H4 + 2 and H0 == H1 + scanx - 1
    assert W1 == 2 * W3 + 2 and W3 == 2 * W4 + 2 and W0 == W1 + scany - 1
    node_int = H4 * W4 * hidden[2]

    def conv_w(k, co, ci, kh, kw):
        bound = 1.0 / math.sqrt(ci * kh * kw)
        k1, k2 = jax.random.split(k)
        return (jax.random.uniform(k1, (co, ci, kh, kw), jnp.float32, -bound, bound),
                jax.random.uniform(k2, (co,), jnp.float32, -bound, bound))

    def convT_w(k, ci, co, kh, kw):
        bound = 1.0 / math.sqrt(co * kh * kw)
        k1, k2 = jax.random.split(k)
        return (jax.random.uniform(k1, (ci, co, kh, kw), jnp.float32, -bound, bound),
                jax.random.uniform(k2, (co,), jnp.float32, -bound, bound))

    def lin_w(k, out_f, in_f):
        bound = 1.0 / math.sqrt(in_f)
        k1, k2 = jax.random.split(k)
        return (jax.random.uniform(k1, (out_f, in_f), jnp.float32, -bound, bound),
                jax.random.uniform(k2, (out_f,), jnp.float32, -bound, bound))

    ks = jax.random.split(key, 9)
    raw = {
        "enc1": conv_w(ks[0], hidden[0], 1, scanx, scany),
        "enc3": conv_w(ks[1], hidden[1], hidden[0], 4, 4),
        "enc4": conv_w(ks[2], hidden[2], hidden[1], 4, 4),
        "fc_mu": lin_w(ks[3], latent_dim, node_int),
        "fc_var": lin_w(ks[4], latent_dim, node_int),
        "dec_in": lin_w(ks[5], node_int, latent_dim + total_cluster + 1),
        "dec4": convT_w(ks[6], hidden[2], hidden[3], 4, 4),
        "dec3": convT_w(ks[7], hidden[3], hidden[4], 4, 4),
        "dec1": convT_w(ks[8], hidden[4], 1, scanx, scany),
    }

    bf16 = jnp.bfloat16
    C4 = hidden[2]
    L = latent_dim

    def head_cols(w):
        # torch Linear weight [L, node_int] over (c, h, w) features -> ours (h, w, c)
        a = np.asarray(w, np.float32).reshape(L, C4, H4, W4)
        return np.transpose(a, (2, 3, 1, 0)).reshape(H4 * W4 * C4, L)

    wmu, bmu = raw["fc_mu"]
    wva, bva = raw["fc_var"]
    wdec, bdec = raw["dec_in"]
    a = np.asarray(wdec, np.float32).reshape(C4, H4, W4, -1)
    wdec_ours = np.transpose(a, (1, 2, 0, 3)).reshape(H4 * W4 * C4, -1).T   # [in, node]
    bdec_ours = (np.asarray(bdec, np.float32).reshape(C4, H4, W4)
                 .transpose(1, 2, 0).reshape(1, -1))

    packed = {
        "w1": jnp.asarray(_conv_row_toeplitz(raw["enc1"][0], W0, 1)
                          .reshape(scanx * W0, W1 * hidden[0]), bf16),
        "b1": _bias_row(raw["enc1"][1], W1),
        "w3": jnp.asarray(_conv_row_toeplitz(raw["enc3"][0], W1, 2)
                          .reshape(4 * W1 * hidden[0], W3 * hidden[1]), bf16),
        "b3": _bias_row(raw["enc3"][1], W3),
        "w4": jnp.asarray(_conv_row_toeplitz(raw["enc4"][0], W3, 2)
                          .reshape(4 * W3 * hidden[1], W4 * hidden[2]), bf16),
        "b4": _bias_row(raw["enc4"][1], W4),
        "wh": jnp.asarray(np.concatenate([head_cols(wmu), head_cols(wva)], axis=1), bf16),
        "bh": jnp.asarray(np.concatenate([np.asarray(bmu, np.float32),
                                          np.asarray(bva, np.float32)])[None, :]),
        "wd": jnp.asarray(wdec_ours, bf16),
        "bd": jnp.asarray(bdec_ours, jnp.float32),
        "wt4": jnp.asarray(_deconv_row_toeplitz(raw["dec4"][0], W4, 2), bf16),
        "bt4": _bias_row(raw["dec4"][1], W3),
        "wt3": jnp.asarray(_deconv_row_toeplitz(raw["dec3"][0], W3, 2), bf16),
        "bt3": _bias_row(raw["dec3"][1], W1),
        "wt1": jnp.asarray(_deconv_row_toeplitz(raw["dec1"][0], W1, 1), bf16),
        "bt1": _bias_row(raw["dec1"][1], W0),
    }

    meta = dict(fgx=fgx, fgy=fgy, scanx=scanx, scany=scany, hidden=tuple(hidden),
                latent_dim=latent_dim, total_cluster=total_cluster,
                H1=H1, W1=W1, H3=H3, W3=W3, H4=H4, W4=W4, node_int=node_int)
    return raw, packed, meta


# ----------------------------------------------------------------------------
# The fused forward kernel (one grid step == one sample, fully VMEM resident)
# ----------------------------------------------------------------------------
def _make_kernel(meta):
    H0, W0 = meta["fgx"], meta["fgy"]
    KX = meta["scanx"]
    H1, H3, H4 = meta["H1"], meta["H3"], meta["H4"]
    W4 = meta["W4"]
    C4 = meta["hidden"][2]
    L = meta["latent_dim"]
    bf16, f32 = jnp.bfloat16, jnp.float32

    def leaky(v):
        return jnp.where(v >= 0, v, 0.01 * v)

    def even_odd_rows(mat):
        n = mat.shape[0]
        ev = jnp.concatenate([mat[i:i + 1, :] for i in range(0, n, 2)], axis=0)
        od = jnp.concatenate([mat[i:i + 1, :] for i in range(1, n, 2)], axis=0)
        return ev, od

    def conv_stride2(x_bf, oh, w_ref, b_ref):
        """4x4 stride-2 Conv2d: one GEMM over 4 vertical-tap row blocks."""
        ev, od = even_odd_rows(x_bf)
        taps = []
        for kh in range(4):                       # rows 2*oh + kh
            src = ev if kh % 2 == 0 else od
            s0 = kh // 2
            taps.append(src[s0:s0 + oh, :])
        a = jnp.concatenate(taps, axis=1)
        y = jnp.dot(a, w_ref[...], preferred_element_type=f32) + b_ref[...]
        return leaky(y)

    def deconv_stride2(x_bf, w_ref, b_ref):
        """4x4 stride-2 ConvTranspose2d + LeakyReLU; returns interleaved rows."""
        h_in = x_bf.shape[0]
        y = [jnp.dot(x_bf, w_ref[kh], preferred_element_type=f32) for kh in range(4)]
        zrow = jnp.zeros((1, y[0].shape[1]), f32)
        ev = jnp.concatenate([y[0], zrow], axis=0) + jnp.concatenate([zrow, y[2]], axis=0)
        od = jnp.concatenate([y[1], zrow], axis=0) + jnp.concatenate([zrow, y[3]], axis=0)
        ev = leaky(ev + b_ref[...]).astype(bf16)
        od = leaky(od + b_ref[...]).astype(bf16)
        rows = []
        for q in range(h_in + 1):                 # out row 2q <- ev[q], 2q+1 <- od[q]
            rows.append(ev[q:q + 1, :])
            rows.append(od[q:q + 1, :])
        return jnp.concatenate(rows, axis=0)      # [2*h_in + 2, OW*CO] bf16

    def kernel(x0_ref, y1_ref, eps_ref,
               w1_ref, b1_ref, w3_ref, b3_ref, w4_ref, b4_ref,
               wh_ref, bh_ref, wd_ref, bd_ref,
               wt4_ref, bt4_ref, wt3_ref, bt3_ref, wt1_ref, bt1_ref,
               recon_ref, mu_ref, lv_ref, mask_ref):
        # ------------------------------ encoder ------------------------------
        x = x0_ref[0].astype(bf16)                                     # [H0, W0]
        a1 = jnp.concatenate([x[kh:kh + H1, :] for kh in range(KX)], axis=1)
        h1 = leaky(jnp.dot(a1, w1_ref[...], preferred_element_type=f32) + b1_ref[...])
        h3 = conv_stride2(h1.astype(bf16), H3, w3_ref, b3_ref)         # [H3, W3*C3]
        h4 = conv_stride2(h3.astype(bf16), H4, w4_ref, b4_ref)         # [H4, W4*C4]

        # ---------------------- fc_mu / fc_var + reparam ---------------------
        r = jnp.concatenate([h4[i:i + 1, :] for i in range(H4)], axis=1)  # [1, node]
        mlv = jnp.dot(r.astype(bf16), wh_ref[...],
                      preferred_element_type=f32) + bh_ref[...]
        mu = mlv[:, :L]
        lv = mlv[:, L:2 * L]
        mu_ref[...] = mu.reshape(1, 1, L)
        lv_ref[...] = lv.reshape(1, 1, L)
        z = eps_ref[0] * jnp.exp(0.5 * lv) + mu                        # [1, L]

        # ------------------------------ decoder ------------------------------
        zp = jnp.concatenate([z, y1_ref[0]], axis=1).astype(bf16)      # [1, L+tc+1]
        dflat = jnp.dot(zp, wd_ref[...], preferred_element_type=f32) + bd_ref[...]
        wc = W4 * C4
        d = jnp.concatenate([dflat[:, h * wc:(h + 1) * wc] for h in range(H4)],
                            axis=0).astype(bf16)                       # [H4, W4*C4]
        d = deconv_stride2(d, wt4_ref, bt4_ref)                        # [H3, W3*C5]
        d = deconv_stride2(d, wt3_ref, bt3_ref)                        # [H1, W1*C6]
        # stride-1 ConvTranspose2d (scanx x scany) + ReLU
        acc = jnp.zeros((H0, W0), f32)
        for kh in range(KX):
            y = jnp.dot(d, wt1_ref[kh], preferred_element_type=f32)    # [H1, W0]
            parts = []
            if kh > 0:
                parts.append(jnp.zeros((kh, W0), f32))
            parts.append(y)
            if kh < KX - 1:
                parts.append(jnp.zeros((KX - 1 - kh, W0), f32))
            acc = acc + jnp.concatenate(parts, axis=0)
        recon_ref[...] = jnp.maximum(acc + bt1_ref[...], 0.0).reshape(1, H0, W0)

        # ---------------------------- nonzero mask ---------------------------
        mask_ref[...] = (x0_ref[...] != 0.0).astype(f32)

    return kernel


def rvae_forward(packed, meta, input0, input1, eps):
    """Mirrors RVAE.forward: returns [recon, (input0, input1), mu, log_var, mask]."""
    H0, W0 = meta["fgx"], meta["fgy"]
    L = meta["latent_dim"]
    n = input0.shape[0]

    x0 = input0.reshape(n, H0, W0).astype(jnp.float32)
    y1 = input1.reshape(n, 1, -1).astype(jnp.float32)
    ep = eps.reshape(n, 1, L).astype(jnp.float32)

    wnames = ["w1", "b1", "w3", "b3", "w4", "b4", "wh", "bh", "wd", "bd",
              "wt4", "bt4", "wt3", "bt3", "wt1", "bt1"]
    ws = [packed[k] for k in wnames]

    def full_spec(a):
        nd = a.ndim
        return pl.BlockSpec(a.shape, lambda i, _nd=nd: (0,) * _nd)

    in_specs = ([pl.BlockSpec((1, H0, W0), lambda i: (i, 0, 0)),
                 pl.BlockSpec((1, 1, y1.shape[2]), lambda i: (i, 0, 0)),
                 pl.BlockSpec((1, 1, L), lambda i: (i, 0, 0))]
                + [full_spec(a) for a in ws])

    out_shape = (jax.ShapeDtypeStruct((n, H0, W0), jnp.float32),   # recon
                 jax.ShapeDtypeStruct((n, 1, L), jnp.float32),     # mu
                 jax.ShapeDtypeStruct((n, 1, L), jnp.float32),     # log_var
                 jax.ShapeDtypeStruct((n, H0, W0), jnp.float32))   # mask
    out_specs = (pl.BlockSpec((1, H0, W0), lambda i: (i, 0, 0)),
                 pl.BlockSpec((1, 1, L), lambda i: (i, 0, 0)),
                 pl.BlockSpec((1, 1, L), lambda i: (i, 0, 0)),
                 pl.BlockSpec((1, H0, W0), lambda i: (i, 0, 0)))

    # advisory cost estimate (counts the inflated row-Toeplitz GEMM MACs)
    gemm_rows = dict(w1=meta["H1"], w3=meta["H3"], w4=meta["H4"], wh=1, wd=1,
                     wt4=meta["H4"], wt3=meta["H3"], wt1=meta["H1"])
    flops = 2 * n * sum(int(packed[k].size) * m for k, m in gemm_rows.items())
    weight_bytes = sum(int(a.size) * a.dtype.itemsize for a in ws)
    io_bytes = int(x0.size + y1.size + ep.size + 2 * n * H0 * W0 + 2 * n * L) * 4
    cost = pl.CostEstimate(flops=flops, transcendentals=n * L,
                           bytes_accessed=weight_bytes + io_bytes)

    recon, mu, log_var, mask = pl.pallas_call(
        _make_kernel(meta),
        out_shape=out_shape,
        grid=(n,),
        in_specs=in_specs,
        out_specs=out_specs,
        compiler_params=pltpu.CompilerParams(dimension_semantics=("parallel",)),
        cost_estimate=cost,
    )(x0, y1, ep, *ws)

    recon = recon.reshape(n, 1, H0, W0)
    mask = mask.reshape(n, 1, H0, W0)
    mu = mu.reshape(n, L)
    log_var = log_var.reshape(n, L)
    return [recon, (input0, input1), mu, log_var, mask]


# ----------------------------------------------------------------------------
# Pure-XLA reference in the same bf16-operand / f32-accumulate regime
# ----------------------------------------------------------------------------
def rvae_reference(raw, meta, input0, input1, eps):
    bf16, f32 = jnp.bfloat16, jnp.float32
    leaky = lambda v: jnp.where(v >= 0, v, 0.01 * v)

    def conv(x, w, b, s):
        y = jax.lax.conv_general_dilated(
            x.astype(bf16), w.astype(bf16), window_strides=(s, s), padding="VALID",
            dimension_numbers=("NCHW", "OIHW", "NCHW"), preferred_element_type=f32)
        return y + b[None, :, None, None]

    def deconv(x, w, b, s):
        kh, kw = w.shape[2], w.shape[3]
        wf = jnp.flip(w, (2, 3)).transpose(1, 0, 2, 3)
        y = jax.lax.conv_general_dilated(
            x.astype(bf16), wf.astype(bf16), window_strides=(1, 1),
            padding=[(kh - 1, kh - 1), (kw - 1, kw - 1)], lhs_dilation=(s, s),
            dimension_numbers=("NCHW", "OIHW", "NCHW"), preferred_element_type=f32)
        return y + b[None, :, None, None]

    x = leaky(conv(input0, *raw["enc1"], 1))
    x = leaky(conv(x, *raw["enc3"], 2))
    x = leaky(conv(x, *raw["enc4"], 2))
    r = x.reshape(x.shape[0], -1)
    wmu, bmu = raw["fc_mu"]
    wva, bva = raw["fc_var"]
    mu = jnp.dot(r.astype(bf16), wmu.T.astype(bf16), preferred_element_type=f32) + bmu
    lv = jnp.dot(r.astype(bf16), wva.T.astype(bf16), preferred_element_type=f32) + bva
    z = eps * jnp.exp(0.5 * lv) + mu
    zp = jnp.concatenate([z, input1], axis=1)
    wd, bd = raw["dec_in"]
    d = jnp.dot(zp.astype(bf16), wd.T.astype(bf16), preferred_element_type=f32) + bd
    d = d.reshape(-1, meta["hidden"][2], meta["H4"], meta["W4"])
    d = leaky(deconv(d, *raw["dec4"], 2))
    d = leaky(deconv(d, *raw["dec3"], 2))
    recon = jnp.maximum(deconv(d, *raw["dec1"], 1), 0.0)
    mask = (input0 != 0).astype(f32)
    return recon, mu, lv, mask


# ----------------------------------------------------------------------------
# main
# ----------------------------------------------------------------------------
if __name__ == "__main__":
    latent_dim = 8
    total_cluster = 7
    hidden = [16, 8, 6, 8, 8]
    fgx, fgy = 26, 30          # -> 5x5 scan kernel, 4x5 embedding grid
    batch = 2

    key = jax.random.PRNGKey(0)
    k_params, k_x, k_y, k_drop, k_eps = jax.random.split(key, 5)

    raw, packed, meta = init_rvae_params(k_params, latent_dim, total_cluster,
                                         hidden, fgx, fgy)

    x0 = jax.random.normal(k_x, (batch, 1, fgx, fgy), jnp.float32)
    drop = jax.random.bernoulli(k_drop, 0.3, x0.shape)
    input0 = jnp.where(drop, 0.0, x0)                    # zeros -> non-trivial mask
    input1 = jax.random.normal(k_y, (batch, total_cluster + 1), jnp.float32)
    eps = jax.random.normal(k_eps, (batch, latent_dim), jnp.float32)

    fwd = jax.jit(lambda p, a, b, e: rvae_forward(p, meta, a, b, e))
    recon, (in0, in1), mu, log_var, mask = fwd(packed, input0, input1, eps)
    jax.block_until_ready((recon, mu, log_var, mask))

    assert recon.shape == (batch, 1, fgx, fgy), recon.shape
    assert mu.shape == (batch, latent_dim) and log_var.shape == (batch, latent_dim)
    assert mask.shape == (batch, 1, fgx, fgy)
    assert bool(jnp.all(recon >= 0))                     # final ReLU
    assert bool(jnp.all((mask == 0) | (mask == 1)))
    assert bool(jnp.all(jnp.isfinite(recon)))

    # numerical check against an XLA conv reference in the same precision regime
    ref_recon, ref_mu, ref_lv, ref_mask = jax.jit(
        lambda a, b, e: rvae_reference(raw, meta, a, b, e))(input0, input1, eps)
    np.testing.assert_allclose(np.asarray(mu), np.asarray(ref_mu), rtol=2e-2, atol=2e-2)
    np.testing.assert_allclose(np.asarray(log_var), np.asarray(ref_lv), rtol=2e-2, atol=2e-2)
    np.testing.assert_allclose(np.asarray(recon), np.asarray(ref_recon), rtol=2e-2, atol=2e-2)
    np.testing.assert_allclose(np.asarray(mask), np.asarray(ref_mask))

    print("KERNEL_OK")
</pallas_src>

<mosaic_0001>
module attributes {stable_mosaic.version = 11 : i64} {
  func.func @kernel(%arg0: i32, %arg1: memref<1x26x30xf32, #tpu.memory_space<vmem>>, %arg2: memref<1x1x8xf32, #tpu.memory_space<vmem>>, %arg3: memref<1x1x8xf32, #tpu.memory_space<vmem>>, %arg4: memref<150x416xbf16, #tpu.memory_space<vmem>>, %arg5: memref<1x416xf32, #tpu.memory_space<vmem>>, %arg6: memref<1664x96xbf16, #tpu.memory_space<vmem>>, %arg7: memref<1x96xf32, #tpu.memory_space<vmem>>, %arg8: memref<384x30xbf16, #tpu.memory_space<vmem>>, %arg9: memref<1x30xf32, #tpu.memory_space<vmem>>, %arg10: memref<120x16xbf16, #tpu.memory_space<vmem>>, %arg11: memref<1x16xf32, #tpu.memory_space<vmem>>, %arg12: memref<16x120xbf16, #tpu.memory_space<vmem>>, %arg13: memref<1x120xf32, #tpu.memory_space<vmem>>, %arg14: memref<4x30x96xbf16, #tpu.memory_space<vmem>>, %arg15: memref<1x96xf32, #tpu.memory_space<vmem>>, %arg16: memref<4x96x208xbf16, #tpu.memory_space<vmem>>, %arg17: memref<1x208xf32, #tpu.memory_space<vmem>>, %arg18: memref<5x208x30xbf16, #tpu.memory_space<vmem>>, %arg19: memref<1x30xf32, #tpu.memory_space<vmem>>, %arg20: memref<1x26x30xf32, #tpu.memory_space<vmem>>, %arg21: memref<1x1x8xf32, #tpu.memory_space<vmem>>, %arg22: memref<1x1x8xf32, #tpu.memory_space<vmem>>, %arg23: memref<1x26x30xf32, #tpu.memory_space<vmem>>) attributes {dimension_semantics = [#tpu.dimension_semantics<parallel>], iteration_bounds = array<i64: 2>, scalar_prefetch = 0 : i64, scratch_operands = 0 : i64, tpu.core_type = #tpu.core_type<tc>, window_params = [{transform_indices = @transform_0, window_bounds = array<i64: 1, 26, 30>}, {transform_indices = @transform_1, window_bounds = array<i64: 1, 1, 8>}, {transform_indices = @transform_2, window_bounds = array<i64: 1, 1, 8>}, {pipeline_mode = #tpu.pipeline_mode<synchronous>, transform_indices = @transform_3, window_bounds = array<i64: 150, 416>}, {pipeline_mode = #tpu.pipeline_mode<synchronous>, transform_indices = @transform_4, window_bounds = array<i64: 1, 416>}, {pipeline_mode = #tpu.pipeline_mode<synchronous>, transform_indices = @transform_5, window_bounds = array<i64: 1664, 96>}, {pipeline_mode = #tpu.pipeline_mode<synchronous>, transform_indices = @transform_6, window_bounds = array<i64: 1, 96>}, {pipeline_mode = #tpu.pipeline_mode<synchronous>, transform_indices = @transform_7, window_bounds = array<i64: 384, 30>}, {pipeline_mode = #tpu.pipeline_mode<synchronous>, transform_indices = @transform_8, window_bounds = array<i64: 1, 30>}, {pipeline_mode = #tpu.pipeline_mode<synchronous>, transform_indices = @transform_9, window_bounds = array<i64: 120, 16>}, {pipeline_mode = #tpu.pipeline_mode<synchronous>, transform_indices = @transform_10, window_bounds = array<i64: 1, 16>}, {pipeline_mode = #tpu.pipeline_mode<synchronous>, transform_indices = @transform_11, window_bounds = array<i64: 16, 120>}, {pipeline_mode = #tpu.pipeline_mode<synchronous>, transform_indices = @transform_12, window_bounds = array<i64: 1, 120>}, {pipeline_mode = #tpu.pipeline_mode<synchronous>, transform_indices = @transform_13, window_bounds = array<i64: 4, 30, 96>}, {pipeline_mode = #tpu.pipeline_mode<synchronous>, transform_indices = @transform_14, window_bounds = array<i64: 1, 96>}, {pipeline_mode = #tpu.pipeline_mode<synchronous>, transform_indices = @transform_15, window_bounds = array<i64: 4, 96, 208>}, {pipeline_mode = #tpu.pipeline_mode<synchronous>, transform_indices = @transform_16, window_bounds = array<i64: 1, 208>}, {pipeline_mode = #tpu.pipeline_mode<synchronous>, transform_indices = @transform_17, window_bounds = array<i64: 5, 208, 30>}, {pipeline_mode = #tpu.pipeline_mode<synchronous>, transform_indices = @transform_18, window_bounds = array<i64: 1, 30>}, {transform_indices = @transform_19, window_bounds = array<i64: 1, 26, 30>}, {transform_indices = @transform_20, window_bounds = array<i64: 1, 1, 8>}, {transform_indices = @transform_21, window_bounds = array<i64: 1, 1, 8>}, {transform_indices = @transform_22, window_bounds = array<i64: 1, 26, 30>}]} {
    %c0 = arith.constant 0 : index
    %c0_0 = arith.constant 0 : index
    %c0_1 = arith.constant 0 : index
    %0 = vector.load %arg1[%c0, %c0_0, %c0_1] : memref<1x26x30xf32, #tpu.memory_space<vmem>>, vector<1x26x30xf32>
    %1 = vector.shape_cast %0 : vector<1x26x30xf32> to vector<26x30xf32>
    %2 = arith.truncf %1 : vector<26x30xf32> to vector<26x30xbf16>
    %3 = vector.extract_strided_slice %2 {offsets = [0, 0], sizes = [22, 30], strides = [1, 1]} : vector<26x30xbf16> to vector<22x30xbf16>
    %4 = vector.extract_strided_slice %2 {offsets = [1, 0], sizes = [22, 30], strides = [1, 1]} : vector<26x30xbf16> to vector<22x30xbf16>
    %5 = vector.extract_strided_slice %2 {offsets = [2, 0], sizes = [22, 30], strides = [1, 1]} : vector<26x30xbf16> to vector<22x30xbf16>
    %6 = vector.extract_strided_slice %2 {offsets = [3, 0], sizes = [22, 30], strides = [1, 1]} : vector<26x30xbf16> to vector<22x30xbf16>
    %7 = vector.extract_strided_slice %2 {offsets = [4, 0], sizes = [22, 30], strides = [1, 1]} : vector<26x30xbf16> to vector<22x30xbf16>
    %8 = tpu.concatenate %3, %4, %5, %6, %7 in 1 : vector<22x30xbf16>, vector<22x30xbf16>, vector<22x30xbf16>, vector<22x30xbf16>, vector<22x30xbf16> -> vector<22x150xbf16>
    %c0_2 = arith.constant 0 : index
    %c0_3 = arith.constant 0 : index
    %9 = vector.load %arg4[%c0_2, %c0_3] : memref<150x416xbf16, #tpu.memory_space<vmem>>, vector<150x416xbf16>
    %cst = arith.constant dense<0.000000e+00> : vector<22x416xf32>
    %10 = tpu.matmul %8, %9, %cst {dimension_numbers = #tpu.dot_dimension_numbers<[1], [0], [0], [1], [0, 0, 1, 1], [], []>} : vector<22x150xbf16>, vector<150x416xbf16>, vector<22x416xf32> -> vector<22x416xf32>
    %c0_4 = arith.constant 0 : index
    %c0_5 = arith.constant 0 : index
    %11 = vector.load %arg5[%c0_4, %c0_5] : memref<1x416xf32, #tpu.memory_space<vmem>>, vector<1x416xf32>
    %12 = vector.broadcast %11 : vector<1x416xf32> to vector<22x416xf32>
    %13 = arith.addf %10, %12 : vector<22x416xf32>
    %cst_6 = arith.constant 0.000000e+00 : f32
    %14 = vector.broadcast %cst_6 : f32 to vector<22x416xf32>
    %15 = arith.cmpf oge, %13, %14 : vector<22x416xf32>
    %cst_7 = arith.constant 0.00999999977 : f32
    %16 = vector.broadcast %cst_7 : f32 to vector<22x416xf32>
    %17 = arith.mulf %16, %13 : vector<22x416xf32>
    %18 = arith.select %15, %13, %17 : vector<22x416xi1>, vector<22x416xf32>
    %19 = arith.truncf %18 : vector<22x416xf32> to vector<22x416xbf16>
    %20 = vector.extract_strided_slice %19 {offsets = [0, 0], sizes = [1, 416], strides = [1, 1]} : vector<22x416xbf16> to vector<1x416xbf16>
    %21 = vector.extract_strided_slice %19 {offsets = [2, 0], sizes = [1, 416], strides = [1, 1]} : vector<22x416xbf16> to vector<1x416xbf16>
    %22 = vector.extract_strided_slice %19 {offsets = [4, 0], sizes = [1, 416], strides = [1, 1]} : vector<22x416xbf16> to vector<1x416xbf16>
    %23 = vector.extract_strided_slice %19 {offsets = [6, 0], sizes = [1, 416], strides = [1, 1]} : vector<22x416xbf16> to vector<1x416xbf16>
    %24 = vector.extract_strided_slice %19 {offsets = [8, 0], sizes = [1, 416], strides = [1, 1]} : vector<22x416xbf16> to vector<1x416xbf16>
    %25 = vector.extract_strided_slice %19 {offsets = [10, 0], sizes = [1, 416], strides = [1, 1]} : vector<22x416xbf16> to vector<1x416xbf16>
    %26 = vector.extract_strided_slice %19 {offsets = [12, 0], sizes = [1, 416], strides = [1, 1]} : vector<22x416xbf16> to vector<1x416xbf16>
    %27 = vector.extract_strided_slice %19 {offsets = [14, 0], sizes = [1, 416], strides = [1, 1]} : vector<22x416xbf16> to vector<1x416xbf16>
    %28 = vector.extract_strided_slice %19 {offsets = [16, 0], sizes = [1, 416], strides = [1, 1]} : vector<22x416xbf16> to vector<1x416xbf16>
    %29 = vector.extract_strided_slice %19 {offsets = [18, 0], sizes = [1, 416], strides = [1, 1]} : vector<22x416xbf16> to vector<1x416xbf16>
    %30 = vector.extract_strided_slice %19 {offsets = [20, 0], sizes = [1, 416], strides = [1, 1]} : vector<22x416xbf16> to vector<1x416xbf16>
    %31 = tpu.concatenate %20, %21, %22, %23, %24, %25, %26, %27, %28, %29, %30 in 0 : vector<1x416xbf16>, vector<1x416xbf16>, vector<1x416xbf16>, vector<1x416xbf16>, vector<1x416xbf16>, vector<1x416xbf16>, vector<1x416xbf16>, vector<1x416xbf16>, vector<1x416xbf16>, vector<1x416xbf16>, vector<1x416xbf16> -> vector<11x416xbf16>
    %32 = vector.extract_strided_slice %19 {offsets = [1, 0], sizes = [1, 416], strides = [1, 1]} : vector<22x416xbf16> to vector<1x416xbf16>
    %33 = vector.extract_strided_slice %19 {offsets = [3, 0], sizes = [1, 416], strides = [1, 1]} : vector<22x416xbf16> to vector<1x416xbf16>
    %34 = vector.extract_strided_slice %19 {offsets = [5, 0], sizes = [1, 416], strides = [1, 1]} : vector<22x416xbf16> to vector<1x416xbf16>
    %35 = vector.extract_strided_slice %19 {offsets = [7, 0], sizes = [1, 416], strides = [1, 1]} : vector<22x416xbf16> to vector<1x416xbf16>
    %36 = vector.extract_strided_slice %19 {offsets = [9, 0], sizes = [1, 416], strides = [1, 1]} : vector<22x416xbf16> to vector<1x416xbf16>
    %37 = vector.extract_strided_slice %19 {offsets = [11, 0], sizes = [1, 416], strides = [1, 1]} : vector<22x416xbf16> to vector<1x416xbf16>
    %38 = vector.extract_strided_slice %19 {offsets = [13, 0], sizes = [1, 416], strides = [1, 1]} : vector<22x416xbf16> to vector<1x416xbf16>
    %39 = vector.extract_strided_slice %19 {offsets = [15, 0], sizes = [1, 416], strides = [1, 1]} : vector<22x416xbf16> to vector<1x416xbf16>
    %40 = vector.extract_strided_slice %19 {offsets = [17, 0], sizes = [1, 416], strides = [1, 1]} : vector<22x416xbf16> to vector<1x416xbf16>
    %41 = vector.extract_strided_slice %19 {offsets = [19, 0], sizes = [1, 416], strides = [1, 1]} : vector<22x416xbf16> to vector<1x416xbf16>
    %42 = vector.extract_strided_slice %19 {offsets = [21, 0], sizes = [1, 416], strides = [1, 1]} : vector<22x416xbf16> to vector<1x416xbf16>
    %43 = tpu.concatenate %32, %33, %34, %35, %36, %37, %38, %39, %40, %41, %42 in 0 : vector<1x416xbf16>, vector<1x416xbf16>, vector<1x416xbf16>, vector<1x416xbf16>, vector<1x416xbf16>, vector<1x416xbf16>, vector<1x416xbf16>, vector<1x416xbf16>, vector<1x416xbf16>, vector<1x416xbf16>, vector<1x416xbf16> -> vector<11x416xbf16>
    %44 = vector.extract_strided_slice %31 {offsets = [0, 0], sizes = [10, 416], strides = [1, 1]} : vector<11x416xbf16> to vector<10x416xbf16>
    %45 = vector.extract_strided_slice %43 {offsets = [0, 0], sizes = [10, 416], strides = [1, 1]} : vector<11x416xbf16> to vector<10x416xbf16>
    %46 = vector.extract_strided_slice %31 {offsets = [1, 0], sizes = [10, 416], strides = [1, 1]} : vector<11x416xbf16> to vector<10x416xbf16>
    %47 = vector.extract_strided_slice %43 {offsets = [1, 0], sizes = [10, 416], strides = [1, 1]} : vector<11x416xbf16> to vector<10x416xbf16>
    %48 = tpu.concatenate %44, %45, %46, %47 in 1 : vector<10x416xbf16>, vector<10x416xbf16>, vector<10x416xbf16>, vector<10x416xbf16> -> vector<10x1664xbf16>
    %c0_8 = arith.constant 0 : index
    %c0_9 = arith.constant 0 : index
    %49 = vector.load %arg6[%c0_8, %c0_9] : memref<1664x96xbf16, #tpu.memory_space<vmem>>, vector<1664x96xbf16>
    %cst_10 = arith.constant dense<0.000000e+00> : vector<10x96xf32>
    %50 = tpu.matmul %48, %49, %cst_10 {dimension_numbers = #tpu.dot_dimension_numbers<[1], [0], [0], [1], [0, 0, 1, 1], [], []>} : vector<10x1664xbf16>, vector<1664x96xbf16>, vector<10x96xf32> -> vector<10x96xf32>
    %c0_11 = arith.constant 0 : index
    %c0_12 = arith.constant 0 : index
    %51 = vector.load %arg7[%c0_11, %c0_12] : memref<1x96xf32, #tpu.memory_space<vmem>>, vector<1x96xf32>
    %52 = vector.broadcast %51 : vector<1x96xf32> to vector<10x96xf32>
    %53 = arith.addf %50, %52 : vector<10x96xf32>
    %cst_13 = arith.constant 0.000000e+00 : f32
    %54 = vector.broadcast %cst_13 : f32 to vector<10x96xf32>
    %55 = arith.cmpf oge, %53, %54 : vector<10x96xf32>
    %cst_14 = arith.constant 0.00999999977 : f32
    %56 = vector.broadcast %cst_14 : f32 to vector<10x96xf32>
    %57 = arith.mulf %56, %53 : vector<10x96xf32>
    %58 = arith.select %55, %53, %57 : vector<10x96xi1>, vector<10x96xf32>
    %59 = arith.truncf %58 : vector<10x96xf32> to vector<10x96xbf16>
    %60 = vector.extract_strided_slice %59 {offsets = [0, 0], sizes = [1, 96], strides = [1, 1]} : vector<10x96xbf16> to vector<1x96xbf16>
    %61 = vector.extract_strided_slice %59 {offsets = [2, 0], sizes = [1, 96], strides = [1, 1]} : vector<10x96xbf16> to vector<1x96xbf16>
    %62 = vector.extract_strided_slice %59 {offsets = [4, 0], sizes = [1, 96], strides = [1, 1]} : vector<10x96xbf16> to vector<1x96xbf16>
    %63 = vector.extract_strided_slice %59 {offsets = [6, 0], sizes = [1, 96], strides = [1, 1]} : vector<10x96xbf16> to vector<1x96xbf16>
    %64 = vector.extract_strided_slice %59 {offsets = [8, 0], sizes = [1, 96], strides = [1, 1]} : vector<10x96xbf16> to vector<1x96xbf16>
    %65 = tpu.concatenate %60, %61, %62, %63, %64 in 0 : vector<1x96xbf16>, vector<1x96xbf16>, vector<1x96xbf16>, vector<1x96xbf16>, vector<1x96xbf16> -> vector<5x96xbf16>
    %66 = vector.extract_strided_slice %59 {offsets = [1, 0], sizes = [1, 96], strides = [1, 1]} : vector<10x96xbf16> to vector<1x96xbf16>
    %67 = vector.extract_strided_slice %59 {offsets = [3, 0], sizes = [1, 96], strides = [1, 1]} : vector<10x96xbf16> to vector<1x96xbf16>
    %68 = vector.extract_strided_slice %59 {offsets = [5, 0], sizes = [1, 96], strides = [1, 1]} : vector<10x96xbf16> to vector<1x96xbf16>
    %69 = vector.extract_strided_slice %59 {offsets = [7, 0], sizes = [1, 96], strides = [1, 1]} : vector<10x96xbf16> to vector<1x96xbf16>
    %70 = vector.extract_strided_slice %59 {offsets = [9, 0], sizes = [1, 96], strides = [1, 1]} : vector<10x96xbf16> to vector<1x96xbf16>
    %71 = tpu.concatenate %66, %67, %68, %69, %70 in 0 : vector<1x96xbf16>, vector<1x96xbf16>, vector<1x96xbf16>, vector<1x96xbf16>, vector<1x96xbf16> -> vector<5x96xbf16>
    %72 = vector.extract_strided_slice %65 {offsets = [0, 0], sizes = [4, 96], strides = [1, 1]} : vector<5x96xbf16> to vector<4x96xbf16>
    %73 = vector.extract_strided_slice %71 {offsets = [0, 0], sizes = [4, 96], strides = [1, 1]} : vector<5x96xbf16> to vector<4x96xbf16>
    %74 = vector.extract_strided_slice %65 {offsets = [1, 0], sizes = [4, 96], strides = [1, 1]} : vector<5x96xbf16> to vector<4x96xbf16>
    %75 = vector.extract_strided_slice %71 {offsets = [1, 0], sizes = [4, 96], strides = [1, 1]} : vector<5x96xbf16> to vector<4x96xbf16>
    %76 = tpu.concatenate %72, %73, %74, %75 in 1 : vector<4x96xbf16>, vector<4x96xbf16>, vector<4x96xbf16>, vector<4x96xbf16> -> vector<4x384xbf16>
    %c0_15 = arith.constant 0 : index
    %c0_16 = arith.constant 0 : index
    %77 = vector.load %arg8[%c0_15, %c0_16] : memref<384x30xbf16, #tpu.memory_space<vmem>>, vector<384x30xbf16>
    %cst_17 = arith.constant dense<0.000000e+00> : vector<4x30xf32>
    %78 = tpu.matmul %76, %77, %cst_17 {dimension_numbers = #tpu.dot_dimension_numbers<[1], [0], [0], [1], [0, 0, 1, 1], [], []>} : vector<4x384xbf16>, vector<384x30xbf16>, vector<4x30xf32> -> vector<4x30xf32>
    %c0_18 = arith.constant 0 : index
    %c0_19 = arith.constant 0 : index
    %79 = vector.load %arg9[%c0_18, %c0_19] : memref<1x30xf32, #tpu.memory_space<vmem>>, vector<1x30xf32>
    %80 = vector.broadcast %79 : vector<1x30xf32> to vector<4x30xf32>
    %81 = arith.addf %78, %80 : vector<4x30xf32>
    %cst_20 = arith.constant 0.000000e+00 : f32
    %82 = vector.broadcast %cst_20 : f32 to vector<4x30xf32>
    %83 = arith.cmpf oge, %81, %82 : vector<4x30xf32>
    %cst_21 = arith.constant 0.00999999977 : f32
    %84 = vector.broadcast %cst_21 : f32 to vector<4x30xf32>
    %85 = arith.mulf %84, %81 : vector<4x30xf32>
    %86 = arith.select %83, %81, %85 : vector<4x30xi1>, vector<4x30xf32>
    %87 = vector.extract_strided_slice %86 {offsets = [0, 0], sizes = [1, 30], strides = [1, 1]} : vector<4x30xf32> to vector<1x30xf32>
    %88 = vector.extract_strided_slice %86 {offsets = [1, 0], sizes = [1, 30], strides = [1, 1]} : vector<4x30xf32> to vector<1x30xf32>
    %89 = vector.extract_strided_slice %86 {offsets = [2, 0], sizes = [1, 30], strides = [1, 1]} : vector<4x30xf32> to vector<1x30xf32>
    %90 = vector.extract_strided_slice %86 {offsets = [3, 0], sizes = [1, 30], strides = [1, 1]} : vector<4x30xf32> to vector<1x30xf32>
    %91 = tpu.concatenate %87, %88, %89, %90 in 1 : vector<1x30xf32>, vector<1x30xf32>, vector<1x30xf32>, vector<1x30xf32> -> vector<1x120xf32>
    %92 = arith.truncf %91 : vector<1x120xf32> to vector<1x120xbf16>
    %c0_22 = arith.constant 0 : index
    %c0_23 = arith.constant 0 : index
    %93 = vector.load %arg10[%c0_22, %c0_23] : memref<120x16xbf16, #tpu.memory_space<vmem>>, vector<120x16xbf16>
    %cst_24 = arith.constant dense<0.000000e+00> : vector<1x16xf32>
    %94 = tpu.matmul %92, %93, %cst_24 {dimension_numbers = #tpu.dot_dimension_numbers<[1], [0], [0], [1], [0, 0, 1, 1], [], []>} : vector<1x120xbf16>, vector<120x16xbf16>, vector<1x16xf32> -> vector<1x16xf32>
    %c0_25 = arith.constant 0 : index
    %c0_26 = arith.constant 0 : index
    %95 = vector.load %arg11[%c0_25, %c0_26] : memref<1x16xf32, #tpu.memory_space<vmem>>, vector<1x16xf32>
    %96 = arith.addf %94, %95 : vector<1x16xf32>
    %97 = vector.extract_strided_slice %96 {offsets = [0, 0], sizes = [1, 8], strides = [1, 1]} : vector<1x16xf32> to vector<1x8xf32>
    %98 = vector.extract_strided_slice %96 {offsets = [0, 8], sizes = [1, 8], strides = [1, 1]} : vector<1x16xf32> to vector<1x8xf32>
    %99 = vector.shape_cast %97 : vector<1x8xf32> to vector<1x1x8xf32>
    %c0_27 = arith.constant 0 : index
    %c0_28 = arith.constant 0 : index
    %c0_29 = arith.constant 0 : index
    %100 = vector.load %arg21[%c0_27, %c0_28, %c0_29] : memref<1x1x8xf32, #tpu.memory_space<vmem>>, vector<1x1x8xf32>
    tpu.vector_store %arg21[%c0_27, %c0_28, %c0_29], %99 {strides = array<i32>} : memref<1x1x8xf32, #tpu.memory_space<vmem>>, vector<1x1x8xf32>,
    %101 = vector.shape_cast %98 : vector<1x8xf32> to vector<1x1x8xf32>
    %c0_30 = arith.constant 0 : index
    %c0_31 = arith.constant 0 : index
    %c0_32 = arith.constant 0 : index
    %102 = vector.load %arg22[%c0_30, %c0_31, %c0_32] : memref<1x1x8xf32, #tpu.memory_space<vmem>>, vector<1x1x8xf32>
    tpu.vector_store %arg22[%c0_30, %c0_31, %c0_32], %101 {strides = array<i32>} : memref<1x1x8xf32, #tpu.memory_space<vmem>>, vector<1x1x8xf32>,
    %c0_33 = arith.constant 0 : index
    %c0_34 = arith.constant 0 : index
    %c0_35 = arith.constant 0 : index
    %103 = vector.load %arg3[%c0_33, %c0_34, %c0_35] : memref<1x1x8xf32, #tpu.memory_space<vmem>>, vector<1x1x8xf32>
    %104 = vector.shape_cast %103 : vector<1x1x8xf32> to vector<1x8xf32>
    %cst_36 = arith.constant 5.000000e-01 : f32
    %105 = vector.broadcast %cst_36 : f32 to vector<1x8xf32>
    %106 = arith.mulf %105, %98 : vector<1x8xf32>
    %107 = math.exp %106 : vector<1x8xf32>
    %108 = arith.mulf %104, %107 : vector<1x8xf32>
    %109 = arith.addf %108, %97 : vector<1x8xf32>
    %c0_37 = arith.constant 0 : index
    %c0_38 = arith.constant 0 : index
    %c0_39 = arith.constant 0 : index
    %110 = vector.load %arg2[%c0_37, %c0_38, %c0_39] : memref<1x1x8xf32, #tpu.memory_space<vmem>>, vector<1x1x8xf32>
    %111 = vector.shape_cast %110 : vector<1x1x8xf32> to vector<1x8xf32>
    %112 = tpu.concatenate %109, %111 in 1 : vector<1x8xf32>, vector<1x8xf32> -> vector<1x16xf32>
    %113 = arith.truncf %112 : vector<1x16xf32> to vector<1x16xbf16>
    %c0_40 = arith.constant 0 : index
    %c0_41 = arith.constant 0 : index
    %114 = vector.load %arg12[%c0_40, %c0_41] : memref<16x120xbf16, #tpu.memory_space<vmem>>, vector<16x120xbf16>
    %cst_42 = arith.constant dense<0.000000e+00> : vector<1x120xf32>
    %115 = tpu.matmul %113, %114, %cst_42 {dimension_numbers = #tpu.dot_dimension_numbers<[1], [0], [0], [1], [0, 0, 1, 1], [], []>} : vector<1x16xbf16>, vector<16x120xbf16>, vector<1x120xf32> -> vector<1x120xf32>
    %c0_43 = arith.constant 0 : index
    %c0_44 = arith.constant 0 : index
    %116 = vector.load %arg13[%c0_43, %c0_44] : memref<1x120xf32, #tpu.memory_space<vmem>>, vector<1x120xf32>
    %117 = arith.addf %115, %116 : vector<1x120xf32>
    %118 = vector.extract_strided_slice %117 {offsets = [0, 0], sizes = [1, 30], strides = [1, 1]} : vector<1x120xf32> to vector<1x30xf32>
    %119 = vector.extract_strided_slice %117 {offsets = [0, 30], sizes = [1, 30], strides = [1, 1]} : vector<1x120xf32> to vector<1x30xf32>
    %120 = vector.extract_strided_slice %117 {offsets = [0, 60], sizes = [1, 30], strides = [1, 1]} : vector<1x120xf32> to vector<1x30xf32>
    %121 = vector.extract_strided_slice %117 {offsets = [0, 90], sizes = [1, 30], strides = [1, 1]} : vector<1x120xf32> to vector<1x30xf32>
    %122 = tpu.concatenate %118, %119, %120, %121 in 0 : vector<1x30xf32>, vector<1x30xf32>, vector<1x30xf32>, vector<1x30xf32> -> vector<4x30xf32>
    %123 = arith.truncf %122 : vector<4x30xf32> to vector<4x30xbf16>
    %c0_45 = arith.constant 0 : index
    %c0_46 = arith.constant 0 : index
    %c0_47 = arith.constant 0 : index
    %124 = vector.load %arg14[%c0_45, %c0_46, %c0_47] : memref<4x30x96xbf16, #tpu.memory_space<vmem>>, vector<1x30x96xbf16>
    %125 = vector.shape_cast %124 : vector<1x30x96xbf16> to vector<30x96xbf16>
    %cst_48 = arith.constant dense<0.000000e+00> : vector<4x96xf32>
    %126 = tpu.matmul %123, %125, %cst_48 {dimension_numbers = #tpu.dot_dimension_numbers<[1], [0], [0], [1], [0, 0, 1, 1], [], []>} : vector<4x30xbf16>, vector<30x96xbf16>, vector<4x96xf32> -> vector<4x96xf32>
    %c1 = arith.constant 1 : index
    %c0_49 = arith.constant 0 : index
    %c0_50 = arith.constant 0 : index
    %127 = vector.load %arg14[%c1, %c0_49, %c0_50] : memref<4x30x96xbf16, #tpu.memory_space<vmem>>, vector<1x30x96xbf16>
    %128 = vector.shape_cast %127 : vector<1x30x96xbf16> to vector<30x96xbf16>
    %cst_51 = arith.constant dense<0.000000e+00> : vector<4x96xf32>
    %129 = tpu.matmul %123, %128, %cst_51 {dimension_numbers = #tpu.dot_dimension_numbers<[1], [0], [0], [1], [0, 0, 1, 1], [], []>} : vector<4x30xbf16>, vector<30x96xbf16>, vector<4x96xf32> -> vector<4x96xf32>
    %c2 = arith.constant 2 : index
    %c0_52 = arith.constant 0 : index
    %c0_53 = arith.constant 0 : index
    %130 = vector.load %arg14[%c2, %c0_52, %c0_53] : memref<4x30x96xbf16, #tpu.memory_space<vmem>>, vector<1x30x96xbf16>
    %131 = vector.shape_cast %130 : vector<1x30x96xbf16> to vector<30x96xbf16>
    %cst_54 = arith.constant dense<0.000000e+00> : vector<4x96xf32>
    %132 = tpu.matmul %123, %131, %cst_54 {dimension_numbers = #tpu.dot_dimension_numbers<[1], [0], [0], [1], [0, 0, 1, 1], [], []>} : vector<4x30xbf16>, vector<30x96xbf16>, vector<4x96xf32> -> vector<4x96xf32>
    %c3 = arith.constant 3 : index
    %c0_55 = arith.constant 0 : index
    %c0_56 = arith.constant 0 : index
    %133 = vector.load %arg14[%c3, %c0_55, %c0_56] : memref<4x30x96xbf16, #tpu.memory_space<vmem>>, vector<1x30x96xbf16>
    %134 = vector.shape_cast %133 : vector<1x30x96xbf16> to vector<30x96xbf16>
    %cst_57 = arith.constant dense<0.000000e+00> : vector<4x96xf32>
    %135 = tpu.matmul %123, %134, %cst_57 {dimension_numbers = #tpu.dot_dimension_numbers<[1], [0], [0], [1], [0, 0, 1, 1], [], []>} : vector<4x30xbf16>, vector<30x96xbf16>, vector<4x96xf32> -> vector<4x96xf32>
    %cst_58 = arith.constant 0.000000e+00 : f32
    %136 = vector.broadcast %cst_58 : f32 to vector<1x96xf32>
    %137 = tpu.concatenate %126, %136 in 0 : vector<4x96xf32>, vector<1x96xf32> -> vector<5x96xf32>
    %138 = tpu.concatenate %136, %132 in 0 : vector<1x96xf32>, vector<4x96xf32> -> vector<5x96xf32>
    %139 = arith.addf %137, %138 : vector<5x96xf32>
    %140 = tpu.concatenate %129, %136 in 0 : vector<4x96xf32>, vector<1x96xf32> -> vector<5x96xf32>
    %141 = tpu.concatenate %136, %135 in 0 : vector<1x96xf32>, vector<4x96xf32> -> vector<5x96xf32>
    %142 = arith.addf %140, %141 : vector<5x96xf32>
    %c0_59 = arith.constant 0 : index
    %c0_60 = arith.constant 0 : index
    %143 = vector.load %arg15[%c0_59, %c0_60] : memref<1x96xf32, #tpu.memory_space<vmem>>, vector<1x96xf32>
    %144 = vector.broadcast %143 : vector<1x96xf32> to vector<5x96xf32>
    %145 = arith.addf %139, %144 : vector<5x96xf32>
    %cst_61 = arith.constant 0.000000e+00 : f32
    %146 = vector.broadcast %cst_61 : f32 to vector<5x96xf32>
    %147 = arith.cmpf oge, %145, %146 : vector<5x96xf32>
    %cst_62 = arith.constant 0.00999999977 : f32
    %148 = vector.broadcast %cst_62 : f32 to vector<5x96xf32>
    %149 = arith.mulf %148, %145 : vector<5x96xf32>
    %150 = arith.select %147, %145, %149 : vector<5x96xi1>, vector<5x96xf32>
    %151 = arith.truncf %150 : vector<5x96xf32> to vector<5x96xbf16>
    %c0_63 = arith.constant 0 : index
    %c0_64 = arith.constant 0 : index
    %152 = vector.load %arg15[%c0_63, %c0_64] : memref<1x96xf32, #tpu.memory_space<vmem>>, vector<1x96xf32>
    %153 = vector.broadcast %152 : vector<1x96xf32> to vector<5x96xf32>
    %154 = arith.addf %142, %153 : vector<5x96xf32>
    %cst_65 = arith.constant 0.000000e+00 : f32
    %155 = vector.broadcast %cst_65 : f32 to vector<5x96xf32>
    %156 = arith.cmpf oge, %154, %155 : vector<5x96xf32>
    %cst_66 = arith.constant 0.00999999977 : f32
    %157 = vector.broadcast %cst_66 : f32 to vector<5x96xf32>
    %158 = arith.mulf %157, %154 : vector<5x96xf32>
    %159 = arith.select %156, %154, %158 : vector<5x96xi1>, vector<5x96xf32>
    %160 = arith.truncf %159 : vector<5x96xf32> to vector<5x96xbf16>
    %161 = vector.extract_strided_slice %151 {offsets = [0, 0], sizes = [1, 96], strides = [1, 1]} : vector<5x96xbf16> to vector<1x96xbf16>
    %162 = vector.extract_strided_slice %160 {offsets = [0, 0], sizes = [1, 96], strides = [1, 1]} : vector<5x96xbf16> to vector<1x96xbf16>
    %163 = vector.extract_strided_slice %151 {offsets = [1, 0], sizes = [1, 96], strides = [1, 1]} : vector<5x96xbf16> to vector<1x96xbf16>
    %164 = vector.extract_strided_slice %160 {offsets = [1, 0], sizes = [1, 96], strides = [1, 1]} : vector<5x96xbf16> to vector<1x96xbf16>
    %165 = vector.extract_strided_slice %151 {offsets = [2, 0], sizes = [1, 96], strides = [1, 1]} : vector<5x96xbf16> to vector<1x96xbf16>
    %166 = vector.extract_strided_slice %160 {offsets = [2, 0], sizes = [1, 96], strides = [1, 1]} : vector<5x96xbf16> to vector<1x96xbf16>
    %167 = vector.extract_strided_slice %151 {offsets = [3, 0], sizes = [1, 96], strides = [1, 1]} : vector<5x96xbf16> to vector<1x96xbf16>
    %168 = vector.extract_strided_slice %160 {offsets = [3, 0], sizes = [1, 96], strides = [1, 1]} : vector<5x96xbf16> to vector<1x96xbf16>
    %169 = vector.extract_strided_slice %151 {offsets = [4, 0], sizes = [1, 96], strides = [1, 1]} : vector<5x96xbf16> to vector<1x96xbf16>
    %170 = vector.extract_strided_slice %160 {offsets = [4, 0], sizes = [1, 96], strides = [1, 1]} : vector<5x96xbf16> to vector<1x96xbf16>
    %171 = tpu.concatenate %161, %162, %163, %164, %165, %166, %167, %168, %169, %170 in 0 : vector<1x96xbf16>, vector<1x96xbf16>, vector<1x96xbf16>, vector<1x96xbf16>, vector<1x96xbf16>, vector<1x96xbf16>, vector<1x96xbf16>, vector<1x96xbf16>, vector<1x96xbf16>, vector<1x96xbf16> -> vector<10x96xbf16>
    %c0_67 = arith.constant 0 : index
    %c0_68 = arith.constant 0 : index
    %c0_69 = arith.constant 0 : index
    %172 = vector.load %arg16[%c0_67, %c0_68, %c0_69] : memref<4x96x208xbf16, #tpu.memory_space<vmem>>, vector<1x96x208xbf16>
    %173 = vector.shape_cast %172 : vector<1x96x208xbf16> to vector<96x208xbf16>
    %cst_70 = arith.constant dense<0.000000e+00> : vector<10x208xf32>
    %174 = tpu.matmul %171, %173, %cst_70 {dimension_numbers = #tpu.dot_dimension_numbers<[1], [0], [0], [1], [0, 0, 1, 1], [], []>} : vector<10x96xbf16>, vector<96x208xbf16>, vector<10x208xf32> -> vector<10x208xf32>
    %c1_71 = arith.constant 1 : index
    %c0_72 = arith.constant 0 : index
    %c0_73 = arith.constant 0 : index
    %175 = vector.load %arg16[%c1_71, %c0_72, %c0_73] : memref<4x96x208xbf16, #tpu.memory_space<vmem>>, vector<1x96x208xbf16>
    %176 = vector.shape_cast %175 : vector<1x96x208xbf16> to vector<96x208xbf16>
    %cst_74 = arith.constant dense<0.000000e+00> : vector<10x208xf32>
    %177 = tpu.matmul %171, %176, %cst_74 {dimension_numbers = #tpu.dot_dimension_numbers<[1], [0], [0], [1], [0, 0, 1, 1], [], []>} : vector<10x96xbf16>, vector<96x208xbf16>, vector<10x208xf32> -> vector<10x208xf32>
    %c2_75 = arith.constant 2 : index
    %c0_76 = arith.constant 0 : index
    %c0_77 = arith.constant 0 : index
    %178 = vector.load %arg16[%c2_75, %c0_76, %c0_77] : memref<4x96x208xbf16, #tpu.memory_space<vmem>>, vector<1x96x208xbf16>
    %179 = vector.shape_cast %178 : vector<1x96x208xbf16> to vector<96x208xbf16>
    %cst_78 = arith.constant dense<0.000000e+00> : vector<10x208xf32>
    %180 = tpu.matmul %171, %179, %cst_78 {dimension_numbers = #tpu.dot_dimension_numbers<[1], [0], [0], [1], [0, 0, 1, 1], [], []>} : vector<10x96xbf16>, vector<96x208xbf16>, vector<10x208xf32> -> vector<10x208xf32>
    %c3_79 = arith.constant 3 : index
    %c0_80 = arith.constant 0 : index
    %c0_81 = arith.constant 0 : index
    %181 = vector.load %arg16[%c3_79, %c0_80, %c0_81] : memref<4x96x208xbf16, #tpu.memory_space<vmem>>, vector<1x96x208xbf16>
    %182 = vector.shape_cast %181 : vector<1x96x208xbf16> to vector<96x208xbf16>
    %cst_82 = arith.constant dense<0.000000e+00> : vector<10x208xf32>
    %183 = tpu.matmul %171, %182, %cst_82 {dimension_numbers = #tpu.dot_dimension_numbers<[1], [0], [0], [1], [0, 0, 1, 1], [], []>} : vector<10x96xbf16>, vector<96x208xbf16>, vector<10x208xf32> -> vector<10x208xf32>
    %cst_83 = arith.constant 0.000000e+00 : f32
    %184 = vector.broadcast %cst_83 : f32 to vector<1x208xf32>
    %185 = tpu.concatenate %174, %184 in 0 : vector<10x208xf32>, vector<1x208xf32> -> vector<11x208xf32>
    %186 = tpu.concatenate %184, %180 in 0 : vector<1x208xf32>, vector<10x208xf32> -> vector<11x208xf32>
    %187 = arith.addf %185, %186 : vector<11x208xf32>
    %188 = tpu.concatenate %177, %184 in 0 : vector<10x208xf32>, vector<1x208xf32> -> vector<11x208xf32>
    %189 = tpu.concatenate %184, %183 in 0 : vector<1x208xf32>, vector<10x208xf32> -> vector<11x208xf32>
    %190 = arith.addf %188, %189 : vector<11x208xf32>
    %c0_84 = arith.constant 0 : index
    %c0_85 = arith.constant 0 : index
    %191 = vector.load %arg17[%c0_84, %c0_85] : memref<1x208xf32, #tpu.memory_space<vmem>>, vector<1x208xf32>
    %192 = vector.broadcast %191 : vector<1x208xf32> to vector<11x208xf32>
    %193 = arith.addf %187, %192 : vector<11x208xf32>
    %cst_86 = arith.constant 0.000000e+00 : f32
    %194 = vector.broadcast %cst_86 : f32 to vector<11x208xf32>
    %195 = arith.cmpf oge, %193, %194 : vector<11x208xf32>
    %cst_87 = arith.constant 0.00999999977 : f32
    %196 = vector.broadcast %cst_87 : f32 to vector<11x208xf32>
    %197 = arith.mulf %196, %193 : vector<11x208xf32>
    %198 = arith.select %195, %193, %197 : vector<11x208xi1>, vector<11x208xf32>
    %199 = arith.truncf %198 : vector<11x208xf32> to vector<11x208xbf16>
    %c0_88 = arith.constant 0 : index
    %c0_89 = arith.constant 0 : index
    %200 = vector.load %arg17[%c0_88, %c0_89] : memref<1x208xf32, #tpu.memory_space<vmem>>, vector<1x208xf32>
    %201 = vector.broadcast %200 : vector<1x208xf32> to vector<11x208xf32>
    %202 = arith.addf %190, %201 : vector<11x208xf32>
    %cst_90 = arith.constant 0.000000e+00 : f32
    %203 = vector.broadcast %cst_90 : f32 to vector<11x208xf32>
    %204 = arith.cmpf oge, %202, %203 : vector<11x208xf32>
    %cst_91 = arith.constant 0.00999999977 : f32
    %205 = vector.broadcast %cst_91 : f32 to vector<11x208xf32>
    %206 = arith.mulf %205, %202 : vector<11x208xf32>
    %207 = arith.select %204, %202, %206 : vector<11x208xi1>, vector<11x208xf32>
    %208 = arith.truncf %207 : vector<11x208xf32> to vector<11x208xbf16>
    %209 = vector.extract_strided_slice %199 {offsets = [0, 0], sizes = [1, 208], strides = [1, 1]} : vector<11x208xbf16> to vector<1x208xbf16>
    %210 = vector.extract_strided_slice %208 {offsets = [0, 0], sizes = [1, 208], strides = [1, 1]} : vector<11x208xbf16> to vector<1x208xbf16>
    %211 = vector.extract_strided_slice %199 {offsets = [1, 0], sizes = [1, 208], strides = [1, 1]} : vector<11x208xbf16> to vector<1x208xbf16>
    %212 = vector.extract_strided_slice %208 {offsets = [1, 0], sizes = [1, 208], strides = [1, 1]} : vector<11x208xbf16> to vector<1x208xbf16>
    %213 = vector.extract_strided_slice %199 {offsets = [2, 0], sizes = [1, 208], strides = [1, 1]} : vector<11x208xbf16> to vector<1x208xbf16>
    %214 = vector.extract_strided_slice %208 {offsets = [2, 0], sizes = [1, 208], strides = [1, 1]} : vector<11x208xbf16> to vector<1x208xbf16>
    %215 = vector.extract_strided_slice %199 {offsets = [3, 0], sizes = [1, 208], strides = [1, 1]} : vector<11x208xbf16> to vector<1x208xbf16>
    %216 = vector.extract_strided_slice %208 {offsets = [3, 0], sizes = [1, 208], strides = [1, 1]} : vector<11x208xbf16> to vector<1x208xbf16>
    %217 = vector.extract_strided_slice %199 {offsets = [4, 0], sizes = [1, 208], strides = [1, 1]} : vector<11x208xbf16> to vector<1x208xbf16>
    %218 = vector.extract_strided_slice %208 {offsets = [4, 0], sizes = [1, 208], strides = [1, 1]} : vector<11x208xbf16> to vector<1x208xbf16>
    %219 = vector.extract_strided_slice %199 {offsets = [5, 0], sizes = [1, 208], strides = [1, 1]} : vector<11x208xbf16> to vector<1x208xbf16>
    %220 = vector.extract_strided_slice %208 {offsets = [5, 0], sizes = [1, 208], strides = [1, 1]} : vector<11x208xbf16> to vector<1x208xbf16>
    %221 = vector.extract_strided_slice %199 {offsets = [6, 0], sizes = [1, 208], strides = [1, 1]} : vector<11x208xbf16> to vector<1x208xbf16>
    %222 = vector.extract_strided_slice %208 {offsets = [6, 0], sizes = [1, 208], strides = [1, 1]} : vector<11x208xbf16> to vector<1x208xbf16>
    %223 = vector.extract_strided_slice %199 {offsets = [7, 0], sizes = [1, 208], strides = [1, 1]} : vector<11x208xbf16> to vector<1x208xbf16>
    %224 = vector.extract_strided_slice %208 {offsets = [7, 0], sizes = [1, 208], strides = [1, 1]} : vector<11x208xbf16> to vector<1x208xbf16>
    %225 = vector.extract_strided_slice %199 {offsets = [8, 0], sizes = [1, 208], strides = [1, 1]} : vector<11x208xbf16> to vector<1x208xbf16>
    %226 = vector.extract_strided_slice %208 {offsets = [8, 0], sizes = [1, 208], strides = [1, 1]} : vector<11x208xbf16> to vector<1x208xbf16>
    %227 = vector.extract_strided_slice %199 {offsets = [9, 0], sizes = [1, 208], strides = [1, 1]} : vector<11x208xbf16> to vector<1x208xbf16>
    %228 = vector.extract_strided_slice %208 {offsets = [9, 0], sizes = [1, 208], strides = [1, 1]} : vector<11x208xbf16> to vector<1x208xbf16>
    %229 = vector.extract_strided_slice %199 {offsets = [10, 0], sizes = [1, 208], strides = [1, 1]} : vector<11x208xbf16> to vector<1x208xbf16>
    %230 = vector.extract_strided_slice %208 {offsets = [10, 0], sizes = [1, 208], strides = [1, 1]} : vector<11x208xbf16> to vector<1x208xbf16>
    %231 = tpu.concatenate %209, %210, %211, %212, %213, %214, %215, %216, %217, %218, %219, %220, %221, %222, %223, %224 in 0 : vector<1x208xbf16>, vector<1x208xbf16>, vector<1x208xbf16>, vector<1x208xbf16>, vector<1x208xbf16>, vector<1x208xbf16>, vector<1x208xbf16>, vector<1x208xbf16>, vector<1x208xbf16>, vector<1x208xbf16>, vector<1x208xbf16>, vector<1x208xbf16>, vector<1x208xbf16>, vector<1x208xbf16>, vector<1x208xbf16>, vector<1x208xbf16> -> vector<16x208xbf16>
    %232 = tpu.concatenate %225, %226, %227, %228, %229, %230 in 0 : vector<1x208xbf16>, vector<1x208xbf16>, vector<1x208xbf16>, vector<1x208xbf16>, vector<1x208xbf16>, vector<1x208xbf16> -> vector<6x208xbf16>
    %233 = tpu.concatenate %231, %232 in 0 : vector<16x208xbf16>, vector<6x208xbf16> -> vector<22x208xbf16>
    %cst_92 = arith.constant 0.000000e+00 : f32
    %234 = vector.broadcast %cst_92 : f32 to vector<26x30xf32>
    %c0_93 = arith.constant 0 : index
    %c0_94 = arith.constant 0 : index
    %c0_95 = arith.constant 0 : index
    %235 = vector.load %arg18[%c0_93, %c0_94, %c0_95] : memref<5x208x30xbf16, #tpu.memory_space<vmem>>, vector<1x208x30xbf16>
    %236 = vector.shape_cast %235 : vector<1x208x30xbf16> to vector<208x30xbf16>
    %cst_96 = arith.constant dense<0.000000e+00> : vector<22x30xf32>
    %237 = tpu.matmul %233, %236, %cst_96 {dimension_numbers = #tpu.dot_dimension_numbers<[1], [0], [0], [1], [0, 0, 1, 1], [], []>} : vector<22x208xbf16>, vector<208x30xbf16>, vector<22x30xf32> -> vector<22x30xf32>
    %cst_97 = arith.constant 0.000000e+00 : f32
    %238 = vector.broadcast %cst_97 : f32 to vector<4x30xf32>
    %239 = tpu.concatenate %237, %238 in 0 : vector<22x30xf32>, vector<4x30xf32> -> vector<26x30xf32>
    %240 = arith.addf %234, %239 : vector<26x30xf32>
    %c1_98 = arith.constant 1 : index
    %c0_99 = arith.constant 0 : index
    %c0_100 = arith.constant 0 : index
    %241 = vector.load %arg18[%c1_98, %c0_99, %c0_100] : memref<5x208x30xbf16, #tpu.memory_space<vmem>>, vector<1x208x30xbf16>
    %242 = vector.shape_cast %241 : vector<1x208x30xbf16> to vector<208x30xbf16>
    %cst_101 = arith.constant dense<0.000000e+00> : vector<22x30xf32>
    %243 = tpu.matmul %233, %242, %cst_101 {dimension_numbers = #tpu.dot_dimension_numbers<[1], [0], [0], [1], [0, 0, 1, 1], [], []>} : vector<22x208xbf16>, vector<208x30xbf16>, vector<22x30xf32> -> vector<22x30xf32>
    %cst_102 = arith.constant 0.000000e+00 : f32
    %244 = vector.broadcast %cst_102 : f32 to vector<1x30xf32>
    %cst_103 = arith.constant 0.000000e+00 : f32
    %245 = vector.broadcast %cst_103 : f32 to vector<3x30xf32>
    %246 = tpu.concatenate %244, %243, %245 in 0 : vector<1x30xf32>, vector<22x30xf32>, vector<3x30xf32> -> vector<26x30xf32>
    %247 = arith.addf %240, %246 : vector<26x30xf32>
    %c2_104 = arith.constant 2 : index
    %c0_105 = arith.constant 0 : index
    %c0_106 = arith.constant 0 : index
    %248 = vector.load %arg18[%c2_104, %c0_105, %c0_106] : memref<5x208x30xbf16, #tpu.memory_space<vmem>>, vector<1x208x30xbf16>
    %249 = vector.shape_cast %248 : vector<1x208x30xbf16> to vector<208x30xbf16>
    %cst_107 = arith.constant dense<0.000000e+00> : vector<22x30xf32>
    %250 = tpu.matmul %233, %249, %cst_107 {dimension_numbers = #tpu.dot_dimension_numbers<[1], [0], [0], [1], [0, 0, 1, 1], [], []>} : vector<22x208xbf16>, vector<208x30xbf16>, vector<22x30xf32> -> vector<22x30xf32>
    %cst_108 = arith.constant 0.000000e+00 : f32
    %251 = vector.broadcast %cst_108 : f32 to vector<2x30xf32>
    %cst_109 = arith.constant 0.000000e+00 : f32
    %252 = vector.broadcast %cst_109 : f32 to vector<2x30xf32>
    %253 = tpu.concatenate %251, %250, %252 in 0 : vector<2x30xf32>, vector<22x30xf32>, vector<2x30xf32> -> vector<26x30xf32>
    %254 = arith.addf %247, %253 : vector<26x30xf32>
    %c3_110 = arith.constant 3 : index
    %c0_111 = arith.constant 0 : index
    %c0_112 = arith.constant 0 : index
    %255 = vector.load %arg18[%c3_110, %c0_111, %c0_112] : memref<5x208x30xbf16, #tpu.memory_space<vmem>>, vector<1x208x30xbf16>
    %256 = vector.shape_cast %255 : vector<1x208x30xbf16> to vector<208x30xbf16>
    %cst_113 = arith.constant dense<0.000000e+00> : vector<22x30xf32>
    %257 = tpu.matmul %233, %256, %cst_113 {dimension_numbers = #tpu.dot_dimension_numbers<[1], [0], [0], [1], [0, 0, 1, 1], [], []>} : vector<22x208xbf16>, vector<208x30xbf16>, vector<22x30xf32> -> vector<22x30xf32>
    %cst_114 = arith.constant 0.000000e+00 : f32
    %258 = vector.broadcast %cst_114 : f32 to vector<3x30xf32>
    %cst_115 = arith.constant 0.000000e+00 : f32
    %259 = vector.broadcast %cst_115 : f32 to vector<1x30xf32>
    %260 = tpu.concatenate %258, %257, %259 in 0 : vector<3x30xf32>, vector<22x30xf32>, vector<1x30xf32> -> vector<26x30xf32>
    %261 = arith.addf %254, %260 : vector<26x30xf32>
    %c4 = arith.constant 4 : index
    %c0_116 = arith.constant 0 : index
    %c0_117 = arith.constant 0 : index
    %262 = vector.load %arg18[%c4, %c0_116, %c0_117] : memref<5x208x30xbf16, #tpu.memory_space<vmem>>, vector<1x208x30xbf16>
    %263 = vector.shape_cast %262 : vector<1x208x30xbf16> to vector<208x30xbf16>
    %cst_118 = arith.constant dense<0.000000e+00> : vector<22x30xf32>
    %264 = tpu.matmul %233, %263, %cst_118 {dimension_numbers = #tpu.dot_dimension_numbers<[1], [0], [0], [1], [0, 0, 1, 1], [], []>} : vector<22x208xbf16>, vector<208x30xbf16>, vector<22x30xf32> -> vector<22x30xf32>
    %cst_119 = arith.constant 0.000000e+00 : f32
    %265 = vector.broadcast %cst_119 : f32 to vector<4x30xf32>
    %266 = tpu.concatenate %265, %264 in 0 : vector<4x30xf32>, vector<22x30xf32> -> vector<26x30xf32>
    %267 = arith.addf %261, %266 : vector<26x30xf32>
    %c0_120 = arith.constant 0 : index
    %c0_121 = arith.constant 0 : index
    %268 = vector.load %arg19[%c0_120, %c0_121] : memref<1x30xf32, #tpu.memory_space<vmem>>, vector<1x30xf32>
    %269 = vector.broadcast %268 : vector<1x30xf32> to vector<26x30xf32>
    %270 = arith.addf %267, %269 : vector<26x30xf32>
    %cst_122 = arith.constant 0.000000e+00 : f32
    %271 = vector.broadcast %cst_122 : f32 to vector<26x30xf32>
    %272 = arith.maximumf %270, %271 : vector<26x30xf32>
    %273 = vector.shape_cast %272 : vector<26x30xf32> to vector<1x26x30xf32>
    %c0_123 = arith.constant 0 : index
    %c0_124 = arith.constant 0 : index
    %c0_125 = arith.constant 0 : index
    %274 = vector.load %arg20[%c0_123, %c0_124, %c0_125] : memref<1x26x30xf32, #tpu.memory_space<vmem>>, vector<1x26x30xf32>
    tpu.vector_store %arg20[%c0_123, %c0_124, %c0_125], %273 {strides = array<i32>} : memref<1x26x30xf32, #tpu.memory_space<vmem>>, vector<1x26x30xf32>,
    %c0_126 = arith.constant 0 : index
    %c0_127 = arith.constant 0 : index
    %c0_128 = arith.constant 0 : index
    %275 = vector.load %arg1[%c0_126, %c0_127, %c0_128] : memref<1x26x30xf32, #tpu.memory_space<vmem>>, vector<1x26x30xf32>
    %cst_129 = arith.constant 0.000000e+00 : f32
    %276 = vector.broadcast %cst_129 : f32 to vector<1x26x30xf32>
    %277 = arith.cmpf one, %275, %276 : vector<1x26x30xf32>
    %278 = arith.extui %277 : vector<1x26x30xi1> to vector<1x26x30xi32>
    %279 = arith.sitofp %278 : vector<1x26x30xi32> to vector<1x26x30xf32>
    %c0_130 = arith.constant 0 : index
    %c0_131 = arith.constant 0 : index
    %c0_132 = arith.constant 0 : index
    %280 = vector.load %arg23[%c0_130, %c0_131, %c0_132] : memref<1x26x30xf32, #tpu.memory_space<vmem>>, vector<1x26x30xf32>
    tpu.vector_store %arg23[%c0_130, %c0_131, %c0_132], %279 {strides = array<i32>} : memref<1x26x30xf32, #tpu.memory_space<vmem>>, vector<1x26x30xf32>,
    return
  }
  func.func @transform_0(%arg0: i32) -> (i32, i32, i32) {
    %c0_i32 = arith.constant 0 : i32
    %c0_i32_0 = arith.constant 0 : i32
    %c0_i32_1 = arith.constant 0 : i32
    return %arg0, %c0_i32, %c0_i32_0 : i32, i32, i32
  }
  func.func @transform_1(%arg0: i32) -> (i32, i32, i32) {
    %c0_i32 = arith.constant 0 : i32
    %c0_i32_0 = arith.constant 0 : i32
    %c0_i32_1 = arith.constant 0 : i32
    return %arg0, %c0_i32, %c0_i32_0 : i32, i32, i32
  }
  func.func @transform_2(%arg0: i32) -> (i32, i32, i32) {
    %c0_i32 = arith.constant 0 : i32
    %c0_i32_0 = arith.constant 0 : i32
    %c0_i32_1 = arith.constant 0 : i32
    return %arg0, %c0_i32, %c0_i32_0 : i32, i32, i32
  }
  func.func @transform_3(%arg0: i32) -> (i32, i32) {
    %c0_i32 = arith.constant 0 : i32
    %c0_i32_0 = arith.constant 0 : i32
    %c0_i32_1 = arith.constant 0 : i32
    return %c0_i32, %c0_i32_0 : i32, i32
  }
  func.func @transform_4(%arg0: i32) -> (i32, i32) {
    %c0_i32 = arith.constant 0 : i32
    %c0_i32_0 = arith.constant 0 : i32
    %c0_i32_1 = arith.constant 0 : i32
    return %c0_i32, %c0_i32_0 : i32, i32
  }
  func.func @transform_5(%arg0: i32) -> (i32, i32) {
    %c0_i32 = arith.constant 0 : i32
    %c0_i32_0 = arith.constant 0 : i32
    %c0_i32_1 = arith.constant 0 : i32
    return %c0_i32, %c0_i32_0 : i32, i32
  }
  func.func @transform_6(%arg0: i32) -> (i32, i32) {
    %c0_i32 = arith.constant 0 : i32
    %c0_i32_0 = arith.constant 0 : i32
    %c0_i32_1 = arith.constant 0 : i32
    return %c0_i32, %c0_i32_0 : i32, i32
  }
  func.func @transform_7(%arg0: i32) -> (i32, i32) {
    %c0_i32 = arith.constant 0 : i32
    %c0_i32_0 = arith.constant 0 : i32
    %c0_i32_1 = arith.constant 0 : i32
    return %c0_i32, %c0_i32_0 : i32, i32
  }
  func.func @transform_8(%arg0: i32) -> (i32, i32) {
    %c0_i32 = arith.constant 0 : i32
    %c0_i32_0 = arith.constant 0 : i32
    %c0_i32_1 = arith.constant 0 : i32
    return %c0_i32, %c0_i32_0 : i32, i32
  }
  func.func @transform_9(%arg0: i32) -> (i32, i32) {
    %c0_i32 = arith.constant 0 : i32
    %c0_i32_0 = arith.constant 0 : i32
    %c0_i32_1 = arith.constant 0 : i32
    return %c0_i32, %c0_i32_0 : i32, i32
  }
  func.func @transform_10(%arg0: i32) -> (i32, i32) {
    %c0_i32 = arith.constant 0 : i32
    %c0_i32_0 = arith.constant 0 : i32
    %c0_i32_1 = arith.constant 0 : i32
    return %c0_i32, %c0_i32_0 : i32, i32
  }
  func.func @transform_11(%arg0: i32) -> (i32, i32) {
    %c0_i32 = arith.constant 0 : i32
    %c0_i32_0 = arith.constant 0 : i32
    %c0_i32_1 = arith.constant 0 : i32
    return %c0_i32, %c0_i32_0 : i32, i32
  }
  func.func @transform_12(%arg0: i32) -> (i32, i32) {
    %c0_i32 = arith.constant 0 : i32
    %c0_i32_0 = arith.constant 0 : i32
    %c0_i32_1 = arith.constant 0 : i32
    return %c0_i32, %c0_i32_0 : i32, i32
  }
  func.func @transform_13(%arg0: i32) -> (i32, i32, i32) {
    %c0_i32 = arith.constant 0 : i32
    %c0_i32_0 = arith.constant 0 : i32
    %c0_i32_1 = arith.constant 0 : i32
    %c0_i32_2 = arith.constant 0 : i32
    return %c0_i32, %c0_i32_0, %c0_i32_1 : i32, i32, i32
  }
  func.func @transform_14(%arg0: i32) -> (i32, i32) {
    %c0_i32 = arith.constant 0 : i32
    %c0_i32_0 = arith.constant 0 : i32
    %c0_i32_1 = arith.constant 0 : i32
    return %c0_i32, %c0_i32_0 : i32, i32
  }
  func.func @transform_15(%arg0: i32) -> (i32, i32, i32) {
    %c0_i32 = arith.constant 0 : i32
    %c0_i32_0 = arith.constant 0 : i32
    %c0_i32_1 = arith.constant 0 : i32
    %c0_i32_2 = arith.constant 0 : i32
    return %c0_i32, %c0_i32_0, %c0_i32_1 : i32, i32, i32
  }
  func.func @transform_16(%arg0: i32) -> (i32, i32) {
    %c0_i32 = arith.constant 0 : i32
    %c0_i32_0 = arith.constant 0 : i32
    %c0_i32_1 = arith.constant 0 : i32
    return %c0_i32, %c0_i32_0 : i32, i32
  }
  func.func @transform_17(%arg0: i32) -> (i32, i32, i32) {
    %c0_i32 = arith.constant 0 : i32
    %c0_i32_0 = arith.constant 0 : i32
    %c0_i32_1 = arith.constant 0 : i32
    %c0_i32_2 = arith.constant 0 : i32
    return %c0_i32, %c0_i32_0, %c0_i32_1 : i32, i32, i32
  }
  func.func @transform_18(%arg0: i32) -> (i32, i32) {
    %c0_i32 = arith.constant 0 : i32
    %c0_i32_0 = arith.constant 0 : i32
    %c0_i32_1 = arith.constant 0 : i32
    return %c0_i32, %c0_i32_0 : i32, i32
  }
  func.func @transform_19(%arg0: i32) -> (i32, i32, i32) {
    %c0_i32 = arith.constant 0 : i32
    %c0_i32_0 = arith.constant 0 : i32
    %c0_i32_1 = arith.constant 0 : i32
    return %arg0, %c0_i32, %c0_i32_0 : i32, i32, i32
  }
  func.func @transform_20(%arg0: i32) -> (i32, i32, i32) {
    %c0_i32 = arith.constant 0 : i32
    %c0_i32_0 = arith.constant 0 : i32
    %c0_i32_1 = arith.constant 0 : i32
    return %arg0, %c0_i32, %c0_i32_0 : i32, i32, i32
  }
  func.func @transform_21(%arg0: i32) -> (i32, i32, i32) {
    %c0_i32 = arith.constant 0 : i32
    %c0_i32_0 = arith.constant 0 : i32
    %c0_i32_1 = arith.constant 0 : i32
    return %arg0, %c0_i32, %c0_i32_0 : i32, i32, i32
  }
  func.func @transform_22(%arg0: i32) -> (i32, i32, i32) {
    %c0_i32 = arith.constant 0 : i32
    %c0_i32_0 = arith.constant 0 : i32
    %c0_i32_1 = arith.constant 0 : i32
    return %arg0, %c0_i32, %c0_i32_0 : i32, i32, i32
  }
}

</mosaic_0001>

<bundles_post_ra>
// kernel: _lambda_.1
= control target key start
LH: loop header
LB: loop body
LE: loop exit
PB: predicated region body
PF: predicated region fallthrough
CT: control target
= control target key end

     0   :  { %s8875_s0 = inlined_call_operand.vmem [shape: f32[2,26,30], index: 0, kind: input, shape index: {}]   ;;  %s8876_s1 = inlined_call_operand.vmem [shape: f32[2,1,8], index: 1, kind: input, shape index: {}]   ;;  %s8877_s2 = inlined_call_operand.vmem [shape: f32[2,1,8], index: 2, kind: input, shape index: {}]   ;;  %s8878_s3 = inlined_call_operand.vmem [shape: bf16[150,416], index: 3, kind: input, shape index: {}]   ;;  %s8879_s4 = inlined_call_operand.vmem [shape: f32[1,416], index: 4, kind: input, shape index: {}]   ;;  %s8880_s5 = inlined_call_operand.vmem [shape: bf16[1664,96], index: 5, kind: input, shape index: {}]   ;;  %s8881_s6 = inlined_call_operand.vmem [shape: f32[1,96], index: 6, kind: input, shape index: {}]   ;;  %s8882_s7 = inlined_call_operand.vmem [shape: bf16[384,30], index: 7, kind: input, shape index: {}]   ;;  %s8883_s8 = inlined_call_operand.vmem [shape: f32[1,30], index: 8, kind: input, shape index: {}]   ;;  %s8884_s9 = inlined_call_operand.vmem [shape: bf16[120,16], index: 9, kind: input, shape index: {}]   ;;  %s8885_s10 = inlined_call_operand.vmem [shape: f32[1,16], index: 10, kind: input, shape index: {}]   ;;  %s8886_s11 = inlined_call_operand.vmem [shape: bf16[16,120], index: 11, kind: input, shape index: {}]   ;;  %s8887_s12 = inlined_call_operand.vmem [shape: f32[1,120], index: 12, kind: input, shape index: {}]   ;;  %s8888_s13 = inlined_call_operand.vmem [shape: bf16[4,30,96], index: 13, kind: input, shape index: {}]   ;;  %s8889_s14 = inlined_call_operand.vmem [shape: f32[1,96], index: 14, kind: input, shape index: {}]   ;;  %s8890_s15 = inlined_call_operand.vmem [shape: bf16[4,96,208], index: 15, kind: input, shape index: {}]   ;;  %s8891_s16 = inlined_call_operand.vmem [shape: f32[1,208], index: 16, kind: input, shape index: {}]   ;;  %s8892_s17 = inlined_call_operand.vmem [shape: bf16[5,208,30], index: 17, kind: input, shape index: {}]   ;;  %s8893_s18 = inlined_call_operand.vmem [shape: f32[1,30], index: 18, kind: input, shape index: {}]   ;;  %s8894_s19 = inlined_call_operand.vmem [shape: f32[2,26,30], index: 19, kind: output, shape index: {0}]   ;;  %s8895_s20 = inlined_call_operand.hbm [shape: f32[2,1,8], index: 20, kind: output, shape index: {1}]   ;;  %s8896_s21 = inlined_call_operand.hbm [shape: f32[2,1,8], index: 21, kind: output, shape index: {2}]   ;;  %s8897_s22 = inlined_call_operand.vmem [shape: f32[2,26,30], index: 22, kind: output, shape index: {3}]  }
   0x1   :  { %8931 = sst [smem:[#allocation15_spill]] %s8875_s0 }
   0x2   :  { %8932 = sst [smem:[#allocation16_spill]] %s8876_s1 }
   0x3   :  { %8933 = sst [smem:[#allocation17_spill]] %s8877_s2 }
   0x4   :  { %8934 = sst [smem:[#allocation18_spill]] %s8878_s3 }
   0x5   :  { %8935 = sst [smem:[#allocation19_spill]] %s8879_s4 }
   0x6   :  { %8936 = sst [smem:[#allocation20_spill]] %s8880_s5 }
   0x7   :  { %8937 = sst [smem:[#allocation21_spill]] %s8881_s6 }
   0x8   :  { %8938 = sst [smem:[#allocation22_spill]] %s8893_s18 }
   0x9   :  { %8939 = sst [smem:[#allocation23_spill]] %s8894_s19 }
   0xa   :  { %8940 = sst [smem:[#allocation24_spill]] %s8895_s20 }
   0xb   :  { %8941 = sst [smem:[#allocation25_spill]] %s8896_s21 }
   0xc   :  { %28 = vsyncpa [#allocation3], 0 }
   0xd   :  { %30 = vsyncpa [#allocation3 + $0x1], 0 }
   0xe   :  { %31 = vsyncpa [#allocation5], 0 }
   0xf   :  { %33 = vsyncpa [#allocation5 + $0x1], 0  ;;  %s6980_s3 = smov 0   ;;  %s6982_s28 = smov 0  }
  0x10   :  { %s6984_s29 = smov 0   ;;  %s6986_s30 = smov 0  }
  0x11 LB: > { %8942 = sst [smem:[#allocation8_spill]] %s6834_s3  ;;  %s7001_s4 = sadd.s32 4294967295, %s6846_s30   ;;  %s6846_s30 = sphi %s6986_s30, %s9017_s30   ;;  %s6842_s29 = sphi %s6984_s29, %s9022_s29   ;;  %s6838_s28 = sphi %s6982_s28, %s9021_s28   ;;  %s6834_s3 = sphi %s6980_s3, %s9020_s3  }
  0x12   : > { %8943 = sst [smem:[#allocation9_spill]] %s6842_s29  ;;  %s5556_s0 = sadd.s32 4294967294, %s6846_s30  }
  0x13   : > { %8944 = sst [smem:[#allocation10_spill]] %s6846_s30  ;;  %s7005_s23 = sadd.s32 1, %s6846_s30  }
  0x14   : > { %8945 = sst [smem:[#allocation11_spill]] %s7005_s23  ;;  %s486_s1 = sadd.s32 1, %s6842_s29 }
  0x15   : > { %s483_s5 = ssub.s32 %s6846_s30, %s7005_s23  ;;  %p496_p0 = scmp.ne.s32.totalorder %s6842_s29, %s6838_s28 }
  0x16   : > { %p484_p1 = scmp.eq.s32.totalorder %s483_s5, 0  ;;  %p497_p2 = scmp.eq.s32.totalorder %s7001_s4, 1 }
  0x17   : > { %p502_p3 = scmp.ne.s32.totalorder %s6838_s28, %s6834_s3  ;;  %p503_p4 = scmp.eq.s32.totalorder %s5556_s0, 1 }
  0x18   : > { %s7016_s24 = scalar_select %p484_p1, %s6842_s29, %s486_s1  }
  0x19   : > { %p7018_p5 = por %p497_p2, %p496_p0  ;;  %p7022_p6 = por %p503_p4, %p502_p3 }
  0x1a   : > { %8946 = sst [smem:[#allocation12_spill]] %s7016_s24  ;;  %p5559_p7 = scmp.ge.s32.totalorder %s6846_s30, 1 }
  0x1b   : > { %s8947_s6 = scalar_select %p7018_p5, 1, 0 }
  0x1c   : > { %s8949_s25 = scalar_select %p7022_p6, 1, 0 }
  0x1d   : > { %8948 = sst [smem:[#allocation13_spill]] %s8947_s6  ;;  %p641_p8 = scmp.lt.s32.totalorder %s6846_s30, 3 }
  0x1e   : > { %8950 = sst [smem:[#allocation14_spill]] %s8949_s25 }
  0x1f   : > { %p642_p9 = pnand %p5559_p7, %p641_p8 }
  0x20   : > { %p722_p10 = scmp.lt.s32.totalorder (!%p642_p9), %s7001_s4, 1  ;;  %s8951_s0 = sld [smem:[#allocation18_spill]] (!%p642_p9)  ;;  %vm8918_vm0 = vsmask.f32 (!%p642_p9), 7424  ;;  %vm8919_vm1 = vsmask.f32 (!%p642_p9), 6400 }
  0x21   : > { %645 = sbr.rel (%p642_p9) target bundleno = 2880 (0xb40), region = 96  ;;  %s8952_s30 = sld [smem:[#allocation15_spill]] (!%p642_p9)  ;;  %vm8921_vm2 = vcmask (!%p642_p9), 1046528   ;;  %vm8920_vm3 = vcmask (!%p642_p9), 1045504   ;;  %vm8928_vm4 = vcmask (!%p642_p9), 1042432   ;;  %vm800_vm5 = vcmask (!%p642_p9), 244736  }
  0x22   : > { %s8912_s18 = smov (!%p642_p9), 30   ;;  %s8906_s25 = smov (!%p642_p9), 90   ;;  %vm805_vm6 = vcmask (!%p642_p9), 490496   ;;  %vm1072_vm7 = vcmask (!%p642_p9), 179200   ;;  %vm8923_vm8 = vcmask (!%p642_p9), 736256   ;;  %vm8922_vm9 = vcmask (!%p642_p9), 982016  }
  0x23   : > { %s8910_s2 = smov (!%p642_p9), 120   ;;  %s8955_s24 = smov (!%p642_p9), 120  }
  0x24   : > { %s8956_s5 = sld [smem:[#allocation20_spill]] (!%p642_p9)  ;;  %s8925_s27 = smov (!%p642_p9), 32  }
  0x25   : > { %s8924_s21 = smov (!%p642_p9), 64   ;;  %s8926_s23 = smov (!%p642_p9), 96  }
  0x26   : > { %v6410_v0 = vld [vmem:[%s8951_s0 + $0x4] ss:$16 sps:$4 sm:$0xff] (!%p642_p9)   ;;  %v6412_v1 = vld [vmem:[%s8951_s0 + $0xc] ss:$16 sps:$4 sm:$0xff] (!%p642_p9)   ;;  %v6414_v2 = vld [vmem:[%s8951_s0] ss:$16 sps:$4 sm:$0xff] (!%p642_p9)  }
  0x27   : > { %1090 = vmatprep.subr.bf16.mxu0 (!%p642_p9), %v6410_v0  ;;  %v6415_v3 = vld [vmem:[%s8951_s0 + $0x8] ss:$16 sps:$4 sm:$0xff] (!%p642_p9)   ;;  %v6416_v4 = vld [vmem:[%s8951_s0 + $0x24] ss:$16 sps:$4 sm:$0xff] (!%p642_p9)   ;;  %1141 = vmatprep.subr.bf16.mxu1 (!%p642_p9), %v6412_v1  ;;  %v6418_v11 = vld [vmem:[%s8951_s0 + $0x2c] ss:$16 sps:$4 sm:$0xff] (!%p642_p9)  }
  0x28   : > { %s7030_s26 = scalar_select %p722_p10, %s7001_s4, 1  ;;  %1091 = vmatpush1.bf16.msra.mxu0 %v6414_v2  ;;  %1142 = vmatpush1.bf16.msra.mxu1 %v6415_v3  ;;  %v6420_v12 = vld [vmem:[%s8951_s0 + $0x20] ss:$16 sps:$4 sm:$0xff]   ;;  %v6421_v13 = vld [vmem:[%s8951_s0 + $0x28] ss:$16 sps:$4 sm:$0xff]  }
  0x29   : > { %1092 = vmatprep.subr.bf16.mxu0 %v6416_v4  ;;  %1143 = vmatprep.subr.bf16.mxu1 %v6418_v11  ;;  %v6422_v20 = vld [vmem:[%s8951_s0 + $0x44] ss:$16 sps:$4 sm:$0xff]   ;;  %v6424_v27 = vld [vmem:[%s8951_s0 + $0x4c] ss:$16 sps:$4 sm:$0xff]   ;;  %v6426_v30 = vld [vmem:[%s8951_s0 + $0x40] ss:$16 sps:$4 sm:$0xff]  }
  0x2a   : > { %s7036_s1 = sshll.u32 %s7030_s26, 5  ;;  %v6427_v31 = vld [vmem:[%s8951_s0 + $0x48] ss:$16 sps:$4 sm:$0xff]   ;;  %v6428_v32 = vld [vmem:[%s8951_s0 + $0x64] ss:$16 sps:$4 sm:$0xff]   ;;  %s8968_s20 = sld [smem:[#allocation21_spill]] }
  0x2b   : > { %s7048_s19 = scalar_lea.vmem %s8952_s30, %s7036_s1  ;;  %v6430_v36 = vld [vmem:[%s8951_s0 + $0x6c] ss:$16 sps:$4 sm:$0xff]   ;;  %v6432_v38 = vld [vmem:[%s8951_s0 + $0x60] ss:$16 sps:$4 sm:$0xff]   ;;  %v6433_v39 = vld [vmem:[%s8951_s0 + $0x68] ss:$16 sps:$4 sm:$0xff]  }
  0x2c   : > { %v744_v5 = vld [vmem:[%s7048_s19] sm:$0xff]  ;;  %v745_v6 = vld [vmem:[%s7048_s19 + $0x8] sm:$0xff]  ;;  %v746_v7 = vld [vmem:[%s7048_s19 + $0x10] sm:$0xff]  ;;  %1093 = vmatpush1.bf16.msra.mxu0 %v6420_v12  ;;  %1144 = vmatpush1.bf16.msra.mxu1 %v6421_v13  ;;  %s8908_s30 = smov 60   ;;  %s8969_s29 = smov 96  }
  0x2d   : > { %v747_v8 = vld [vmem:[%s7048_s19 + $0x18] sm:$0x3]  ;;  %v7060_v9 = vpack.c.bf16 %v745_v6, %v744_v5  ;;  %1094 = vmatprep.subr.bf16.mxu0 %v6422_v20  ;;  %1145 = vmatprep.subr.bf16.mxu1 %v6424_v27  ;;  %v6434_v41 = vld [vmem:[%s8951_s0 + $0x84] ss:$16 sps:$4 sm:$0xff]   ;;  %v6436_v43 = vld [vmem:[%s8951_s0 + $0x8c] ss:$16 sps:$4 sm:$0xff]  }
  0x2e   : > { %v7062_v10 = vpack.c.bf16 %v747_v8, %v746_v7  ;;  %v6438_v45 = vld [vmem:[%s8951_s0 + $0x80] ss:$16 sps:$4 sm:$0xff]   ;;  %v6439_v46 = vld [vmem:[%s8951_s0 + $0x88] ss:$16 sps:$4 sm:$0xff]   ;;  %v6440_v48 = vld [vmem:[%s8951_s0 + $0xa4] ss:$16 sps:$4 sm:$0xff]  }
  0x2f   : > { %v752_v14 = vshrl.u32 %v7060_v9, 16  ;;  %v754_v15 = vshll.u32 %v7060_v9, 16  ;;  %v773_v18 = vrot.slane %v7060_v9, 1  ;;  %v793_v34 = vrot.slane %v7060_v9, 2  ;;  %v6442_v49 = vld [vmem:[%s8951_s0 + $0xac] ss:$16 sps:$4 sm:$0xff]  }
  0x30   : > { %v759_v16 = vshll.u32 %v7062_v10, 16  ;;  %v763_v17 = vshrl.u32 %v7062_v10, 16  ;;  %v774_v19 = vrot.slane %v7062_v10, 1  ;;  %v794_v35 = vrot.slane %v7062_v10, 2  ;;  %1095 = vmatpush1.bf16.msra.mxu0 %v6426_v30  ;;  %1146 = vmatpush1.bf16.msra.mxu1 %v6427_v31  ;;  %v6444_v50 = vld [vmem:[%s8951_s0 + $0xa0] ss:$16 sps:$4 sm:$0xff]  }
  0x31   : > { %v756_v21 = vrot.slane %v754_v15, 1  ;;  %v781_v22 = vrot.slane %v752_v14, 1  ;;  %v782_v23 = vrot.slane %v754_v15, 2  ;;  %1096 = vmatprep.subr.bf16.mxu0 %v6428_v32  ;;  %1147 = vmatprep.subr.bf16.mxu1 %v6430_v36  ;;  %v6445_v51 = vld [vmem:[%s8951_s0 + $0xa8] ss:$16 sps:$4 sm:$0xff]   ;;  %v6468_v8 = vld [vmem:[%s8956_s5 + $0x40] sm:$0xff]  }
  0x32   : > { %v761_v24 = vrot.slane %v759_v16, 1  ;;  %v784_v25 = vrot.slane %v763_v17, 1  ;;  %v785_v26 = vrot.slane %v759_v16, 2  ;;  %v775_v42 = vsel %vm8921_vm2, %v773_v18, %v774_v19  ;;  %v6446_v52 = vld [vmem:[%s8951_s0 + $0xc4] ss:$16 sps:$4 sm:$0xff]   ;;  %v6470_v16 = vld [vmem:[%s8956_s5 + $0x48] sm:$0xff]  }
  0x33   : > { %v757_v28 = vor.u32 %v756_v21, %v752_v14  ;;  %v783_v29 = vor.u32 %v782_v23, %v781_v22  ;;  %v795_v44 = vsel %vm8920_vm3, %v793_v34, %v794_v35  ;;  %v6448_v53 = vld [vmem:[%s8951_s0 + $0xcc] ss:$16 sps:$4 sm:$0xff]   ;;  %v6450_v54 = vld [vmem:[%s8951_s0 + $0xc0] ss:$16 sps:$4 sm:$0xff]   ;;  %v6451_v55 = vld [vmem:[%s8951_s0 + $0xc8] ss:$16 sps:$4 sm:$0xff]  }
  0x34   : > { %v786_v33 = vor.u32 %v785_v26, %v784_v25  ;;  %1097 = vmatpush1.bf16.msra.mxu0 %v6432_v38  ;;  %1148 = vmatpush1.bf16.msra.mxu1 %v6433_v39  ;;  %v765_v47 = vor.u32 %v763_v17, %v761_v24  ;;  %v6452_v56 = vld [vmem:[%s8951_s0 + $0xe4] ss:$16 sps:$4 sm:$0xff]   ;;  %v6454_v57 = vld [vmem:[%s8951_s0 + $0xec] ss:$16 sps:$4 sm:$0xff]   ;;  %v6456_v60 = vld [vmem:[%s8951_s0 + $0xe0] ss:$16 sps:$4 sm:$0xff]  }
  0x35   : > { %v762_v37 = vsel %vm8918_vm0, %v757_v28, %v761_v24  ;;  %1098 = vmatprep.subr.bf16.mxu0 %v6434_v41  ;;  %1149 = vmatprep.subr.bf16.mxu1 %v6436_v43  ;;  %v858_v58 = vld [vmem:[%s8951_s0 + $0x120] sm:$0x77]  ;;  %v859_v59 = vld [vmem:[%s8951_s0 + $0x128] sm:$0x77]  ;;  %v6474_v30 = vld [vmem:[%s8956_s5 + $0x58] sm:$0xff]   ;;  %vm1399_vm2 = vcmask 1043456  }
  0x36   : > { %766 = vrot.lane.b32.xlu0 %v762_v37, %s8912_s18  ;;  %v787_v40 = vsel %vm8919_vm1, %v783_v29, %v786_v33  ;;  %v5602_v61 = vcombine.low %v858_v58, %v858_v58  ;;  %v5604_v62 = vcombine.low %v859_v59, %v859_v59  ;;  %v6457_v63 = vld [vmem:[%s8951_s0 + $0xe8] ss:$16 sps:$4 sm:$0xff]   ;;  %v6458_v0 = vld [vmem:[%s8951_s0 + $0x104] ss:$16 sps:$4 sm:$0xff]   ;;  %v6460_v1 = vld [vmem:[%s8951_s0 + $0x10c] ss:$16 sps:$4 sm:$0xff]   ;;  %v5603_v6 = vcombine.high %v858_v58, %v858_v58 }
  0x37   : > { %788 = vrot.lane.b32.xlu1 %v787_v40, %s8906_s25  ;;  %v6462_v2 = vld [vmem:[%s8951_s0 + $0x100] ss:$16 sps:$4 sm:$0xff]   ;;  %v6463_v3 = vld [vmem:[%s8951_s0 + $0x108] ss:$16 sps:$4 sm:$0xff]   ;;  %v5605_v7 = vcombine.high %v859_v59, %v859_v59  ;;  %vm1377_vm1 = vsmask.f32 2304 }
  0x38   : > { %1099 = vmatpush1.bf16.msra.mxu0 %v6438_v45  ;;  %1150 = vmatpush1.bf16.msra.mxu1 %v6439_v46  ;;  %v1079_v4 = vsel %vm8928_vm4, %v5602_v61, 0  ;;  %v1085_v5 = vsel %vm8928_vm4, %v5604_v62, 0  ;;  %v6469_v13 = vld [vmem:[%s8956_s5] sm:$0xff]   ;;  %v6473_v29 = vld [vmem:[%s8956_s5 + $0x10] sm:$0xff]   ;;  %v6475_v31 = vld [vmem:[%s8956_s5 + $0x18] sm:$0xff]   ;;  %s8971_s6 = smov 64  }
  0x39   : > { %1100 = vmatprep.subr.bf16.mxu0 %v6440_v48  ;;  %1151 = vmatprep.subr.bf16.mxu1 %v6442_v49  ;;  %v6476_v32 = vld [vmem:[%s8956_s5 + $0x60] sm:$0xff]   ;;  %v6478_v34 = vld [vmem:[%s8956_s5 + $0x68] sm:$0xff]   ;;  %v6480_v36 = vld [vmem:[%s8956_s5 + $0x70] sm:$0xff]   ;;  %s6857_s25 = smov 8  }
  0x3a   : > { %776 = vrot.lane.b32.xlu0 %v775_v42, %s8908_s30  ;;  %v6481_v37 = vld [vmem:[%s8956_s5 + $0x30] sm:$0xff]   ;;  %v6482_v38 = vld [vmem:[%s8956_s5 + $0x78] sm:$0xff]   ;;  %v6484_v40 = vld [vmem:[%s8956_s5 + $0xc0] sm:$0xff]   ;;  %s8957_s30 = sld [smem:[#allocation19_spill]] }
  0x3b   : > { %796 = vrot.lane.b32.xlu1 %v795_v44, %s8910_s2  ;;  %s8953_s2 = smov 60   ;;  %v6483_v39 = vld [vmem:[%s8956_s5 + $0x38] sm:$0xff]   ;;  %v6485_v41 = vld [vmem:[%s8956_s5 + $0x80] sm:$0xff]   ;;  %v6486_v42 = vld [vmem:[%s8956_s5 + $0xc8] sm:$0xff]  }
  0x3c   : > { %1101 = vmatpush1.bf16.msra.mxu0 %v6444_v50  ;;  %1152 = vmatpush1.bf16.msra.mxu1 %v6445_v51  ;;  %v6487_v43 = vld [vmem:[%s8956_s5 + $0x140] sm:$0xff]   ;;  %v6488_v44 = vld [vmem:[%s8956_s5 + $0x88] sm:$0xff]   ;;  %v6490_v45 = vld [vmem:[%s8956_s5 + $0xd0] sm:$0xff]  }
  0x3d   : > { %1102 = vmatprep.subr.bf16.mxu0 %v6446_v52  ;;  %1153 = vmatprep.subr.bf16.mxu1 %v6448_v53  ;;  %v6492_v46 = vld [vmem:[%s8956_s5 + $0x90] sm:$0xff]   ;;  %v6496_v48 = vld [vmem:[%s8956_s5 + $0x98] sm:$0xff]   ;;  %v6498_v49 = vld [vmem:[%s8956_s5 + $0xe0] sm:$0xff]  }
  0x3e   : > { %768 = vrot.lane.b32.xlu0 %v765_v47, %s8912_s18  ;;  %s8954_s18 = smov 90   ;;  %v6494_v47 = vld [vmem:[%s8956_s5 + $0xd8] sm:$0xff]   ;;  %v6500_v50 = vld [vmem:[%s8956_s5 + $0xa0] sm:$0xff]   ;;  %v6502_v51 = vld [vmem:[%s8956_s5 + $0xe8] sm:$0xff]  }
  0x3f   : > { %778 = vrot.lane.b32.xlu1 %v774_v19, %s8953_s2  ;;  %v6504_v52 = vld [vmem:[%s8956_s5 + $0xa8] sm:$0xff]   ;;  %v6506_v53 = vld [vmem:[%s8956_s5 + $0xf0] sm:$0xff]  }
  0x40   : > { %1103 = vmatpush1.bf16.msra.mxu0 %v6450_v54  ;;  %1154 = vmatpush1.bf16.msra.mxu1 %v6451_v55  ;;  %v6508_v54 = vld [vmem:[%s8956_s5 + $0xb0] sm:$0xff]   ;;  %v6510_v55 = vld [vmem:[%s8956_s5 + $0xf8] sm:$0xff]   ;;  %v860_v61 = vld [vmem:[%s8957_s30] sm:$0xf]  ;;  %s9002_s30 = sld [smem:[#allocation24_spill]] }
  0x41   : > { %1104 = vmatprep.subr.bf16.mxu0 %v6452_v56  ;;  %1155 = vmatprep.subr.bf16.mxu1 %v6454_v57  ;;  %v6512_v56 = vld [vmem:[%s8956_s5 + $0xb8] sm:$0xff]   ;;  %v862_v57 = vlaneseq }
  0x42   : > { %790 = vrot.lane.b32.xlu0 %v786_v33, %s8954_s18  ;;  %v6477_v33 = vld [vmem:[%s8956_s5 + $0x20] sm:$0xff]  }
  0x43   : > { %798 = vrot.lane.b32.xlu1 %v794_v35, %s8955_s24  ;;  %v6479_v35 = vld [vmem:[%s8956_s5 + $0x28] sm:$0xff]   ;;  %v7300_v58 = vshrl.u32 %v862_v57, 7 }
  0x44   : > { %1105 = vmatpush1.bf16.msra.mxu0 %v6456_v60  ;;  %1156 = vmatpush1.bf16.msra.mxu1 %v6457_v63 }
  0x45   : > { %1106 = vmatprep.subr.bf16.mxu0 %v6458_v0  ;;  %1157 = vmatprep.subr.bf16.mxu1 %v6460_v1  ;;  %v864_v59 = vsub.s32 0, %v7300_v58  ;;  %v872_v60 = vsub.s32 2, %v7300_v58  ;;  %v868_v62 = vsub.s32 1, %v7300_v58  ;;  %v876_v63 = vsub.s32 3, %v7300_v58 }
  0x47   : > { %v865_v0 = vrot.slane %v860_v61, %v864_v59  ;;  %v873_v1 = vrot.slane %v860_v61, %v872_v60 }
  0x48   : > { %1107 = vmatpush1.bf16.msra.mxu0 %v6462_v2  ;;  %1158 = vmatpush1.bf16.msra.mxu1 %v6463_v3  ;;  %v869_v2 = vrot.slane %v860_v61, %v868_v62  ;;  %v877_v3 = vrot.slane %v860_v61, %v876_v63 }
  0x49   : > { %5606 = vmatprep.subr.msk.bf16.mxu0 %vm8928_vm4, %v5603_v6  ;;  %5609 = vmatprep.subr.msk.bf16.mxu1 %vm8928_vm4, %v5605_v7 }
  0x4c   : > { %1109 = vmatpush1.bf16.msra.mxu0 %v1079_v4  ;;  %1160 = vmatpush1.bf16.msra.mxu1 %v1085_v5 }
  0x4d   : > { %6058 = vmatprep.subr.bf16.mxu0 %v6468_v8  ;;  %6080 = vmatprep.subr.bf16.mxu1 %v6484_v40 }
  0xa8   : > { %v767_v11 = vpop.permute.xlu0 %766 }
  0xa9   : > { %v789_v12 = vpop.permute.xlu1 %788  ;;  %v802_v14 = vsel %vm800_vm5, %v7060_v9, %v767_v11  ;;  %v6471_v9 = vld [vmem:[%s8956_s5 + $0x8] sm:$0xff]  }
  0xac   : > { %v777_v15 = vpop.permute.xlu0 %776 }
  0xad   : > { %v807_v17 = vsel %vm805_vm6, %v802_v14, %v777_v15  ;;  %v797_v18 = vpop.permute.xlu1 %796 }
  0xae   : > { %5607 = vmatprep.mubr.msk.bf16.mxu0 %vm1072_vm7, %v797_v18  ;;  %5610 = vmatprep.mubr.msk.bf16.mxu1 %vm1072_vm7, %v797_v18  ;;  %v812_v19 = vsel %vm8923_vm8, %v807_v17, %v789_v12 }
  0xaf   : > { %v817_v20 = vsel %vm8922_vm9, %v812_v19, %v797_v18 }
  0xb0   : > { %1123 = vmatmul.mubr.bf16.vlgmr.msra.gmra.mrb[0].mxu0 %v817_v20  ;;  %1174 = vmatmul.mubr.bf16.vlgmr.msra.gmra.mrb[0].mxu1 %v817_v20  ;;  %v769_v21 = vpop.permute.xlu0 %768 }
  0xb1   : > { %v804_v22 = vsel %vm800_vm5, %v7062_v10, %v769_v21  ;;  %v779_v23 = vpop.permute.xlu1 %778  ;;  %6059 = vmatpush3.bf16.msra.mxu0 %v6469_v13  ;;  %v6472_v10 = vld [vmem:[%s8956_s5 + $0x50] sm:$0xff]   ;;  %6081 = vmatpush3.bf16.msra.mxu1 %v6485_v41 }
  0xb2   : > { %v809_v24 = vsel %vm805_vm6, %v804_v22, %v779_v23  ;;  %6060 = vmatprep.subr.bf16.mxu0 %v6470_v16  ;;  %6082 = vmatprep.subr.bf16.mxu1 %v6486_v42 }
  0xb4   : > { %v791_v25 = vpop.permute.xlu0 %790 }
  0xb5   : > { %v814_v26 = vsel %vm8923_vm8, %v809_v24, %v791_v25  ;;  %v799_v27 = vpop.permute.xlu1 %798  ;;  %6061 = vmatpush3.bf16.msra.mxu0 %v6471_v9  ;;  %6083 = vmatpush3.bf16.msra.mxu1 %v6488_v44  ;;  %vm8927_vm8 = vcmask 1044480  }
  0xb6   : > { %5608 = vmatprep.mubr.msk.bf16.mxu0 %vm1072_vm7, %v799_v27  ;;  %5611 = vmatprep.mubr.msk.bf16.mxu1 %vm1072_vm7, %v799_v27  ;;  %v820_v28 = vsel %vm8922_vm9, %v814_v26, %v799_v27  ;;  %vm1400_vm9 = vsmask.f32 3328 }
  0xb7   : > { %6062 = vmatprep.subr.bf16.mxu0 %v6472_v10  ;;  %6084 = vmatprep.subr.bf16.mxu1 %v6490_v45 }
  0xb8   : > { %1133 = vmatmul.mubr.bf16.gmra.mrb[4].mxu0 %v820_v28  ;;  %1184 = vmatmul.mubr.bf16.gmra.mrb[4].mxu1 %v820_v28 }
  0xb9   : > { %6063 = vmatpush3.bf16.msra.mxu0 %v6473_v29  ;;  %6085 = vmatpush3.bf16.msra.mxu1 %v6492_v46 }
  0xba   : > { %6064 = vmatprep.subr.bf16.mxu0 %v6474_v30  ;;  %6086 = vmatprep.subr.bf16.mxu1 %v6494_v47 }
  0xbd   : > { %6065 = vmatpush3.bf16.msra.mxu0 %v6475_v31  ;;  %6087 = vmatpush3.bf16.msra.mxu1 %v6496_v48 }
  0xbe   : > { %6066 = vmatprep.subr.bf16.mxu0 %v6476_v32  ;;  %6088 = vmatprep.subr.bf16.mxu1 %v6498_v49 }
  0xc1   : > { %6067 = vmatpush3.bf16.msra.mxu0 %v6477_v33  ;;  %6089 = vmatpush3.bf16.msra.mxu1 %v6500_v50 }
  0xc2   : > { %6068 = vmatprep.subr.bf16.mxu0 %v6478_v34  ;;  %6090 = vmatprep.subr.bf16.mxu1 %v6502_v51 }
  0xc5   : > { %6069 = vmatpush3.bf16.msra.mxu0 %v6479_v35  ;;  %6091 = vmatpush3.bf16.msra.mxu1 %v6504_v52 }
  0xc6   : > { %6070 = vmatprep.subr.bf16.mxu0 %v6480_v36  ;;  %6092 = vmatprep.subr.bf16.mxu1 %v6506_v53 }
  0xc9   : > { %6071 = vmatpush3.bf16.msra.mxu0 %v6481_v37  ;;  %6093 = vmatpush3.bf16.msra.mxu1 %v6508_v54 }
  0xca   : > { %6072 = vmatprep.subr.bf16.mxu0 %v6482_v38  ;;  %6094 = vmatprep.subr.bf16.mxu1 %v6510_v55 }
  0xcd   : > { %6073 = vmatpush3.bf16.msra.mxu0 %v6483_v39  ;;  %6095 = vmatpush3.bf16.msra.mxu1 %v6512_v56 }
  0xce   : > { %6102 = vmatprep.subr.bf16.mxu0 %v6487_v43 }
 0x183   : > { %v1124_v4 = vpop.f32.mrb[0].mxu0  ;;  %v1175_v5 = vpop.f32.mrb[0].mxu1 }
 0x184   : > { %v1125_v6 = vadd.f32 %v1124_v4, %v865_v0  ;;  %v1176_v7 = vadd.f32 %v1175_v5, %v873_v1  ;;  %v1126_v8 = vpop.f32.mrb[1].mxu0  ;;  %v1177_v11 = vpop.f32.mrb[1].mxu1 }
 0x185   : > { %v1127_v12 = vadd.f32 %v1126_v8, %v869_v2  ;;  %v1178_v13 = vadd.f32 %v1177_v11, %v877_v3  ;;  %v1128_v14 = vpop.f32.mrb[2].mxu0  ;;  %v1179_v15 = vpop.f32.mrb[2].mxu1 }
 0x186   : > { %vm1192_vm10 = vcmp.ge.f32.partialorder %v1125_v6, 0.0  ;;  %v1204_v16 = vmul.f32 0.01, %v1125_v6  ;;  %vm1194_vm11 = vcmp.ge.f32.partialorder %v1176_v7, 0.0  ;;  %v1206_v17 = vmul.f32 0.01, %v1176_v7 }
 0x187   : > { %vm1193_vm12 = vcmp.ge.f32.partialorder %v1127_v12, 0.0  ;;  %v1205_v18 = vmul.f32 0.01, %v1127_v12  ;;  %vm1195_vm13 = vcmp.ge.f32.partialorder %v1178_v13, 0.0  ;;  %v1207_v19 = vmul.f32 0.01, %v1178_v13 }
 0x188   : > { %v1129_v20 = vadd.f32 %v1128_v14, %v865_v0  ;;  %v1180_v9 = vadd.f32 %v1179_v15, %v873_v1  ;;  %v1130_v21 = vpop.f32.mrb[3].mxu0  ;;  %v1181_v22 = vpop.f32.mrb[3].mxu1  ;;  %v1216_v23 = vsel %vm1192_vm10, %v1125_v6, %v1204_v16  ;;  %v1218_v24 = vsel %vm1194_vm11, %v1176_v7, %v1206_v17  ;;  %v6748_v17 = vld [vmem:[%s8892_s17 + $0x1f8] sm:$0xff]  }
 0x189   : > { %v1131_v25 = vadd.f32 %v1130_v21, %v869_v2  ;;  %v1182_v26 = vadd.f32 %v1181_v22, %v877_v3  ;;  %v1217_v30 = vsel %vm1193_vm12, %v1127_v12, %v1205_v18  ;;  %v1219_v31 = vsel %vm1195_vm13, %v1178_v13, %v1207_v19  ;;  %v6515_v21 = vld [vmem:[%s8956_s5 + $0x1c0] sm:$0xff]  }
 0x18a   : > { %vm1196_vm14 = vcmp.ge.f32.partialorder %v1129_v20, 0.0  ;;  %v1208_v27 = vmul.f32 0.01, %v1129_v20  ;;  %vm1198_vm15 = vcmp.ge.f32.partialorder %v1180_v9, 0.0  ;;  %v1210_v28 = vmul.f32 0.01, %v1180_v9  ;;  %6124 = vmatprep.subr.bf16.mxu1 %v6515_v21 }
 0x18b   : > { %vm1197_vm7 = vcmp.ge.f32.partialorder %v1131_v25, 0.0  ;;  %v1209_v10 = vmul.f32 0.01, %v1131_v25  ;;  %vm1199_vm0 = vcmp.ge.f32.partialorder %v1182_v26, 0.0  ;;  %v1211_v29 = vmul.f32 0.01, %v1182_v26 }
 0x18c   : > { %v1220_v32 = vsel %vm1196_vm14, %v1129_v20, %v1208_v27  ;;  %v1222_v33 = vsel %vm1198_vm15, %v1180_v9, %v1210_v28  ;;  %v1134_v34 = vpop.f32.mrb[4].mxu0  ;;  %v1185_v35 = vpop.f32.mrb[4].mxu1  ;;  %vm1328_vm11 = vcmask 1040384   ;;  %vm1352_vm13 = vcmask 1041408  }
 0x18d   : > { %v7315_v36 = vpack.c.bf16 %v1220_v32, %v1216_v23  ;;  %v7317_v37 = vpack.c.bf16 %v1222_v33, %v1218_v24  ;;  %v1221_v38 = vsel %vm1197_vm7, %v1131_v25, %v1209_v10  ;;  %v1223_v39 = vsel %vm1199_vm0, %v1182_v26, %v1211_v29  ;;  %v1136_v40 = vpop.f32.mrb[5].mxu0  ;;  %v1187_v41 = vpop.f32.mrb[5].mxu1 }
 0x18e   : > { %v7319_v42 = vpack.c.bf16 %v1221_v38, %v1217_v30  ;;  %v7321_v43 = vpack.c.bf16 %v1223_v39, %v1219_v31  ;;  %v1135_v44 = vadd.f32 %v1134_v34, %v865_v0  ;;  %v1138_v45 = vpop.f32.mrb[6].mxu0  ;;  %v1189_v46 = vpop.f32.mrb[6].mxu1  ;;  %v1137_v47 = vadd.f32 %v1136_v40, %v869_v2 }
 0x18f   : > { %v1139_v48 = vpop.f32.mrb[7].mxu0  ;;  %v1190_v49 = vpop.f32.mrb[7].mxu1  ;;  %v1186_v51 = vadd.f32 %v1185_v35, %v873_v1  ;;  %v1188_v53 = vadd.f32 %v1187_v41, %v877_v3  ;;  %vm1329_vm0 = vsmask.f32 256  ;;  %v1446_v55 = vshrl.u32 %v7315_v36, 16 }
 0x190   : > { %vm1200_vm10 = vcmp.ge.f32.partialorder %v1135_v44, 0.0  ;;  %v1212_v50 = vmul.f32 0.01, %v1135_v44  ;;  %vm1201_vm12 = vcmp.ge.f32.partialorder %v1137_v47, 0.0  ;;  %v1213_v52 = vmul.f32 0.01, %v1137_v47  ;;  %vm7328_vm15 = vmand %vm1328_vm11, %vm1329_vm0 }
 0x191   : > { %v1260_v57 = vrot.slane %v7315_v36, 1  ;;  %vm1353_vm14 = vsmask.f32 1280  ;;  %v1214_v60 = vmul.f32 0.01, %v1186_v51  ;;  %v1462_v0 = vrot.slane %v1446_v55, 1 }
 0x192   : > { %v1224_v54 = vsel %vm1200_vm10, %v1135_v44, %v1212_v50  ;;  %v1225_v61 = vsel %vm1201_vm12, %v1137_v47, %v1213_v52  ;;  %vm1202_vm7 = vcmp.ge.f32.partialorder %v1186_v51, 0.0  ;;  %v1215_v1 = vmul.f32 0.01, %v1188_v53  ;;  %vm7333_vm3 = vmand %vm1352_vm13, %vm1353_vm14 }
 0x193   : > { %v7324_v56 = vpack.c.bf16 %v1224_v54, %v1224_v54  ;;  %vm1203_vm10 = vcmp.ge.f32.partialorder %v1188_v53, 0.0  ;;  %v7337_v3 = vpack.c.bf16 %v1225_v61, %v1225_v61  ;;  %v1272_v4 = vrot.slane %v7315_v36, 2  ;;  %vm7348_vm12 = vmand %vm8928_vm4, %vm1377_vm1 }
 0x194   : > { %v1510_v6 = vsel %vm7328_vm15, %v1446_v55, %v1260_v57  ;;  %v7345_v7 = vsel %vm1202_vm7, %v1186_v51, %v1214_v60  ;;  %vm1424_vm0 = vsmask.f32 4352  ;;  %v1470_v11 = vrot.slane %v1446_v55, 2  ;;  %vm7363_vm1 = vmand %vm1399_vm2, %vm1400_vm9 }
 0x195   : > { %v1490_v5 = vshrl.u32 %v7324_v56, 16  ;;  %v1516_v12 = vsel %vm1328_vm11, %v1510_v6, %v1462_v0  ;;  %v7353_v13 = vsel %vm1203_vm10, %v1188_v53, %v1215_v1  ;;  %v1284_v14 = vrot.slane %v7315_v36, 3  ;;  %vm7382_vm9 = vmand %vm8927_vm8, %vm1424_vm0 }
 0x196   : > { %v1530_v15 = vsel %vm7333_vm3, %v1516_v12, %v1272_v4  ;;  %v1261_v16 = vrot.slane %v7319_v42, 1  ;;  %v1478_v18 = vrot.slane %v1446_v55, 3  ;;  %v1448_v9 = vshrl.u32 %v7319_v42, 16 }
 0x197   : > { %v1492_v19 = vrot.slane %v1490_v5, 4  ;;  %v1536_v20 = vsel %vm1352_vm13, %v1530_v15, %v1470_v11  ;;  %v1482_v22 = vrot.slane %v7315_v36, 4  ;;  %v1493_v24 = vshrl.u32 %v7337_v3, 16 }
 0x198   : > { %v1550_v23 = vsel %vm7348_vm12, %v1536_v20, %v1284_v14  ;;  %v1241_v25 = vshll.u32 %v7319_v42, 16  ;;  %v1324_v26 = vrot.slane %v7324_v56, 5  ;;  %v1273_v10 = vrot.slane %v7319_v42, 2 }
 0x199   : > { %v1556_v28 = vsel %vm8928_vm4, %v1550_v23, %v1478_v18  ;;  %v1463_v29 = vrot.slane %v1448_v9, 1  ;;  %v1506_v30 = vrot.slane %v1490_v5, 5  ;;  %v1285_v32 = vrot.slane %v7319_v42, 3 }
 0x19a   : > { %v1570_v31 = vsel %vm7363_vm1, %v1556_v28, %v1482_v22  ;;  %v1511_v33 = vsel %vm7328_vm15, %v1448_v9, %v1261_v16  ;;  %v1471_v35 = vrot.slane %v1448_v9, 2  ;;  %v1243_v39 = vrot.slane %v1241_v25, 1 }
 0x19b   : > { %v1576_v34 = vsel %vm1399_vm2, %v1570_v31, %v1492_v19  ;;  %v1520_v38 = vsel %vm1328_vm11, %v1511_v33, %v1463_v29  ;;  %v1479_v41 = vrot.slane %v1448_v9, 3  ;;  %v1495_v44 = vrot.slane %v1493_v24, 4 }
 0x19c   : > { %v1590_v40 = vsel %vm7382_vm9, %v1576_v34, %v1324_v26  ;;  %v1531_v45 = vsel %vm7333_vm3, %v1520_v38, %v1273_v10  ;;  %v1265_v48 = vrot.slane %v1241_v25, 2  ;;  %v1332_v49 = vsel %vm7328_vm15, %v7319_v42, %v1243_v39 }
 0x19d   : > { %v7402_v46 = vsel %vm8927_vm8, %v1590_v40, %v1506_v30  ;;  %v1540_v47 = vsel %vm1352_vm13, %v1531_v45, %v1471_v35  ;;  %v1483_v50 = vrot.slane %v7319_v42, 4  ;;  %v1309_v52 = vshll.u32 %v7337_v3, 16 }
 0x19e   : > { %1610 = vrot.lane.b32.xlu0 %v7402_v46, %s8925_s27  ;;  %v1551_v51 = vsel %vm7348_vm12, %v1540_v47, %v1285_v32  ;;  %v1342_v53 = vsel %vm1328_vm11, %v1332_v49, %v1261_v16  ;;  %v1277_v55 = vrot.slane %v1241_v25, 3  ;;  %v1237_v61 = vshll.u32 %v7315_v36, 16 }
 0x19f   : > { %v1560_v54 = vsel %vm8928_vm4, %v1551_v51, %v1479_v41  ;;  %v1356_v60 = vsel %vm7333_vm3, %v1342_v53, %v1265_v48  ;;  %v1325_v0 = vrot.slane %v7337_v3, 5  ;;  %v1507_v1 = vrot.slane %v1493_v24, 5 }
 0x1a0   : > { %v1571_v42 = vsel %vm7363_vm1, %v1560_v54, %v1483_v50  ;;  %v1366_v5 = vsel %vm1352_vm13, %v1356_v60, %v1273_v10  ;;  %v1289_v11 = vrot.slane %v1241_v25, 4  ;;  %v1239_v15 = vrot.slane %v1237_v61, 1  ;;  %v6491_v54 = vld [vmem:[%s8956_s5 + $0x148] sm:$0xff]  }
 0x1a1   : > { %v1580_v6 = vsel %vm1399_vm2, %v1571_v42, %v1495_v44  ;;  %v1380_v12 = vsel %vm7348_vm12, %v1366_v5, %v1277_v55  ;;  %v1301_v18 = vrot.slane %v7337_v3, 4  ;;  %v1311_v19 = vrot.slane %v1309_v52, 5 }
 0x1a2   : > { %v1591_v16 = vsel %vm7382_vm9, %v1580_v6, %v1325_v0  ;;  %v1389_v20 = vsel %vm8928_vm4, %v1380_v12, %v1285_v32  ;;  %v1264_v22 = vrot.slane %v1237_v61, 2  ;;  %v1331_v23 = vsel %vm7328_vm15, %v7315_v36, %v1239_v15  ;;  %v6493_v15 = vld [vmem:[%s8956_s5 + $0x108] sm:$0xff]  }
 0x1a3   : > { %v7431_v9 = vsel %vm8927_vm8, %v1591_v16, %v1507_v1  ;;  %v1403_v21 = vsel %vm7363_vm1, %v1389_v20, %v1289_v11  ;;  %v1305_v3 = vshll.u32 %v7324_v56, 16  ;;  %v1338_v25 = vsel %vm1328_vm11, %v1331_v23, %v1260_v57 }
 0x1a4   : > { %1612 = vrot.lane.b32.xlu1 %v7431_v9, %s8925_s27  ;;  %v1413_v24 = vsel %vm1399_vm2, %v1403_v21, %v1301_v18  ;;  %v7447_v28 = vpack.c.bf16 %v7345_v7, %v7345_v7  ;;  %v1276_v29 = vrot.slane %v1237_v61, 3  ;;  %v1355_v30 = vsel %vm7333_vm3, %v1338_v25, %v1264_v22  ;;  %v6495_v21 = vld [vmem:[%s8956_s5 + $0x150] sm:$0xff]  }
 0x1a5   : > { %v1427_v10 = vsel %vm7382_vm9, %v1413_v24, %v1311_v19  ;;  %v7455_v31 = vpack.c.bf16 %v7353_v13, %v7353_v13  ;;  %v1362_v57 = vsel %vm1352_vm13, %v1355_v30, %v1272_v4  ;;  %v1288_v7 = vrot.slane %v1237_v61, 4 }
 0x1a6   : > { %v7458_v32 = vsel %vm8927_vm8, %v1427_v10, %v1325_v0  ;;  %v1379_v33 = vsel %vm7348_vm12, %v1362_v57, %v1276_v29  ;;  %v1262_v34 = vrot.slane %v7317_v37, 1  ;;  %v1450_v35 = vshrl.u32 %v7317_v37, 16 }
 0x1a7   : > { %2586 = vmatprep.mubr.bf16.mxu0 %v7458_v32  ;;  %v1300_v13 = vrot.slane %v7324_v56, 4  ;;  %v1307_v38 = vrot.slane %v1305_v3, 5  ;;  %v1385_v39 = vsel %vm8928_vm4, %v1379_v33, %v1284_v14  ;;  %v1274_v40 = vrot.slane %v7317_v37, 2  ;;  %v6489_v14 = vld [vmem:[%s8956_s5 + $0x100] sm:$0xff]  }
 0x1a8   : > { %v1402_v4 = vsel %vm7363_vm1, %v1385_v39, %v1288_v7  ;;  %v1286_v41 = vrot.slane %v7317_v37, 3  ;;  %v1464_v44 = vrot.slane %v1450_v35, 1  ;;  %v1496_v45 = vshrl.u32 %v7447_v28, 16 }
 0x1a9   : > { %v1632_v47 = vshll.u32 %v7458_v32, 16  ;;  %v1409_v48 = vsel %vm1399_vm2, %v1402_v4, %v1300_v13  ;;  %v1326_v49 = vrot.slane %v7447_v28, 5  ;;  %v1484_v36 = vrot.slane %v7317_v37, 4  ;;  %v6497_v13 = vld [vmem:[%s8956_s5 + $0x110] sm:$0xff]  }
 0x1aa   : > { %v1426_v50 = vsel %vm7382_vm9, %v1409_v48, %v1307_v38  ;;  %v1472_v51 = vrot.slane %v1450_v35, 2  ;;  %v1512_v52 = vsel %vm7328_vm15, %v1450_v35, %v1262_v34  ;;  %v1263_v53 = vrot.slane %v7321_v43, 1 }
 0x1ab   : > { %v1433_v55 = vsel %vm8927_vm8, %v1426_v50, %v1324_v26  ;;  %v1480_v60 = vrot.slane %v1450_v35, 3  ;;  %v1524_v61 = vsel %vm1328_vm11, %v1512_v52, %v1464_v44  ;;  %v1452_v0 = vshrl.u32 %v7321_v43, 16 }
 0x1ac   : > { %2587 = vmatmul.mubr.bf16.vlgmr.msra.gmra.mrb[8].mxu0 %v1433_v55  ;;  %v1498_v1 = vrot.slane %v1496_v45, 4  ;;  %v1508_v42 = vrot.slane %v1496_v45, 5  ;;  %v1532_v5 = vsel %vm7333_vm3, %v1524_v61, %v1274_v40  ;;  %v1499_v6 = vshrl.u32 %v7455_v31, 16  ;;  %v6499_v45 = vld [vmem:[%s8956_s5 + $0x158] sm:$0xff]  }
 0x1ad   : > { %v1544_v11 = vsel %vm1352_vm13, %v1532_v5, %v1472_v51  ;;  %v1275_v56 = vrot.slane %v7321_v43, 2  ;;  %v1287_v26 = vrot.slane %v7321_v43, 3  ;;  %v1465_v12 = vrot.slane %v1452_v0, 1  ;;  %6103 = vmatpush3.bf16.msra.mxu0 %v6489_v14 }
 0x1ae   : > { %v1552_v16 = vsel %vm7348_vm12, %v1544_v11, %v1286_v41  ;;  %v1473_v18 = vrot.slane %v1452_v0, 2  ;;  %v1485_v19 = vrot.slane %v7321_v43, 4  ;;  %v1513_v20 = vsel %vm7328_vm15, %v1452_v0, %v1263_v53  ;;  %6104 = vmatprep.subr.bf16.mxu0 %v6491_v54 }
 0x1af   : > { %v1564_v22 = vsel %vm8928_vm4, %v1552_v16, %v1480_v60  ;;  %v1481_v23 = vrot.slane %v1452_v0, 3  ;;  %v1528_v24 = vsel %vm1328_vm11, %v1513_v20, %v1465_v12  ;;  %v1626_v3 = vshll.u32 %v1433_v55, 16  ;;  %v6503_v12 = vld [vmem:[%s8956_s5 + $0x160] sm:$0xff]  }
 0x1b0   : > { %v1572_v25 = vsel %vm7363_vm1, %v1564_v22, %v1484_v36  ;;  %v1501_v10 = vrot.slane %v1499_v6, 4  ;;  %v1533_v29 = vsel %vm7333_vm3, %v1528_v24, %v1275_v56  ;;  %v1245_v30 = vshll.u32 %v7317_v37, 16 }
 0x1b1   : > { %v1584_v57 = vsel %vm1399_vm2, %v1572_v25, %v1498_v1  ;;  %v1548_v7 = vsel %vm1352_vm13, %v1533_v29, %v1473_v18  ;;  %v1628_v33 = vrot.slane %v1626_v3, 1  ;;  %v7534_v35 = vshll.u32 %v7321_v43, 16  ;;  %6105 = vmatpush3.bf16.msra.mxu0 %v6493_v15  ;;  %v6501_v1 = vld [vmem:[%s8956_s5 + $0x118] sm:$0xff]   ;;  %v6505_v25 = vld [vmem:[%s8956_s5 + $0x120] sm:$0xff]   ;;  %v6507_v29 = vld [vmem:[%s8956_s5 + $0x168] sm:$0xff]  }
 0x1b2   : > { %v1592_v38 = vsel %vm7382_vm9, %v1584_v57, %v1326_v49  ;;  %v1553_v39 = vsel %vm7348_vm12, %v1548_v7, %v1287_v26  ;;  %v1624_v4 = vshrl.u32 %v1433_v55, 16  ;;  %v1247_v44 = vrot.slane %v1245_v30, 1  ;;  %6106 = vmatprep.subr.bf16.mxu0 %v6495_v21 }
 0x1b3   : > { %v1313_v48 = vshll.u32 %v7447_v28, 16  ;;  %v1634_v36 = vrot.slane %v1632_v47, 1  ;;  %v7552_v14 = vsel %vm8927_vm8, %v1592_v38, %v1508_v42  ;;  %v1568_v50 = vsel %vm8928_vm4, %v1553_v39, %v1481_v23 }
 0x1b4   : > { %1614 = vrot.lane.b32.xlu0 %v7552_v14, %s8925_s27  ;;  %v1327_v51 = vrot.slane %v7455_v31, 5  ;;  %v1509_v52 = vrot.slane %v1499_v6, 5  ;;  %v1573_v54 = vsel %vm7363_vm1, %v1568_v50, %v1485_v19  ;;  %v1629_v55 = vor.u32 %v1628_v33, %v1624_v4  ;;  %v6511_v4 = vld [vmem:[%s8956_s5 + $0x170] sm:$0xff]  }
 0x1b5   : > { %v1588_v60 = vsel %vm1399_vm2, %v1573_v54, %v1501_v10  ;;  %v1266_v61 = vrot.slane %v1245_v30, 2  ;;  %v1333_v47 = vsel %vm7328_vm15, %v7317_v37, %v1247_v44  ;;  %v1251_v0 = vrot.slane %v7534_v35, 1  ;;  %6107 = vmatpush3.bf16.msra.mxu0 %v6497_v13 }
 0x1b6   : > { %v1630_v42 = vshrl.u32 %v7458_v32, 16  ;;  %v1593_v5 = vsel %vm7382_vm9, %v1588_v60, %v1327_v51  ;;  %v1278_v6 = vrot.slane %v1245_v30, 3  ;;  %v1346_v11 = vsel %vm1328_vm11, %v1333_v47, %v1262_v34  ;;  %6108 = vmatprep.subr.bf16.mxu0 %v6499_v45 }
 0x1b7   : > { %v7578_v15 = vsel %vm8927_vm8, %v1593_v5, %v1509_v52  ;;  %v1357_v16 = vsel %vm7333_vm3, %v1346_v11, %v1266_v61  ;;  %v1267_v32 = vrot.slane %v7534_v35, 2  ;;  %v1334_v18 = vsel %vm7328_vm15, %v7321_v43, %v1251_v0  ;;  %v6519_v11 = vld [vmem:[%s8956_s5 + $0x240] sm:$0xff]  }
 0x1b8   : > { %v1317_v19 = vshll.u32 %v7455_v31, 16  ;;  %1616 = vrot.lane.b32.xlu1 %v7578_v15, %s8925_s27  ;;  %1648 = vrot.lane.b32.xlu0 %v1629_v55, %s8924_s21  ;;  %v1635_v34 = vor.u32 %v1634_v36, %v1630_v42  ;;  %v1370_v20 = vsel %vm1352_vm13, %v1357_v16, %v1274_v40  ;;  %v1350_v21 = vsel %vm1328_vm11, %v1334_v18, %v1263_v53  ;;  %v6514_v55 = vld [vmem:[%s8956_s5 + $0x178] sm:$0xff]   ;;  %s8975_s27 = sld [smem:[#allocation16_spill]] }
 0x1b9   : > { %v1290_v22 = vrot.slane %v1245_v30, 4  ;;  %v1381_v23 = vsel %vm7348_vm12, %v1370_v20, %v1278_v6  ;;  %v1279_v24 = vrot.slane %v7534_v35, 3  ;;  %v1358_v3 = vsel %vm7333_vm3, %v1350_v21, %v1267_v32  ;;  %6109 = vmatpush3.bf16.msra.mxu0 %v6501_v1  ;;  %v6516_v6 = vld [vmem:[%s8956_s5 + $0x138] sm:$0xff]  }
 0x1ba   : > { %v1302_v40 = vrot.slane %v7447_v28, 4  ;;  %v1393_v53 = vsel %vm8928_vm4, %v1381_v23, %v1286_v41  ;;  %v1374_v10 = vsel %vm1352_vm13, %v1358_v3, %v1275_v56  ;;  %6110 = vmatprep.subr.bf16.mxu0 %v6503_v12  ;;  %v1315_v30 = vrot.slane %v1313_v48, 5  ;;  %v6520_v23 = vld [vmem:[%s8956_s5 + $0x188] sm:$0xff]   ;;  %v6524_v3 = vld [vmem:[%s8956_s5 + $0x190] sm:$0xff]  }
 0x1bb   : > { %v1404_v57 = vsel %vm7363_vm1, %v1393_v53, %v1290_v22  ;;  %v1291_v7 = vrot.slane %v7534_v35, 4  ;;  %v1382_v37 = vsel %vm7348_vm12, %v1374_v10, %v1279_v24  ;;  %v1303_v41 = vrot.slane %v7455_v31, 4  ;;  %v6509_v31 = vld [vmem:[%s8956_s5 + $0x128] sm:$0xff]   ;;  %v6522_v24 = vld [vmem:[%s8956_s5 + $0x1d0] sm:$0xff]   ;;  %v6530_v53 = vld [vmem:[%s8956_s5 + $0x1e0] sm:$0xff]  }
 0x1bc   : > { %1650 = vrot.lane.b32.xlu1 %v1635_v34, %s8924_s21  ;;  %v1417_v56 = vsel %vm1399_vm2, %v1404_v57, %v1302_v40  ;;  %v1397_v33 = vsel %vm8928_vm4, %v1382_v37, %v1287_v26  ;;  %v1319_v13 = vrot.slane %v1317_v19, 5  ;;  %v1664_v39 = vshll.u32 %v7402_v46, 16  ;;  %v6528_v40 = vld [vmem:[%s8956_s5 + $0x198] sm:$0xff]   ;;  %v6532_v10 = vld [vmem:[%s8956_s5 + $0x1a0] sm:$0xff]  }
 0x1bd   : > { %v1428_v38 = vsel %vm7382_vm9, %v1417_v56, %v1315_v30  ;;  %v1405_v35 = vsel %vm7363_vm1, %v1397_v33, %v1291_v7  ;;  %6111 = vmatpush3.bf16.msra.mxu0 %v6505_v25  ;;  %v1670_v36 = vshll.u32 %v7431_v9, 16  ;;  %v1676_v60 = vshll.u32 %v7552_v14, 16  ;;  %v6526_v25 = vld [vmem:[%s8956_s5 + $0x1d8] sm:$0xff]   ;;  %v6536_v30 = vld [vmem:[%s8956_s5 + $0x1a8] sm:$0xff]   ;;  %v6538_v7 = vld [vmem:[%s8956_s5 + $0x1f0] sm:$0xff]  }
 0x1be   : > { %v1441_v43 = vsel %vm8927_vm8, %v1428_v38, %v1326_v49  ;;  %v1421_v26 = vsel %vm1399_vm2, %v1405_v35, %v1303_v41  ;;  %6112 = vmatprep.subr.bf16.mxu0 %v6507_v29  ;;  %v6513_v49 = vld [vmem:[%s8956_s5 + $0x130] sm:$0xff]   ;;  %v1666_v54 = vrot.slane %v1664_v39, 1  ;;  %v1662_v0 = vshrl.u32 %v7402_v46, 16  ;;  %v6534_v29 = vld [vmem:[%s8956_s5 + $0x1e8] sm:$0xff]   ;;  %v6521_v41 = vld [vmem:[%s8956_s5 + $0x200] sm:$0xff]  }
 0x1bf   : > { %v1638_v44 = vshll.u32 %v1441_v43, 16  ;;  %v1429_v45 = vsel %vm7382_vm9, %v1421_v26, %v1319_v13  ;;  %v1636_v50 = vshrl.u32 %v1441_v43, 16  ;;  %v1672_v1 = vrot.slane %v1670_v36, 1  ;;  %v6523_v33 = vld [vmem:[%s8956_s5 + $0x248] sm:$0xff]   ;;  %v6540_v13 = vld [vmem:[%s8956_s5 + $0x1b0] sm:$0xff]   ;;  %v6542_v35 = vld [vmem:[%s8956_s5 + $0x1f8] sm:$0xff]  }
 0x1c0   : > { %v1445_v48 = vsel %vm8927_vm8, %v1429_v45, %v1327_v51  ;;  %v1682_v42 = vshll.u32 %v7578_v15, 16  ;;  %v1668_v12 = vshrl.u32 %v7431_v9, 16  ;;  %v1678_v16 = vrot.slane %v1676_v60, 1  ;;  %v6525_v39 = vld [vmem:[%s8956_s5 + $0x208] sm:$0xff]   ;;  %v6544_v26 = vld [vmem:[%s8956_s5 + $0x1b8] sm:$0xff]   ;;  %v6535_v60 = vld [vmem:[%s8956_s5 + $0x260] sm:$0xff]  }
 0x1c1   : > { %v1640_v52 = vrot.slane %v1638_v44, 1  ;;  %v1644_v28 = vshll.u32 %v1445_v48, 16  ;;  %6113 = vmatpush3.bf16.msra.mxu0 %v6509_v31  ;;  %v1642_v51 = vshrl.u32 %v1445_v48, 16  ;;  %v1667_v46 = vor.u32 %v1666_v54, %v1662_v0  ;;  %v6547_v44 = vld [vmem:[%s8956_s5 + $0x2c0] sm:$0xff]  }
 0x1c2   : > { %6114 = vmatprep.subr.bf16.mxu0 %v6511_v4  ;;  %v1674_v32 = vshrl.u32 %v7552_v14, 16  ;;  %v1684_v18 = vrot.slane %v1682_v42, 1  ;;  %v1673_v19 = vor.u32 %v1672_v1, %v1668_v12  ;;  %v1680_v34 = vshrl.u32 %v7578_v15, 16  ;;  %v6517_v14 = vld [vmem:[%s8956_s5 + $0x180] sm:$0xff]   ;;  %v6518_v15 = vld [vmem:[%s8956_s5 + $0x1c8] sm:$0xff]   ;;  %v6554_v42 = vld [vmem:[%s8956_s5 + $0x290] sm:$0xff]  }
 0x1c3   : > { %v1641_v61 = vor.u32 %v1640_v52, %v1636_v50  ;;  %v1646_v47 = vrot.slane %v1644_v28, 1  ;;  %vm1618_vm14 = vcmask 261120   ;;  %vm1656_vm7 = vcmask 523264   ;;  %v6531_v50 = vld [vmem:[%s8956_s5 + $0x258] sm:$0xff]   ;;  %v6549_v52 = vld [vmem:[%s8956_s5 + $0x280] sm:$0xff]   ;;  %v6539_v1 = vld [vmem:[%s8956_s5 + $0x268] sm:$0xff]  }
 0x1c4   : > { %v1679_v20 = vor.u32 %v1678_v16, %v1674_v32  ;;  %v1685_v9 = vor.u32 %v1684_v18, %v1680_v34  ;;  %vm1694_vm10 = vcmask 785408   ;;  %v6557_v32 = vld [vmem:[%s8956_s5 + $0x298] sm:$0xff]   ;;  %v6545_v34 = vld [vmem:[%s8956_s5 + $0x230] sm:$0xff]   ;;  %vm6856_vm0 = vmmov 0  }
 0x1c5   : > { %1652 = vrot.lane.b32.xlu0 %v1641_v61, %s8924_s21  ;;  %v1647_v5 = vor.u32 %v1646_v47, %v1642_v51  ;;  %6115 = vmatpush3.bf16.msra.mxu0 %v6513_v49  ;;  %v6550_v49 = vld [vmem:[%s8956_s5 + $0x2c8] sm:$0xff]   ;;  %v6553_v51 = vld [vmem:[%s8956_s5 + $0x2d0] sm:$0xff]   ;;  %v6537_v47 = vld [vmem:[%s8956_s5 + $0x220] sm:$0xff]  }
 0x1c6   : > { %6116 = vmatprep.subr.bf16.mxu0 %v6514_v55  ;;  %v6533_v55 = vld [vmem:[%s8956_s5 + $0x218] sm:$0xff]   ;;  %v6551_v61 = vld [vmem:[%s8956_s5 + $0x288] sm:$0xff]  }
 0x1c7   : > { %1654 = vrot.lane.b32.xlu1 %v1647_v5, %s8924_s21  ;;  %v6556_v5 = vld [vmem:[%s8956_s5 + $0x2d8] sm:$0xff]   ;;  %s8019_s21 = sand.u32 1, %s6838_s28  }
 0x1c9   : > { %1686 = vrot.lane.b32.xlu0 %v1667_v46, %s8926_s23  ;;  %6117 = vmatpush3.bf16.msra.mxu0 %v6516_v6  ;;  %v6543_v46 = vld [vmem:[%s8956_s5 + $0x270] sm:$0xff]  }
 0x1ca   : > { %6146 = vmatprep.subr.bf16.mxu0 %v6519_v11  ;;  %v6541_v11 = vld [vmem:[%s8956_s5 + $0x228] sm:$0xff]  }
 0x1cb   : > { %1688 = vrot.lane.b32.xlu1 %v1673_v19, %s8926_s23  ;;  %v6559_v19 = vld [vmem:[%s8956_s5 + $0x2e0] sm:$0xff]  }
 0x1cd   : > { %1690 = vrot.lane.b32.xlu0 %v1679_v20, %s8926_s23 }
 0x1cf   : > { %1692 = vrot.lane.b32.xlu1 %v1685_v9, %s8926_s23  ;;  %s6861_s23 = smov 38  }
 0x210   : > { %v1611_v21 = vpop.permute.xlu0 %1610 }
 0x211   : > { %v1703_v22 = vsel %vm1618_vm14, %v1445_v48, %v1611_v21  ;;  %v6529_v48 = vld [vmem:[%s8956_s5 + $0x210] sm:$0xff]  }
 0x212   : > { %2627 = vmatprep.mubr.bf16.mxu1 %v1703_v22 }
 0x213   : > { %2628 = vmatmul.mubr.bf16.vlgmr.msra.gmra.mrb[8].mxu1 %v1441_v43  ;;  %v6527_v43 = vld [vmem:[%s8956_s5 + $0x250] sm:$0xff]  }
 0x214   : > { %6125 = vmatpush3.bf16.msra.mxu1 %v6517_v14  ;;  %v6560_v14 = vld [vmem:[%s8956_s5 + $0x2a0] sm:$0xff]  }
 0x215   : > { %6126 = vmatprep.subr.bf16.mxu1 %v6518_v15  ;;  %v6562_v15 = vld [vmem:[%s8956_s5 + $0x2e8] sm:$0xff]  }
 0x216   : > { %v1613_v57 = vpop.permute.xlu1 %1612 }
 0x217   : > { %v1619_v38 = vsel %vm1618_vm14, %v1611_v21, %v1613_v57  ;;  %v6546_v21 = vld [vmem:[%s8956_s5 + $0x278] sm:$0xff]  }
 0x218   : > { %6127 = vmatpush3.bf16.msra.mxu1 %v6520_v23  ;;  %v6548_v23 = vld [vmem:[%s8956_s5 + $0x238] sm:$0xff]  }
 0x219   : > { %6128 = vmatprep.subr.bf16.mxu1 %v6522_v24  ;;  %v6563_v24 = vld [vmem:[%s8956_s5 + $0x2a8] sm:$0xff]  }
 0x21c   : > { %6129 = vmatpush3.bf16.msra.mxu1 %v6524_v3  ;;  %v6565_v3 = vld [vmem:[%s8956_s5 + $0x2f0] sm:$0xff]  }
 0x21d   : > { %6130 = vmatprep.subr.bf16.mxu1 %v6526_v25  ;;  %v6552_v25 = vld [vmem:[%s8956_s5 + $0x300] sm:$0xff]  }
 0x220   : > { %6131 = vmatpush3.bf16.msra.mxu1 %v6528_v40  ;;  %v6855_v40 = vmov 0.0  }
 0x221   : > { %6132 = vmatprep.subr.bf16.mxu1 %v6530_v53  ;;  %v6566_v53 = vld [vmem:[%s8956_s5 + $0x2b0] sm:$0xff]  }
 0x224   : > { %6133 = vmatpush3.bf16.msra.mxu1 %v6532_v10 }
 0x225   : > { %6134 = vmatprep.subr.bf16.mxu1 %v6534_v29  ;;  %v6568_v29 = vld [vmem:[%s8956_s5 + $0x2f8] sm:$0xff]  }
 0x226   : > { %v1615_v37 = vpop.permute.xlu0 %1614 }
 0x227   : > { %v1620_v56 = vsel %vm1618_vm14, %v1613_v57, %v1615_v37  ;;  %v6569_v57 = vld [vmem:[%s8956_s5 + $0x2b8] sm:$0xff]  }
 0x228   : > { %6135 = vmatpush3.bf16.msra.mxu1 %v6536_v30  ;;  %2668 = vmatprep.mubr.bf16.mxu0 %v1620_v56  ;;  %v6555_v30 = vld [vmem:[%s8956_s5 + $0x308] sm:$0xff]   ;;  %v6564_v56 = vld [vmem:[%s8956_s5 + $0x320] sm:$0xff]  }
 0x229   : > { %6136 = vmatprep.subr.bf16.mxu1 %v6538_v7  ;;  %2669 = vmatmul.mubr.bf16.vlgmr.msra.gmra.mrb[12].mxu0 %v1619_v38  ;;  %v6558_v7 = vld [vmem:[%s8956_s5 + $0x310] sm:$0xff]   ;;  %v6571_v38 = vld [vmem:[%s8956_s5 + $0x338] sm:$0xff]  }
 0x22a   : > { %v1617_v31 = vpop.permute.xlu1 %1616  ;;  %6147 = vmatpush3.bf16.msra.mxu0 %v6521_v41  ;;  %v1649_v4 = vpop.permute.xlu0 %1648  ;;  %v6561_v41 = vld [vmem:[%s8956_s5 + $0x318] sm:$0xff]  }
 0x22b   : > { %6148 = vmatprep.subr.bf16.mxu0 %v6523_v33  ;;  %v1621_v28 = vsel %vm1618_vm14, %v1615_v37, %v1617_v31  ;;  %v6567_v33 = vld [vmem:[%s8956_s5 + $0x328] sm:$0xff]  }
 0x22c   : > { %6137 = vmatpush3.bf16.msra.mxu1 %v6540_v13  ;;  %v1708_v54 = vsel %vm1656_vm7, %v1621_v28, %v1649_v4  ;;  %v6570_v13 = vld [vmem:[%s8956_s5 + $0x330] sm:$0xff]   ;;  %v6576_v28 = vld [vmem:[%s8882_s7 + $0x88] sm:$0xff]  }
 0x22d   : > { %6138 = vmatprep.subr.bf16.mxu1 %v6542_v35 }
 0x22e   : > { %v7731_v45 = vpop.permute.xlu1 %1650  ;;  %6149 = vmatpush3.bf16.msra.mxu0 %v6525_v39 }
 0x22f   : > { %v1657_v36 = vsel %vm1656_vm7, %v1649_v4, %v7731_v45  ;;  %6150 = vmatprep.subr.bf16.mxu0 %v6527_v43 }
 0x230   : > { %6139 = vmatpush3.bf16.msra.mxu1 %v6544_v26  ;;  %2709 = vmatprep.mubr.bf16.mxu1 %v1657_v36  ;;  %v6573_v36 = vld [vmem:[%s8882_s7 + $0x80] sm:$0xff]  }
 0x231   : > { %6168 = vmatprep.subr.bf16.mxu1 %v6547_v44 }
 0x232   : > { %6151 = vmatpush3.bf16.msra.mxu0 %v6529_v48  ;;  %v6572_v48 = vld [vmem:[%s8882_s7 + $0x40] sm:$0xff]  }
 0x233   : > { %2710 = vmatmul.mubr.bf16.vlgmr.msra.gmra.mrb[12].mxu1 %v1708_v54  ;;  %6152 = vmatprep.subr.bf16.mxu0 %v6531_v50  ;;  %v6574_v50 = vld [vmem:[%s8882_s7] sm:$0xff]   ;;  %v6578_v54 = vld [vmem:[%s8882_s7 + $0x50] sm:$0xff]  }
 0x234   : > { %6169 = vmatpush3.bf16.msra.mxu1 %v6549_v52  ;;  %v6575_v52 = vld [vmem:[%s8882_s7 + $0x48] sm:$0xff]  }
 0x235   : > { %6170 = vmatprep.subr.bf16.mxu1 %v6550_v49  ;;  %v6577_v49 = vld [vmem:[%s8882_s7 + $0x8] sm:$0xff]  }
 0x236   : > { %6153 = vmatpush3.bf16.msra.mxu0 %v6533_v55  ;;  %v6579_v55 = vld [vmem:[%s8882_s7 + $0x90] sm:$0xff]  }
 0x237   : > { %v1653_v0 = vpop.permute.xlu0 %1652  ;;  %6154 = vmatprep.subr.bf16.mxu0 %v6535_v60  ;;  %v6580_v60 = vld [vmem:[%s8882_s7 + $0x10] sm:$0xff]  }
 0x238   : > { %6171 = vmatpush3.bf16.msra.mxu1 %v6551_v61  ;;  %v1658_v10 = vsel %vm1656_vm7, %v7731_v45, %v1653_v0  ;;  %v6581_v61 = vld [vmem:[%s8882_s7 + $0x58] sm:$0xff]  }
 0x239   : > { %6172 = vmatprep.subr.bf16.mxu1 %v6553_v51  ;;  %v1655_v6 = vpop.permute.xlu1 %1654  ;;  %v6582_v51 = vld [vmem:[%s8882_s7 + $0x98] sm:$0xff]  }
 0x23a   : > { %6155 = vmatpush3.bf16.msra.mxu0 %v6537_v47  ;;  %v1659_v12 = vsel %vm1656_vm7, %v1653_v0, %v1655_v6  ;;  %v6583_v47 = vld [vmem:[%s8882_s7 + $0x18] sm:$0xff]   ;;  %v6584_v0 = vld [vmem:[%s8882_s7 + $0x60] sm:$0xff]   ;;  %v6587_v6 = vld [vmem:[%s8882_s7 + $0x68] sm:$0xff]  }
 0x23b   : > { %v1687_v16 = vpop.permute.xlu0 %1686  ;;  %6156 = vmatprep.subr.bf16.mxu0 %v6539_v1  ;;  %v6585_v1 = vld [vmem:[%s8882_s7 + $0xa0] sm:$0xff]  }
 0x23c   : > { %6173 = vmatpush3.bf16.msra.mxu1 %v6554_v42  ;;  %v1713_v18 = vsel %vm1694_vm10, %v1659_v12, %v1687_v16  ;;  %v6586_v42 = vld [vmem:[%s8882_s7 + $0x20] sm:$0xff]  }
 0x23d   : > { %6174 = vmatprep.subr.bf16.mxu1 %v6556_v5  ;;  %2750 = vmatprep.mubr.bf16.mxu0 %v1713_v18  ;;  %v1689_v20 = vpop.permute.xlu1 %1688  ;;  %v5612_v5 = vld [vmem:[%s8968_s20] ss:$0 sm:$0xff]  ;;  %s8970_s20 = smov 32  }
 0x23e   : > { %6157 = vmatpush3.bf16.msra.mxu0 %v6541_v11  ;;  %v1695_v37 = vsel %vm1694_vm10, %v1687_v16, %v1689_v20  ;;  %v6588_v16 = vld [vmem:[%s8882_s7 + $0xa8] sm:$0xff]  }
 0x23f   : > { %v1691_v9 = vpop.permute.xlu0 %1690  ;;  %6158 = vmatprep.subr.bf16.mxu0 %v6543_v46 }
 0x240   : > { %6175 = vmatpush3.bf16.msra.mxu1 %v6557_v32  ;;  %v1696_v22 = vsel %vm1694_vm10, %v1689_v20, %v1691_v9 }
 0x241   : > { %6176 = vmatprep.subr.bf16.mxu1 %v6559_v19  ;;  %2791 = vmatprep.mubr.bf16.mxu1 %v1696_v22  ;;  %v1693_v35 = vpop.permute.xlu1 %1692  ;;  %v6589_v19 = vld [vmem:[%s8882_s7 + $0x28] sm:$0xff]  }
 0x242   : > { %6159 = vmatpush3.bf16.msra.mxu0 %v6545_v34  ;;  %v1697_v31 = vsel %vm1694_vm10, %v1691_v9, %v1693_v35 }
 0x243   : > { %6160 = vmatprep.subr.bf16.mxu0 %v6546_v21 }
 0x244   : > { %6177 = vmatpush3.bf16.msra.mxu1 %v6560_v14 }
 0x245   : > { %6178 = vmatprep.subr.bf16.mxu1 %v6562_v15 }
 0x246   : > { %6161 = vmatpush3.bf16.msra.mxu0 %v6548_v23 }
 0x247   : > { %6253 = vmatprep.subr.bf16.mxu0 %v6855_v40 }
 0x248   : > { %6179 = vmatpush3.bf16.msra.mxu1 %v6563_v24 }
 0x249   : > { %6180 = vmatprep.subr.bf16.mxu1 %v6565_v3  ;;  %2751 = vmatmul.mubr.bf16.vlgmr.msra.gmra.mrb[16].mxu0 %v1658_v10 }
 0x24a   : > { %6254 = vmatpush3.bf16.msra.mxu0 %v6552_v25  ;;  %6269 = vmatprep.mubr.msk.bf16.mxu0 %vm6856_vm0, %v6855_v40 }
 0x24b   : > { %6255 = vmatprep.subr.bf16.mxu0 %v6855_v40 }
 0x24c   : > { %6181 = vmatpush3.bf16.msra.mxu1 %v6566_v53 }
 0x24d   : > { %6182 = vmatprep.subr.bf16.mxu1 %v6568_v29 }
 0x24e   : > { %6256 = vmatpush3.bf16.msra.mxu0 %v6555_v30 }
 0x24f   : > { %6257 = vmatprep.subr.bf16.mxu0 %v6855_v40 }
 0x250   : > { %6183 = vmatpush3.bf16.msra.mxu1 %v6569_v57 }
 0x251   : > { %6199 = vmatprep.subr.bf16.mxu1 %v6572_v48 }
 0x252   : > { %6258 = vmatpush3.bf16.msra.mxu0 %v6558_v7 }
 0x253   : > { %2792 = vmatmul.mubr.bf16.vlgmr.msra.gmra.mrb[16].mxu1 %v1695_v37  ;;  %6259 = vmatprep.subr.bf16.mxu0 %v6855_v40 }
 0x254   : > { %6200 = vmatpush3.bf16.msra.mxu1 %v6574_v50 }
 0x255   : > { %6201 = vmatprep.subr.bf16.mxu1 %v6575_v52 }
 0x256   : > { %6260 = vmatpush3.bf16.msra.mxu0 %v6561_v41 }
 0x257   : > { %6261 = vmatprep.subr.bf16.mxu0 %v6855_v40 }
 0x258   : > { %6202 = vmatpush3.bf16.msra.mxu1 %v6577_v49 }
 0x259   : > { %6203 = vmatprep.subr.bf16.mxu1 %v6578_v54 }
 0x25a   : > { %6262 = vmatpush3.bf16.msra.mxu0 %v6564_v56 }
 0x25b   : > { %6263 = vmatprep.subr.bf16.mxu0 %v6855_v40 }
 0x25c   : > { %6204 = vmatpush3.bf16.msra.mxu1 %v6580_v60 }
 0x25d   : > { %6205 = vmatprep.subr.bf16.mxu1 %v6581_v61 }
 0x25e   : > { %6264 = vmatpush3.bf16.msra.mxu0 %v6567_v33 }
 0x25f   : > { %6265 = vmatprep.subr.bf16.mxu0 %v6855_v40 }
 0x260   : > { %6206 = vmatpush3.bf16.msra.mxu1 %v6583_v47 }
 0x261   : > { %6207 = vmatprep.subr.bf16.mxu1 %v6584_v0 }
 0x262   : > { %6266 = vmatpush3.bf16.msra.mxu0 %v6570_v13 }
 0x263   : > { %6267 = vmatprep.subr.bf16.mxu0 %v6855_v40 }
 0x264   : > { %6208 = vmatpush3.bf16.msra.mxu1 %v6586_v42  ;;  %v6591_v42 = vld [vmem:[%s8882_s7 + $0xb0] sm:$0xff]  }
 0x265   : > { %6209 = vmatprep.subr.bf16.mxu1 %v6587_v6 }
 0x266   : > { %6268 = vmatpush3.bf16.msra.mxu0 %v6571_v38 }
 0x267   : > { %6273 = vmatprep.subr.bf16.mxu0 %v6855_v40 }
 0x268   : > { %6210 = vmatpush3.bf16.msra.mxu1 %v6589_v19 }
 0x269   : > { %6270 = vmatmul.mubr.bf16.vlgmr.msra.gmra.mrb[20].mxu0 %v1697_v31 }
 0x26a   : > { %6289 = vmatprep.mubr.msk.bf16.mxu0 %vm6856_vm0, %v6855_v40  ;;  %6274 = vmatpush3.bf16.msra.mxu0 %v6573_v36 }
 0x26b   : > { %6275 = vmatprep.subr.bf16.mxu0 %v6855_v40 }
 0x26e   : > { %6276 = vmatpush3.bf16.msra.mxu0 %v6576_v28 }
 0x26f   : > { %6277 = vmatprep.subr.bf16.mxu0 %v6855_v40 }
 0x272   : > { %6278 = vmatpush3.bf16.msra.mxu0 %v6579_v55 }
 0x273   : > { %6279 = vmatprep.subr.bf16.mxu0 %v6855_v40 }
 0x276   : > { %6280 = vmatpush3.bf16.msra.mxu0 %v6582_v51 }
 0x277   : > { %6281 = vmatprep.subr.bf16.mxu0 %v6855_v40 }
 0x27a   : > { %6282 = vmatpush3.bf16.msra.mxu0 %v6585_v1  ;;  %v6590_v1 = vld [vmem:[%s8882_s7 + $0x70] sm:$0xff]  }
 0x27b   : > { %6283 = vmatprep.subr.bf16.mxu0 %v6855_v40  ;;  %6211 = vmatprep.subr.bf16.mxu1 %v6590_v1 }
 0x27e   : > { %6284 = vmatpush3.bf16.msra.mxu0 %v6588_v16 }
 0x27f   : > { %v6074_v39 = vpop.f32.mrb[8].mxu0  ;;  %6285 = vmatprep.subr.bf16.mxu0 %v6855_v40 }
 0x280   : > { %v6075_v43 = vpop.f32.mrb[9].mxu0 }
 0x281   : > { %v6076_v26 = vadd.f32 %v6075_v43, %v6074_v39  ;;  %v6077_v4 = vpop.f32.mrb[10].mxu0 }
 0x282   : > { %v6078_v44 = vpop.f32.mrb[11].mxu0  ;;  %6286 = vmatpush3.bf16.msra.mxu0 %v6591_v42 }
 0x283   : > { %v6079_v45 = vadd.f32 %v6078_v44, %v6077_v4  ;;  %v2589_v46 = vadd.f32 %v6076_v26, %v5612_v5  ;;  %6287 = vmatprep.subr.bf16.mxu0 %v6855_v40 }
 0x285   : > { %v2592_v20 = vadd.f32 %v6079_v45, %v5612_v5  ;;  %v6592_v5 = vld [vmem:[%s8882_s7 + $0x30] sm:$0xff]  }
 0x286   : > { %6212 = vmatpush3.bf16.msra.mxu1 %v6592_v5 }
 0x2e6   : > { %v6096_v11 = vpop.f32.mrb[8].mxu1 }
 0x2e7   : > { %v6097_v12 = vpop.f32.mrb[9].mxu1 }
 0x2e8   : > { %v6098_v32 = vadd.f32 %v6097_v12, %v6096_v11  ;;  %v6099_v18 = vpop.f32.mrb[10].mxu1  ;;  %v6593_v11 = vld [vmem:[%s8882_s7 + $0x78] sm:$0xff]  }
 0x2e9   : > { %v6100_v34 = vpop.f32.mrb[11].mxu1  ;;  %v6594_v12 = vld [vmem:[%s8882_s7 + $0xb8] sm:$0xff]   ;;  %6213 = vmatprep.subr.bf16.mxu1 %v6593_v11 }
 0x2ea   : > { %v2630_v9 = vadd.f32 %v6098_v32, %v2589_v46  ;;  %v6101_v21 = vadd.f32 %v6100_v34, %v6099_v18  ;;  %v6595_v18 = vld [vmem:[%s8882_s7 + $0x38] sm:$0xff]   ;;  %6288 = vmatpush3.bf16.msra.mxu0 %v6594_v12 }
 0x2eb   : > { %6214 = vmatpush3.bf16.msra.mxu1 %v6595_v18  ;;  %6313 = vmatprep.subr.bf16.mxu0 %v6855_v40 }
 0x2ec   : > { %v2633_v14 = vadd.f32 %v6101_v21, %v2592_v20  ;;  %6293 = vmatprep.subr.bf16.mxu1 %v6855_v40 }
 0x2fc   : > { %v6118_v22 = vpop.f32.mrb[12].mxu0 }
 0x2fd   : > { %v6119_v15 = vpop.f32.mrb[13].mxu0 }
 0x2fe   : > { %v6120_v23 = vadd.f32 %v6119_v15, %v6118_v22  ;;  %v6121_v24 = vpop.f32.mrb[14].mxu0 }
 0x2ff   : > { %v6122_v3 = vpop.f32.mrb[15].mxu0 }
 0x300   : > { %v2671_v25 = vadd.f32 %v6120_v23, %v2630_v9  ;;  %v6123_v53 = vadd.f32 %v6122_v3, %v6121_v24 }
 0x302   : > { %v2674_v10 = vadd.f32 %v6123_v53, %v2633_v14 }
 0x306   : > { %v6140_v29 = vpop.f32.mrb[12].mxu1 }
 0x307   : > { %v6141_v30 = vpop.f32.mrb[13].mxu1 }
 0x308   : > { %v6142_v57 = vadd.f32 %v6141_v30, %v6140_v29  ;;  %v6143_v7 = vpop.f32.mrb[14].mxu1 }
 0x309   : > { %v6144_v37 = vpop.f32.mrb[15].mxu1 }
 0x30a   : > { %v2712_v41 = vadd.f32 %v6142_v57, %v2671_v25  ;;  %v6145_v56 = vadd.f32 %v6144_v37, %v6143_v7 }
 0x30c   : > { %v2715_v33 = vadd.f32 %v6145_v56, %v2674_v10 }
 0x31c   : > { %v6162_v13 = vpop.f32.mrb[16].mxu0 }
 0x31d   : > { %v6163_v38 = vpop.f32.mrb[17].mxu0 }
 0x31e   : > { %v6164_v35 = vadd.f32 %v6163_v38, %v6162_v13  ;;  %v6165_v31 = vpop.f32.mrb[18].mxu0 }
 0x31f   : > { %v6166_v39 = vpop.f32.mrb[19].mxu0 }
 0x320   : > { %v2753_v43 = vadd.f32 %v6164_v35, %v2712_v41  ;;  %v6167_v26 = vadd.f32 %v6166_v39, %v6165_v31 }
 0x322   : > { %v2756_v4 = vadd.f32 %v6167_v26, %v2715_v33 }
 0x326   : > { %v6184_v44 = vpop.f32.mrb[16].mxu1 }
 0x327   : > { %v6185_v45 = vpop.f32.mrb[17].mxu1 }
 0x328   : > { %v6186_v48 = vadd.f32 %v6185_v45, %v6184_v44  ;;  %v6187_v36 = vpop.f32.mrb[18].mxu1  ;;  %v6596_v44 = vld [vmem:[%s8884_s9] sm:$0xff]   ;;  %v6597_v45 = vld [vmem:[%s8884_s9 + $0x8] sm:$0xff]  }
 0x329   : > { %v6188_v50 = vpop.f32.mrb[19].mxu1 }
 0x32a   : > { %v6189_v52 = vadd.f32 %v6188_v50, %v6187_v36  ;;  %v2794_v28 = vadd.f32 %v6186_v48, %v2753_v43  ;;  %v6598_v48 = vld [vmem:[%s8884_s9 + $0x10] sm:$0xff]   ;;  %v6599_v36 = vld [vmem:[%s8884_s9 + $0x18] sm:$0xff]   ;;  %v6600_v50 = vld [vmem:[%s8884_s9 + $0x20] sm:$0xff]  }
 0x32c   : > { %v2797_v49 = vadd.f32 %v6189_v52, %v2756_v4  ;;  %v6601_v52 = vld [vmem:[%s8884_s9 + $0x28] sm:$0xff]  }
 0x33c   : > { %v2834_v54 = vpop.f32.mrb[20].mxu0 }
 0x33d   : > { %v2835_v55 = vadd.f32 %v2834_v54, %v2794_v28  ;;  %v6271_v60 = vpop.f32.mrb[21].mxu0 }
 0x33e   : > { %v2837_v61 = vpop.f32.mrb[22].mxu0  ;;  %v5717_v60 = vld [vmem:[%s8883_s8] ss:$0 sm:$0xff] }
 0x33f   : > { %v2843_v51 = vmul.f32 0.01, %v2835_v55  ;;  %v2838_v47 = vadd.f32 %v2837_v61, %v2797_v49  ;;  %v6272_v0 = vpop.f32.mrb[23].mxu0  ;;  %vm2841_vm8 = vcmp.ge.f32.partialorder %v2835_v55, 0.0 }
 0x341   : > { %vm2842_vm4 = vcmp.ge.f32.partialorder %v2838_v47, 0.0  ;;  %v2844_v6 = vmul.f32 0.01, %v2838_v47  ;;  %v2845_v16 = vsel %vm2841_vm8, %v2835_v55, %v2843_v51  ;;  %v6602_v55 = vld [vmem:[%s8884_s9 + $0x30] sm:$0xff]   ;;  %vm8973_vm8 = vcmask 736256  }
 0x343   : > { %v2846_v46 = vsel %vm2842_vm4, %v2838_v47, %v2844_v6  ;;  %v6603_v6 = vld [vmem:[%s8884_s9 + $0x38] ss:$0 sps:$4 sm:$0xff]  }
 0x344   : > { %v2847_v32 = vpack.c.bf16 %v2846_v46, %v2845_v16  ;;  %v3275_v12 = vsel %vm1399_vm2, %v6603_v6, 0 }
 0x346   : > { %v2854_v19 = vrot.slane %v2847_v32, 1  ;;  %v2867_v34 = vshrl.u32 %v2847_v32, 16  ;;  %v2849_v20 = vshll.u32 %v2847_v32, 16  ;;  %v2857_v22 = vrot.slane %v2847_v32, 2 }
 0x348   : > { %v2871_v9 = vrot.slane %v2867_v34, 1  ;;  %v2874_v21 = vsel %vm7328_vm15, %v2867_v34, %v2854_v19  ;;  %v2851_v14 = vrot.slane %v2849_v20, 1  ;;  %v2873_v15 = vrot.slane %v2867_v34, 2 }
 0x349   : > { %v2855_v24 = vrot.slane %v2849_v20, 2 }
 0x34a   : > { %v2877_v23 = vsel %vm1328_vm11, %v2874_v21, %v2871_v9  ;;  %v2858_v3 = vsel %vm7328_vm15, %v2847_v32, %v2851_v14 }
 0x34b   : > { %v2879_v25 = vsel %vm7333_vm3, %v2877_v23, %v2857_v22  ;;  %v2861_v53 = vsel %vm1328_vm11, %v2858_v3, %v2854_v19  ;;  %v6604_v23 = vld [vmem:[%s8886_s11] sm:$0xff]  }
 0x34c   : > { %v2882_v10 = vsel %vm1352_vm13, %v2879_v25, %v2873_v15  ;;  %v2863_v29 = vsel %vm7333_vm3, %v2861_v53, %v2855_v24  ;;  %v3225_v3 = vld [vmem:[%s8885_s10] sm:$0x1] }
 0x34d   : > { %2884 = vrot.lane.b32.xlu0 %v2882_v10, %s8969_s29  ;;  %v2896_v30 = vshll.u32 %v2882_v10, 16  ;;  %v2866_v57 = vsel %vm1352_vm13, %v2863_v29, %v2857_v22  ;;  %v2894_v37 = vshrl.u32 %v2882_v10, 16  ;;  %s708_s29 = scalar_lea.vmem [#allocation2], %s8019_s21 }
 0x34e   : > { %v2888_v7 = vshll.u32 %v2866_v57, 16  ;;  %v2886_v56 = vshrl.u32 %v2866_v57, 16 }
 0x34f   : > { %v2898_v41 = vrot.slane %v2896_v30, 1 }
 0x350   : > { %v2890_v33 = vrot.slane %v2888_v7, 1 }
 0x351   : > { %v2899_v13 = vor.u32 %v2898_v41, %v2894_v37  ;;  %v6858_v37 = vmov 1966171168  }
 0x352   : > { %v2891_v38 = vor.u32 %v2890_v33, %v2886_v56  ;;  %v3330_v41 = vunpack.c.l.s4 %v6858_v37  ;;  %v6633_v37 = vld [vmem:[%s8890_s15 + $0x34] ss:$8 sps:$4 sm:$0xff]  }
 0x353   : > { %2900 = vrot.lane.b32.xlu0 %v2899_v13, %s8970_s20  ;;  %s8972_s20 = smov 30  }
 0x354   : > { %2892 = vrot.lane.b32.xlu1 %v2891_v38, %s8971_s6  ;;  %v3331_v56 = vunpack.c.0.s8 %v3330_v41  ;;  %s8976_s6 = sld [smem:[#allocation17_spill]]  ;;  %v6636_v41 = vld [vmem:[%s8890_s15 + $0xf4] ss:$8 sps:$4 sm:$0xff]  }
 0x356   : > { %v3334_v33 = vsub.s32 %v3331_v56, %v7300_v58  ;;  %v6862_v56 = vmov 0  }
 0x3bf   : > { %v2885_v35 = vpop.permute.xlu0 %2884 }
 0x3c0   : > { %v2903_v4 = vsel %vm1694_vm10, %v2866_v57, %v2885_v35 }
 0x3c5   : > { %v2901_v31 = vpop.permute.xlu0 %2900 }
 0x3c6   : > { %v2893_v39 = vpop.permute.xlu1 %2892 }
 0x3c7   : > { %v2909_v43 = vsel %vm1618_vm14, %v2893_v39, %v2901_v31  ;;  %v2906_v26 = vsel %vm1656_vm7, %v2885_v35, %v2893_v39  ;;  %vm8974_vm14 = vcmask 982016   ;;  %vm3357_vm7 = vcmask 64512  }
 0x3c8   : > { %3142 = vmatprep.mubr.bf16.mxu1 %v2906_v26  ;;  %6290 = vmatmul.mubr.bf16.vlgmr.msra.gmra.mrb[24].mxu0 %v2909_v43 }
 0x3c9   : > { %3143 = vmatmul.mubr.bf16.vlgmr.msra.gmra.mrb[20].mxu1 %v2903_v4  ;;  %6315 = vmatprep.mubr.msk.bf16.mxu0 %vm6856_vm0, %v6855_v40 }
 0x3ca   : > { %6309 = vmatprep.mubr.msk.bf16.mxu1 %vm6856_vm0, %v6855_v40  ;;  %6294 = vmatpush3.bf16.msra.mxu1 %v6596_v44 }
 0x3cb   : > { %6295 = vmatprep.subr.bf16.mxu1 %v6855_v40  ;;  %6314 = vmatpush3.bf16.msra.mxu0 %v6604_v23  ;;  %v6616_v23 = vld [vmem:[%s8890_s15 + $0xc0] ss:$8 sps:$4 sm:$0xff]  }
 0x3cc   : > { %6327 = vmatprep.subr.bf16.mxu0 %v6855_v40 }
 0x3ce   : > { %6296 = vmatpush3.bf16.msra.mxu1 %v6597_v45 }
 0x3cf   : > { %6297 = vmatprep.subr.bf16.mxu1 %v6855_v40 }
 0x3d2   : > { %6298 = vmatpush3.bf16.msra.mxu1 %v6598_v48  ;;  %v6605_v48 = vld [vmem:[%s8888_s13] sm:$0xff]  }
 0x3d3   : > { %6299 = vmatprep.subr.bf16.mxu1 %v6855_v40 }
 0x3d6   : > { %6300 = vmatpush3.bf16.msra.mxu1 %v6599_v36  ;;  %v6606_v36 = vld [vmem:[%s8888_s13 + $0x10] sm:$0xff]  }
 0x3d7   : > { %6301 = vmatprep.subr.bf16.mxu1 %v6855_v40 }
 0x3da   : > { %6302 = vmatpush3.bf16.msra.mxu1 %v6600_v50  ;;  %v6607_v50 = vld [vmem:[%s8888_s13 + $0x8] sm:$0x7f]  }
 0x3db   : > { %6303 = vmatprep.subr.bf16.mxu1 %v6855_v40 }
 0x3de   : > { %6304 = vmatpush3.bf16.msra.mxu1 %v6601_v52 }
 0x3df   : > { %6305 = vmatprep.subr.bf16.mxu1 %v6855_v40 }
 0x3e2   : > { %6306 = vmatpush3.bf16.msra.mxu1 %v6602_v55 }
 0x3e3   : > { %6307 = vmatprep.subr.bf16.mxu1 %v6855_v40 }
 0x3e6   : > { %6308 = vmatpush3.bf16.msra.mxu1 %v3275_v12 }
 0x3e7   : > { %6319 = vmatprep.subr.bf16.mxu1 %v6855_v40 }
 0x49b   : > { %v3184_v28 = vpop.f32.mrb[24].mxu0 }
 0x49c   : > { %v6215_v49 = vpop.f32.mrb[20].mxu1  ;;  %v6291_v54 = vpop.f32.mrb[25].mxu0 }
 0x49d   : > { %v6216_v61 = vpop.f32.mrb[21].mxu1  ;;  %v3187_v51 = vpop.f32.mrb[26].mxu0 }
 0x49e   : > { %v6217_v47 = vadd.f32 %v6216_v61, %v6215_v49  ;;  %v6218_v0 = vpop.f32.mrb[22].mxu1  ;;  %v6292_v1 = vpop.f32.mrb[27].mxu0  ;;  %v3362_v49 = vld [vmem:[%s8887_s12] sm:$0x1] }
 0x49f   : > { %v6219_v42 = vpop.f32.mrb[23].mxu1 }
 0x4a0   : > { %v3145_v5 = vadd.f32 %v6217_v47, %v5717_v60 }
 0x4a2   : > { %v3185_v11 = vadd.f32 %v3184_v28, %v3145_v5  ;;  %v6608_v28 = vld [vmem:[%s8888_s13 + $0x18] sm:$0x7f]  }
 0x4a4   : > { %vm3190_vm4 = vcmp.ge.f32.partialorder %v3185_v11, 0.0  ;;  %v3191_v16 = vmul.f32 0.01, %v3185_v11 }
 0x4a6   : > { %v3192_v46 = vsel %vm3190_vm4, %v3185_v11, %v3191_v16  ;;  %vm3369_vm4 = vcmask 130048  }
 0x4a7   : > { %v3198_v32 = vrot.slane %v3192_v46, 2  ;;  %v3194_v18 = vrot.slane %v3192_v46, 1  ;;  %v3202_v19 = vrot.slane %v3192_v46, 3 }
 0x4a9   : > { %3199 = vrot.lane.b32.xlu0 %v3198_v32, %s8953_s2  ;;  %3195 = vrot.lane.b32.xlu1 %v3194_v18, %s8972_s20  ;;  %v6609_v18 = vld [vmem:[%s8888_s13 + $0x20] sm:$0xff]   ;;  %s9003_s20 = smov %s9002_s30  ;;  %s5389_s2 = sshll.u32 %s708_s29, 4  ;;  %s8766_s2 = int_to_ptr.vmem [resolvable:$true] %s5389_s2 }
 0x4ad   : > { %3203 = vrot.lane.b32.xlu1 %v3202_v19, %s8954_s18  ;;  %s729_s18 = scalar_lea.vmem %s8975_s27, %s7030_s26  ;;  %s732_s27 = scalar_lea.vmem %s8976_s6, %s7030_s26  ;;  %v6610_v19 = vld [vmem:[%s8888_s13 + $0x30] sm:$0xff]  }
 0x4ae   : > { %v5751_v24 = vld [vmem:[%s729_s18] ss:$0 sm:$0xff]  ;;  %s6860_s18 = smov 98   ;;  %s8929_s26 = scalar_lea.vmem [#allocation4], %s8019_s21 }
 0x4af   : > { %v3324_v31 = vld [vmem:[%s732_s27] sm:$0x1]  ;;  %s6859_s27 = smov 68   ;;  %s6863_s6 = smov [#allocation2]  }
 0x4b1   : > { %3354 = vrot.lane.b32.xlu1 %v5751_v24, %s6857_s25  ;;  %v6618_v24 = vld [vmem:[%s8890_s15 + $0xc4] ss:$8 sps:$4 sm:$0xff]  }
 0x51b   : > { %v3196_v34 = vpop.permute.xlu1 %3195  ;;  %v3200_v20 = vpop.permute.xlu0 %3199 }
 0x51c   : > { %v3206_v9 = vsel %vm800_vm5, %v3192_v46, %v3196_v34 }
 0x51d   : > { %v3207_v21 = vsel %vm805_vm6, %v3206_v9, %v3200_v20  ;;  %vm3317_vm6 = vcmask 57344   ;;  %v6611_v20 = vld [vmem:[%s8888_s13 + $0x28] sm:$0x7f]   ;;  %v6612_v9 = vld [vmem:[%s8888_s13 + $0x38] sm:$0x7f]  }
 0x51f   : > { %v3204_v14 = vpop.permute.xlu1 %3203 }
 0x520   : > { %v3208_v22 = vsel %vm8973_vm8, %v3207_v21, %v3204_v14  ;;  %vm8977_vm8 = vcmask 1046528  }
 0x521   : > { %v3209_v15 = vpack.c.bf16 %v3208_v22, %v3208_v22  ;;  %v3450_v52 = vsel %vm8977_vm8, %v6607_v50, 0  ;;  %v6613_v22 = vld [vmem:[%s8890_s15] ss:$8 sps:$4 sm:$0xff]  }
 0x523   : > { %6310 = vmatmul.mubr.msk.bf16.vlgmr.msra.gmra.mrb[24].mxu1 %vm8974_vm14, %v3209_v15  ;;  %v3355_v26 = vpop.permute.xlu1 %3354  ;;  %vm8978_vm14 = vmmov %vm8977_vm8  ;;  %v6615_v15 = vld [vmem:[%s8890_s15 + $0x4] ss:$8 sps:$4 sm:$0xff]  }
 0x524   : > { %6323 = vmatprep.mubr.msk.bf16.mxu1 %vm6856_vm0, %v6855_v40  ;;  %6320 = vmatpush3.bf16.msra.mxu1 %v6605_v48  ;;  %v3509_v54 = vsel %vm8978_vm14, %v6608_v28, 0 }
 0x525   : > { %6321 = vmatprep.subr.bf16.mxu1 %v6855_v40 }
 0x528   : > { %6322 = vmatpush3.bf16.msra.mxu1 %v3450_v52 }
 0x529   : > { %6335 = vmatprep.subr.bf16.mxu1 %v6855_v40 }
 0x5f6   : > { %v3311_v25 = vpop.f32.mrb[24].mxu1 }
 0x5f7   : > { %v3312_v53 = vadd.f32 %v3311_v25, %v3225_v3  ;;  %v6311_v10 = vpop.f32.mrb[25].mxu1  ;;  %v6621_v3 = vld [vmem:[%s8890_s15 + $0x14] ss:$8 sps:$4 sm:$0xff]  }
 0x5f8   : > { %v3314_v29 = vpop.f32.mrb[26].mxu1  ;;  %v6624_v25 = vld [vmem:[%s8890_s15 + $0xd4] ss:$8 sps:$4 sm:$0xff]   ;;  %v6622_v10 = vld [vmem:[%s8890_s15 + $0xd0] ss:$8 sps:$4 sm:$0xff]  }
 0x5f9   : > { %v3325_v30 = vmul.f32 0.5, %v3312_v53  ;;  %v6312_v57 = vpop.f32.mrb[27].mxu1  ;;  %3318 = vst.msk [vmem:[%s708_s29] sm:$0x1] %vm3317_vm6, %v3312_v53  ;;  %v6627_v29 = vld [vmem:[%s8890_s15 + $0x24] ss:$8 sps:$4 sm:$0xff]  }
 0x5fa   : > { %v6625_v57 = vld [vmem:[%s8890_s15 + $0x20] ss:$8 sps:$4 sm:$0xff]   ;;  %s6752_s29 = scalar_lea.vmem %s8766_s2, 16 }
 0x5fb   : > { %v3326_v7 = vmul.f32 1.442695, %v3325_v30  ;;  %v6630_v30 = vld [vmem:[%s8890_s15 + $0xe4] ss:$8 sps:$4 sm:$0xff]   ;;  %p6753_p11 = scmp.ne.s32.totalorder %s8766_s2, %s6752_s29 }
 0x5fd   : > { %6750 = vpow2.f32 %v3326_v7  ;;  %v6628_v7 = vld [vmem:[%s8890_s15 + $0xe0] ss:$8 sps:$4 sm:$0xff]   ;;  %p6754_p12 = pnand %p6753_p11, %p7018_p5 }
 0x5ff   : > { %p6755_p13 = pneg %p6754_p12 }
 0x607   : > { %v6751_v13 = vpop.eup %6750 }
 0x608   : > { %v3335_v38 = vrot.slane %v6751_v13, %v3334_v33  ;;  %v6634_v13 = vld [vmem:[%s8890_s15 + $0xf0] ss:$8 sps:$4 sm:$0xff]  }
 0x60a   : > { %v3342_v35 = vrot.slane %v3335_v38, %v3334_v33  ;;  %v6631_v33 = vld [vmem:[%s8890_s15 + $0x30] ss:$8 sps:$4 sm:$0xff]   ;;  %v6639_v38 = vld [vmem:[%s8890_s15 + $0x44] ss:$8 sps:$4 sm:$0xff]  }
 0x60c   : > { %3343 = vrot.lane.b32.xlu0 %v3342_v35, %s8955_s24  ;;  %v6642_v35 = vld [vmem:[%s8890_s15 + $0x104] ss:$8 sps:$4 sm:$0xff]  }
 0x67e   : > { %v3344_v39 = vpop.permute.xlu0 %3343 }
 0x67f   : > { %v3346_v43 = vmul.f32 %v3344_v39, %v3324_v31  ;;  %v6637_v31 = vld [vmem:[%s8890_s15 + $0x40] ss:$8 sps:$4 sm:$0xff]  }
 0x680   : > { %v6640_v39 = vld [vmem:[%s8890_s15 + $0x100] ss:$8 sps:$4 sm:$0xff]  }
 0x681   : > { %v3347_v4 = vadd.f32 %v3346_v43, %v3312_v53  ;;  %v6645_v43 = vld [vmem:[%s8890_s15 + $0x54] ss:$8 sps:$4 sm:$0xff]  }
 0x683   : > { %v3358_v44 = vsel %vm3357_vm7, %v3347_v4, %v3355_v26  ;;  %vm8979_vm7 = vcmask 1042432   ;;  %v6648_v26 = vld [vmem:[%s8890_s15 + $0x114] ss:$8 sps:$4 sm:$0xff]   ;;  %v6643_v4 = vld [vmem:[%s8890_s15 + $0x50] ss:$8 sps:$4 sm:$0xff]  }
 0x684   : > { %v3359_v45 = vpack.c.bf16 %v3358_v44, %v3358_v44  ;;  %v6646_v44 = vld [vmem:[%s8890_s15 + $0x110] ss:$8 sps:$4 sm:$0xff]   ;;  %vm8982_vm14 = vmmov %vm8979_vm7 }
 0x686   : > { %6316 = vmatmul.mubr.msk.bf16.vlgmr.msra.gmra.mrb[28].mxu0 %vm3369_vm4, %v3359_v45  ;;  %v6651_v45 = vld [vmem:[%s8890_s15 + $0x64] ss:$8 sps:$4 sm:$0xff]  }
 0x687   : > { %6331 = vmatprep.mubr.msk.bf16.mxu0 %vm6856_vm0, %v6855_v40  ;;  %6328 = vmatpush3.bf16.msra.mxu0 %v6606_v36 }
 0x688   : > { %6329 = vmatprep.subr.bf16.mxu0 %v6855_v40 }
 0x68b   : > { %6330 = vmatpush3.bf16.msra.mxu0 %v3509_v54 }
 0x68c   : > { %6343 = vmatprep.subr.bf16.mxu0 %v6855_v40 }
 0x759   : > { %v3407_v55 = vpop.f32.mrb[28].mxu0 }
 0x75a   : > { %v3408_v60 = vadd.f32 %v3407_v55, %v3362_v49  ;;  %v6317_v61 = vpop.f32.mrb[29].mxu0 }
 0x75b   : > { %v3410_v51 = vpop.f32.mrb[30].mxu0 }
 0x75c   : > { %v6318_v47 = vpop.f32.mrb[31].mxu0  ;;  %v3418_v0 = vrot.slane %v3408_v60, 6  ;;  %v3414_v1 = vrot.slane %v3408_v60, 7  ;;  %v3422_v42 = vrot.slane %v3408_v60, 5 }
 0x75e   : > { %3419 = vrot.lane.b32.xlu1 %v3418_v0, %s6859_s27  ;;  %3415 = vrot.lane.b32.xlu0 %v3414_v1, %s6860_s18  ;;  %s8747_s18 = scalar_lea.vmem %s8897_s22, %s7036_s1  ;;  %s6756_s27 = sshll.u32 %s6863_s6, 4  ;;  %s6757_s27 = int_to_ptr.vmem [resolvable:$false] %s6756_s27 }
 0x75f   : > { %s6758_s25 = scalar_lea.vmem %s6757_s27, 32  ;;  %p6759_p0 = scmp.lt.s32.totalorder %s8766_s2, %s6757_s27 }
 0x760   : > { %p6760_p1 = scmp.lt.s32.totalorder %s6758_s25, %s6752_s29 }
 0x762   : > { %3320 = vrot.lane.b32.xlu1 %v3312_v53, %s8955_s24  ;;  %3423 = vrot.lane.b32.xlu0 %v3422_v42, %s6861_s23  ;;  %v6619_v53 = vld [vmem:[%s8890_s15 + $0x10] ss:$8 sps:$4 sm:$0xff]   ;;  %v5778_v42 = vld [vmem:[%s8889_s14] ss:$0 sm:$0xff]  ;;  %s8930_s23 = sshll.u32 %s7001_s4, 4  ;;  %p6761_p2 = por %p6760_p1, %p6759_p0 }
 0x763   : > { %s8759_s3 = scalar_lea.hbm %s9002_s30, %s8930_s23 }
 0x764   : > { %p6762_p3 = pnand %p6761_p2, %p6755_p13 }
 0x7d0   : > { %v3420_v5 = vpop.permute.xlu1 %3419  ;;  %v3416_v6 = vpop.permute.xlu0 %3415 }
 0x7d1   : > { %v3426_v11 = vsel %vm1328_vm11, %v3408_v60, %v3416_v6 }
 0x7d2   : > { %v3427_v16 = vsel %vm1352_vm13, %v3426_v11, %v3420_v5 }
 0x7d4   : > { %v3321_v12 = vpop.permute.xlu1 %3320  ;;  %v3424_v46 = vpop.permute.xlu0 %3423 }
 0x7d5   : > { %3323 = vst.msk [vmem:[%s8929_s26] sm:$0x1] %vm3317_vm6, %v3321_v12  ;;  %v3428_v32 = vsel %vm8979_vm7, %v3427_v16, %v3424_v46  ;;  %vm8980_vm6 = vmmov %vm8977_vm8 }
 0x7d6   : > { %v3429_v34 = vpack.c.bf16 %v3428_v32, %v3428_v32  ;;  %v3568_v21 = vsel %vm8980_vm6, %v6611_v20, 0  ;;  %vm8981_vm4 = vmmov %vm8980_vm6 }
 0x7d7   : > { %v3627_v14 = vsel %vm8981_vm4, %v6612_v9, 0 }
 0x7d8   : > { %6324 = vmatmul.mubr.msk.bf16.vlgmr.msra.gmra.mrb[28].mxu1 %vm800_vm5, %v3429_v34  ;;  %6332 = vmatmul.mubr.msk.bf16.vlgmr.msra.gmra.mrb[32].mxu0 %vm800_vm5, %v3429_v34 }
 0x7d9   : > { %6336 = vmatpush3.bf16.msra.mxu1 %v6609_v18  ;;  %6344 = vmatpush3.bf16.msra.mxu0 %v6610_v19 }
 0x7da   : > { %6337 = vmatprep.subr.bf16.mxu1 %v6855_v40  ;;  %6345 = vmatprep.subr.bf16.mxu0 %v6855_v40 }
 0x7db   : > { %6339 = vmatprep.mubr.msk.bf16.mxu1 %vm6856_vm0, %v6855_v40  ;;  %6347 = vmatprep.mubr.msk.bf16.mxu0 %vm6856_vm0, %v6855_v40 }
 0x7dd   : > { %6338 = vmatpush3.bf16.msra.mxu1 %v3568_v21  ;;  %6346 = vmatpush3.bf16.msra.mxu0 %v3627_v14 }
 0x7de   : > { %3815 = vmatprep.subr.bf16.mxu0 %v6615_v15  ;;  %4047 = vmatprep.subr.bf16.mxu1 %v6618_v24 }
 0x7e0   : > { %6340 = vmatmul.mubr.msk.bf16.vlgmr.msra.gmra.mrb[32].mxu1 %vm800_vm5, %v3429_v34  ;;  %6348 = vmatmul.mubr.msk.bf16.vlgmr.msra.gmra.mrb[36].mxu0 %vm800_vm5, %v3429_v34 }
 0x7e1   : > { %3816 = vmatpush1.bf16.msra.mxu0 %v6613_v22  ;;  %4048 = vmatpush1.bf16.msra.mxu1 %v6616_v23 }
 0x7e2   : > { %3817 = vmatprep.subr.bf16.mxu0 %v6621_v3  ;;  %4049 = vmatprep.subr.bf16.mxu1 %v6624_v25 }
 0x7e3   : > { %3847 = vmatprep.mubr.bf16.mxu0 %v6862_v56  ;;  %4079 = vmatprep.mubr.bf16.mxu1 %v6862_v56 }
 0x7e5   : > { %3818 = vmatpush1.bf16.msra.mxu0 %v6619_v53  ;;  %4050 = vmatpush1.bf16.msra.mxu1 %v6622_v10 }
 0x7e6   : > { %3819 = vmatprep.subr.bf16.mxu0 %v6627_v29  ;;  %4051 = vmatprep.subr.bf16.mxu1 %v6630_v30 }
 0x7e9   : > { %3820 = vmatpush1.bf16.msra.mxu0 %v6625_v57  ;;  %4052 = vmatpush1.bf16.msra.mxu1 %v6628_v7 }
 0x7ea   : > { %3821 = vmatprep.subr.bf16.mxu0 %v6633_v37  ;;  %4053 = vmatprep.subr.bf16.mxu1 %v6636_v41 }
 0x7ed   : > { %3822 = vmatpush1.bf16.msra.mxu0 %v6631_v33  ;;  %4054 = vmatpush1.bf16.msra.mxu1 %v6634_v13 }
 0x7ee   : > { %3823 = vmatprep.subr.bf16.mxu0 %v6639_v38  ;;  %4055 = vmatprep.subr.bf16.mxu1 %v6642_v35 }
 0x7f1   : > { %3824 = vmatpush1.bf16.msra.mxu0 %v6637_v31  ;;  %4056 = vmatpush1.bf16.msra.mxu1 %v6640_v39  ;;  %v6649_v39 = vld [vmem:[%s8890_s15 + $0x60] ss:$8 sps:$4 sm:$0xff]  }
 0x7f2   : > { %3825 = vmatprep.subr.bf16.mxu0 %v6645_v43  ;;  %4057 = vmatprep.subr.bf16.mxu1 %v6648_v26 }
 0x7f5   : > { %3826 = vmatpush1.bf16.msra.mxu0 %v6643_v4  ;;  %4058 = vmatpush1.bf16.msra.mxu1 %v6646_v44  ;;  %v6654_v44 = vld [vmem:[%s8890_s15 + $0x74] ss:$8 sps:$4 sm:$0xff]  }
 0x7f6   : > { %3931 = vmatprep.subr.bf16.mxu0 %v6651_v45  ;;  %4589 = vmatprep.subr.bf16.mxu1 %v6862_v56 }
 0x8ab   : > { %v3486_v48 = vpop.f32.mrb[28].mxu1  ;;  %v3545_v36 = vpop.f32.mrb[32].mxu0 }
 0x8ac   : > { %v6325_v50 = vpop.f32.mrb[29].mxu1  ;;  %v6333_v52 = vpop.f32.mrb[33].mxu0  ;;  %v3669_v11 = vsel %vm1399_vm2, %v3486_v48, 0.0  ;;  %v3675_v12 = vsel %vm1399_vm2, %v3545_v36, 0.0  ;;  %v6652_v48 = vld [vmem:[%s8890_s15 + $0x70] ss:$8 sps:$4 sm:$0xff]  }
 0x8ad   : > { %v3489_v28 = vpop.f32.mrb[30].mxu1  ;;  %v3548_v49 = vpop.f32.mrb[34].mxu0  ;;  %v6657_v36 = vld [vmem:[%s8890_s15 + $0x84] ss:$8 sps:$4 sm:$0xff]   ;;  %v6655_v50 = vld [vmem:[%s8890_s15 + $0x80] ss:$8 sps:$4 sm:$0xff]  }
 0x8ae   : > { %v6326_v54 = vpop.f32.mrb[31].mxu1  ;;  %v6334_v55 = vpop.f32.mrb[35].mxu0  ;;  %v6660_v52 = vld [vmem:[%s8890_s15 + $0x94] ss:$8 sps:$4 sm:$0xff]   ;;  %v6658_v28 = vld [vmem:[%s8890_s15 + $0x90] ss:$8 sps:$4 sm:$0xff]  }
 0x8af   : > { %v6663_v49 = vld [vmem:[%s8890_s15 + $0xa4] ss:$8 sps:$4 sm:$0xff]   ;;  %v6661_v54 = vld [vmem:[%s8890_s15 + $0xa0] ss:$8 sps:$4 sm:$0xff]   ;;  %v6666_v55 = vld [vmem:[%s8890_s15 + $0xb4] ss:$8 sps:$4 sm:$0xff]  }
 0x8b3   : > { %v3604_v60 = vpop.f32.mrb[32].mxu1  ;;  %v3663_v61 = vpop.f32.mrb[36].mxu0 }
 0x8b4   : > { %v3671_v51 = vrot.slane %v3604_v60, 7  ;;  %v3677_v47 = vrot.slane %v3663_v61, 7  ;;  %v6341_v0 = vpop.f32.mrb[33].mxu1  ;;  %v6349_v1 = vpop.f32.mrb[37].mxu0  ;;  %v6664_v60 = vld [vmem:[%s8890_s15 + $0xb0] ss:$8 sps:$4 sm:$0xff]  }
 0x8b5   : > { %v3607_v5 = vpop.f32.mrb[34].mxu1  ;;  %v3666_v6 = vpop.f32.mrb[38].mxu0  ;;  %v6669_v61 = vld [vmem:[%s8890_s15 + $0x124] ss:$8 sps:$4 sm:$0xff]   ;;  %v6670_v0 = vld [vmem:[%s8890_s15 + $0x130] ss:$8 sps:$4 sm:$0xff]  }
 0x8b6   : > { %v3673_v16 = vsel %vm1328_vm11, 0.0, %v3671_v51  ;;  %v3679_v46 = vsel %vm1328_vm11, 0.0, %v3677_v47  ;;  %v6342_v32 = vpop.f32.mrb[35].mxu1  ;;  %v6350_v18 = vpop.f32.mrb[39].mxu0  ;;  %v6667_v51 = vld [vmem:[%s8890_s15 + $0x120] ss:$8 sps:$4 sm:$0xff]  }
 0x8b7   : > { %v3674_v19 = vadd.f32 %v3673_v16, %v3669_v11  ;;  %v3680_v34 = vadd.f32 %v3679_v46, %v3675_v12  ;;  %v6672_v47 = vld [vmem:[%s8890_s15 + $0x134] ss:$8 sps:$4 sm:$0xff]   ;;  %v6675_v1 = vld [vmem:[%s8890_s15 + $0x144] ss:$8 sps:$4 sm:$0xff]   ;;  %v6676_v6 = vld [vmem:[%s8890_s15 + $0x150] ss:$8 sps:$4 sm:$0xff]  }
 0x8b8   : > { %v6678_v5 = vld [vmem:[%s8890_s15 + $0x154] ss:$8 sps:$4 sm:$0xff]   ;;  %v6681_v11 = vld [vmem:[%s8890_s15 + $0x164] ss:$8 sps:$4 sm:$0xff]   ;;  %v6679_v12 = vld [vmem:[%s8890_s15 + $0x160] ss:$8 sps:$4 sm:$0xff]  }
 0x8b9   : > { %v3688_v20 = vadd.f32 %v5778_v42, %v3674_v19  ;;  %v3693_v9 = vadd.f32 %v5778_v42, %v3680_v34  ;;  %v6673_v42 = vld [vmem:[%s8890_s15 + $0x140] ss:$8 sps:$4 sm:$0xff]   ;;  %v6684_v16 = vld [vmem:[%s8890_s15 + $0x174] ss:$8 sps:$4 sm:$0xff]   ;;  %v6682_v46 = vld [vmem:[%s8890_s15 + $0x170] ss:$8 sps:$4 sm:$0xff]  }
 0x8ba   : > { %v6685_v32 = vld [vmem:[%s8892_s17] sm:$0xff]   ;;  %v6686_v18 = vld [vmem:[%s8892_s17 + $0x68] sm:$0xff]   ;;  %v6688_v34 = vld [vmem:[%s8892_s17 + $0x70] sm:$0xff]  }
 0x8bb   : > { %vm3689_vm0 = vcmp.ge.f32.partialorder %v3688_v20, 0.0  ;;  %v3690_v21 = vmul.f32 0.01, %v3688_v20  ;;  %vm3694_vm8 = vcmp.ge.f32.partialorder %v3693_v9, 0.0  ;;  %v3695_v14 = vmul.f32 0.01, %v3693_v9 }
 0x8bc   : > { %v6687_v19 = vld [vmem:[%s8892_s17 + $0x8] sm:$0xff]  }
 0x8bd   : > { %v3691_v22 = vsel %vm3689_vm0, %v3688_v20, %v3690_v21  ;;  %v3696_v15 = vsel %vm3694_vm8, %v3693_v9, %v3695_v14  ;;  %v6689_v20 = vld [vmem:[%s8892_s17 + $0x10] sm:$0xff]   ;;  %v6690_v9 = vld [vmem:[%s8892_s17 + $0x78] sm:$0xff]   ;;  %v6692_v14 = vld [vmem:[%s8892_s17 + $0x80] sm:$0xff]  }
 0x8be   : > { %v3692_v23 = vpack.c.bf16 %v3691_v22, %v3691_v22  ;;  %v3697_v24 = vpack.c.bf16 %v3696_v15, %v3696_v15  ;;  %v6691_v21 = vld [vmem:[%s8892_s17 + $0x18] sm:$0xff]   ;;  %v6693_v22 = vld [vmem:[%s8892_s17 + $0x20] sm:$0xff]   ;;  %v6694_v15 = vld [vmem:[%s8892_s17 + $0x88] sm:$0xff]  }
 0x8c0   : > { %v3703_v3 = vshrl.u32 %v3692_v23, 16  ;;  %v3699_v25 = vshll.u32 %v3697_v24, 16  ;;  %v3707_v10 = vrot.slane %v3697_v24, 7  ;;  %v3710_v30 = vrot.slane %v3692_v23, 7 }
 0x8c1   : > { %v3714_v13 = vrot.slane %v3697_v24, 6  ;;  %v3716_v35 = vrot.slane %v3692_v23, 6  ;;  %v6696_v24 = vld [vmem:[%s8892_s17 + $0x90] sm:$0xff]  }
 0x8c2   : > { %v3705_v53 = vrot.slane %v3703_v3, 7  ;;  %v3719_v29 = vsel %vm7328_vm15, %v3692_v23, %v3699_v25  ;;  %v3711_v7 = vrot.slane %v3699_v25, 7  ;;  %v3713_v41 = vrot.slane %v3703_v3, 6  ;;  %v6695_v23 = vld [vmem:[%s8892_s17 + $0x28] sm:$0xff]   ;;  %v6697_v3 = vld [vmem:[%s8892_s17 + $0x30] sm:$0xff]  }
 0x8c3   : > { %v3717_v43 = vrot.slane %v3699_v25, 6  ;;  %v6698_v25 = vld [vmem:[%s8892_s17 + $0x98] sm:$0xff]  }
 0x8c4   : > { %v3722_v57 = vsel %vm1328_vm11, %v3719_v29, %v3705_v53  ;;  %v6699_v53 = vld [vmem:[%s8892_s17 + $0x38] sm:$0xff]   ;;  %v6701_v29 = vld [vmem:[%s8892_s17 + $0x40] sm:$0xff]  }
 0x8c5   : > { %v3724_v37 = vsel %vm7333_vm3, %v3722_v57, %v3707_v10  ;;  %v6700_v10 = vld [vmem:[%s8892_s17 + $0xa0] sm:$0xff]   ;;  %v6703_v57 = vld [vmem:[%s8892_s17 + $0x48] sm:$0xff]  }
 0x8c6   : > { %v3727_v33 = vsel %vm1352_vm13, %v3724_v37, %v3710_v30  ;;  %v6702_v30 = vld [vmem:[%s8892_s17 + $0xa8] sm:$0xff]   ;;  %v6705_v37 = vld [vmem:[%s8892_s17 + $0x50] sm:$0xff]  }
 0x8c7   : > { %v3729_v38 = vsel %vm7348_vm12, %v3727_v33, %v3711_v7  ;;  %v6704_v7 = vld [vmem:[%s8892_s17 + $0xb0] sm:$0xff]   ;;  %v6707_v33 = vld [vmem:[%s8892_s17 + $0x58] sm:$0xff]  }
 0x8c8   : > { %v3732_v31 = vsel %vm8982_vm14, %v3729_v38, %v3713_v41  ;;  %v6706_v41 = vld [vmem:[%s8892_s17 + $0xb8] sm:$0xff]   ;;  %v6709_v38 = vld [vmem:[%s8892_s17 + $0x60] sm:$0xff]  }
 0x8c9   : > { %v3734_v26 = vsel %vm7363_vm1, %v3732_v31, %v3714_v13  ;;  %v6708_v13 = vld [vmem:[%s8892_s17 + $0xc0] sm:$0xff]  }
 0x8ca   : > { %v3737_v4 = vsel %vm1399_vm2, %v3734_v26, %v3716_v35  ;;  %v6710_v35 = vld [vmem:[%s8892_s17 + $0xc8] sm:$0xff]   ;;  %v4250_v31 = vld [vmem:[%s8891_s16] sm:$0x3] }
 0x8cb   : > { %v3739_v45 = vsel %vm7382_vm9, %v3737_v4, %v3717_v43 }
 0x8cc   : > { %5791 = vmatmul.mubr.msk.bf16.vlgmr.msra.gmra.mrb[40].mxu0 %vm1694_vm10, %v3739_v45  ;;  %5841 = vmatmul.mubr.msk.bf16.vlgmr.msra.gmra.mrb[36].mxu1 %vm1694_vm10, %v3739_v45 }
 0x8cd   : > { %3932 = vmatpush1.bf16.msra.mxu0 %v6649_v39  ;;  %3963 = vmatprep.mubr.bf16.mxu0 %v6862_v56 }
 0x8ce   : > { %3933 = vmatprep.subr.bf16.mxu0 %v6654_v44  ;;  %4590 = vmatpush1.bf16.msra.mxu1 %v6685_v32 }
 0x8cf   : > { %4591 = vmatprep.subr.bf16.mxu1 %v6862_v56 }
 0x8d1   : > { %3934 = vmatpush1.bf16.msra.mxu0 %v6652_v48 }
 0x8d2   : > { %3935 = vmatprep.subr.bf16.mxu0 %v6657_v36  ;;  %4592 = vmatpush1.bf16.msra.mxu1 %v6687_v19 }
 0x8d3   : > { %4593 = vmatprep.subr.bf16.mxu1 %v6862_v56 }
 0x8d5   : > { %3936 = vmatpush1.bf16.msra.mxu0 %v6655_v50 }
 0x8d6   : > { %3937 = vmatprep.subr.bf16.mxu0 %v6660_v52  ;;  %4594 = vmatpush1.bf16.msra.mxu1 %v6689_v20  ;;  %v8377_v52 = vrot.slane %v4250_v31, %v868_v62 }
 0x8d7   : > { %4595 = vmatprep.subr.bf16.mxu1 %v6862_v56 }
 0x8d9   : > { %3938 = vmatpush1.bf16.msra.mxu0 %v6658_v28 }
 0x8da   : > { %3939 = vmatprep.subr.bf16.mxu0 %v6663_v49  ;;  %4596 = vmatpush1.bf16.msra.mxu1 %v6691_v21 }
 0x8db   : > { %4597 = vmatprep.subr.bf16.mxu1 %v6862_v56 }
 0x8dd   : > { %3940 = vmatpush1.bf16.msra.mxu0 %v6661_v54 }
 0x8de   : > { %3941 = vmatprep.subr.bf16.mxu0 %v6666_v55  ;;  %4598 = vmatpush1.bf16.msra.mxu1 %v6693_v22 }
 0x8df   : > { %4599 = vmatprep.subr.bf16.mxu1 %v6862_v56 }
 0x8e1   : > { %3942 = vmatpush1.bf16.msra.mxu0 %v6664_v60 }
 0x8e2   : > { %4163 = vmatprep.subr.bf16.mxu0 %v6669_v61  ;;  %4600 = vmatpush1.bf16.msra.mxu1 %v6695_v23 }
 0x8e3   : > { %4601 = vmatprep.subr.bf16.mxu1 %v6862_v56 }
 0x8e4   : > { %5816 = vmatmul.mubr.msk.bf16.vlgmr.msra.gmra.mrb[44].mxu0 %vm1694_vm10, %v3739_v45 }
 0x8e5   : > { %4164 = vmatpush1.bf16.msra.mxu0 %v6667_v51  ;;  %4195 = vmatprep.mubr.bf16.mxu0 %v6862_v56 }
 0x8e6   : > { %4165 = vmatprep.subr.bf16.mxu0 %v6672_v47  ;;  %4602 = vmatpush1.bf16.msra.mxu1 %v6697_v3 }
 0x8e7   : > { %4603 = vmatprep.subr.bf16.mxu1 %v6862_v56 }
 0x8e9   : > { %4166 = vmatpush1.bf16.msra.mxu0 %v6670_v0 }
 0x8ea   : > { %4167 = vmatprep.subr.bf16.mxu0 %v6675_v1  ;;  %4604 = vmatpush1.bf16.msra.mxu1 %v6699_v53 }
 0x8eb   : > { %4605 = vmatprep.subr.bf16.mxu1 %v6862_v56 }
 0x8ed   : > { %4168 = vmatpush1.bf16.msra.mxu0 %v6673_v42 }
 0x8ee   : > { %4169 = vmatprep.subr.bf16.mxu0 %v6678_v5  ;;  %4606 = vmatpush1.bf16.msra.mxu1 %v6701_v29 }
 0x8ef   : > { %4607 = vmatprep.subr.bf16.mxu1 %v6862_v56 }
 0x8f1   : > { %4170 = vmatpush1.bf16.msra.mxu0 %v6676_v6 }
 0x8f2   : > { %4171 = vmatprep.subr.bf16.mxu0 %v6681_v11  ;;  %4608 = vmatpush1.bf16.msra.mxu1 %v6703_v57 }
 0x8f3   : > { %4609 = vmatprep.subr.bf16.mxu1 %v6862_v56 }
 0x8f5   : > { %4172 = vmatpush1.bf16.msra.mxu0 %v6679_v12 }
 0x8f6   : > { %4173 = vmatprep.subr.bf16.mxu0 %v6684_v16  ;;  %4610 = vmatpush1.bf16.msra.mxu1 %v6705_v37 }
 0x8f7   : > { %4611 = vmatprep.subr.bf16.mxu1 %v6862_v56 }
 0x8f9   : > { %4174 = vmatpush1.bf16.msra.mxu0 %v6682_v46 }
 0x8fa   : > { %4746 = vmatprep.subr.bf16.mxu0 %v6862_v56  ;;  %4612 = vmatpush1.bf16.msra.mxu1 %v6707_v33 }
 0x8fb   : > { %4613 = vmatprep.subr.bf16.mxu1 %v6862_v56 }
 0x8fc   : > { %5866 = vmatmul.mubr.msk.bf16.vlgmr.msra.gmra.mrb[48].mxu0 %vm1694_vm10, %v3739_v45  ;;  %v8373_v45 = vrot.slane %v4250_v31, %v864_v59 }
 0x8fd   : > { %4747 = vmatpush1.bf16.msra.mxu0 %v6686_v18 }
 0x8fe   : > { %4748 = vmatprep.subr.bf16.mxu0 %v6862_v56  ;;  %4614 = vmatpush1.bf16.msra.mxu1 %v6709_v38 }
 0x8ff   : > { %4915 = vmatprep.subr.bf16.mxu1 %v6862_v56 }
 0x901   : > { %4749 = vmatpush1.bf16.msra.mxu0 %v6688_v34 }
 0x902   : > { %4750 = vmatprep.subr.bf16.mxu0 %v6862_v56 }
 0x905   : > { %4751 = vmatpush1.bf16.msra.mxu0 %v6690_v9 }
 0x906   : > { %4752 = vmatprep.subr.bf16.mxu0 %v6862_v56 }
 0x909   : > { %4753 = vmatpush1.bf16.msra.mxu0 %v6692_v14 }
 0x90a   : > { %4754 = vmatprep.subr.bf16.mxu0 %v6862_v56 }
 0x90d   : > { %4755 = vmatpush1.bf16.msra.mxu0 %v6694_v15 }
 0x90e   : > { %4756 = vmatprep.subr.bf16.mxu0 %v6862_v56 }
 0x911   : > { %4757 = vmatpush1.bf16.msra.mxu0 %v6696_v24 }
 0x912   : > { %4758 = vmatprep.subr.bf16.mxu0 %v6862_v56 }
 0x915   : > { %4759 = vmatpush1.bf16.msra.mxu0 %v6698_v25 }
 0x916   : > { %4760 = vmatprep.subr.bf16.mxu0 %v6862_v56 }
 0x919   : > { %4761 = vmatpush1.bf16.msra.mxu0 %v6700_v10 }
 0x91a   : > { %4762 = vmatprep.subr.bf16.mxu0 %v6862_v56 }
 0x91d   : > { %4763 = vmatpush1.bf16.msra.mxu0 %v6702_v30 }
 0x91e   : > { %4764 = vmatprep.subr.bf16.mxu0 %v6862_v56 }
 0x921   : > { %4765 = vmatpush1.bf16.msra.mxu0 %v6704_v7 }
 0x922   : > { %4766 = vmatprep.subr.bf16.mxu0 %v6862_v56 }
 0x925   : > { %4767 = vmatpush1.bf16.msra.mxu0 %v6706_v41 }
 0x926   : > { %4768 = vmatprep.subr.bf16.mxu0 %v6862_v56 }
 0x929   : > { %4769 = vmatpush1.bf16.msra.mxu0 %v6708_v13 }
 0x92a   : > { %4770 = vmatprep.subr.bf16.mxu0 %v6862_v56 }
 0x92d   : > { %4771 = vmatpush1.bf16.msra.mxu0 %v6710_v35 }
 0x92e   : > { %5083 = vmatprep.subr.bf16.mxu0 %v6862_v56 }
 0x99f   : > { %v3849_v39 = vpop.f32.mrb[40].mxu0  ;;  %v4081_v43 = vpop.f32.mrb[36].mxu1 }
 0x9a0   : > { %v4212_v26 = vrot.slane %v4081_v43, 7  ;;  %v3851_v4 = vpop.f32.mrb[41].mxu0  ;;  %v4083_v44 = vpop.f32.mrb[37].mxu1 }
 0x9a1   : > { %v4213_v48 = vrot.slane %v4083_v44, 7  ;;  %v3853_v36 = vpop.f32.mrb[42].mxu0  ;;  %v4085_v50 = vpop.f32.mrb[38].mxu1 }
 0x9a2   : > { %v4222_v28 = vsel %vm1328_vm11, 0.0, %v4212_v26  ;;  %v4214_v49 = vrot.slane %v4085_v50, 7  ;;  %v3855_v54 = vpop.f32.mrb[43].mxu0  ;;  %v4087_v55 = vpop.f32.mrb[39].mxu1  ;;  %v4206_v59 = vsel %vm1352_vm13, %v3853_v36, 0.0 }
 0x9a3   : > { %v4224_v60 = vadd.f32 %v4222_v28, %v3849_v39  ;;  %v4223_v61 = vsel %vm1328_vm11, 0.0, %v4213_v48  ;;  %v4216_v51 = vrot.slane %v4087_v55, 7  ;;  %v4207_v58 = vsel %vm1352_vm13, %v3855_v54, 0.0 }
 0x9a4   : > { %v4225_v47 = vadd.f32 %v4223_v61, %v3851_v4  ;;  %v4215_v0 = vsel %vm1328_vm11, %v4212_v26, %v4214_v49 }
 0x9a5   : > { %v4262_v1 = vadd.f32 %v8373_v45, %v4224_v60  ;;  %v4226_v42 = vadd.f32 %v4215_v0, %v4206_v59  ;;  %v4217_v62 = vsel %vm1328_vm11, %v4213_v48, %v4216_v51 }
 0x9a6   : > { %v4263_v5 = vadd.f32 %v8377_v52, %v4225_v47  ;;  %v4227_v6 = vadd.f32 %v4217_v62, %v4207_v58 }
 0x9a7   : > { %v4270_v11 = vmul.f32 0.01, %v4262_v1  ;;  %v4264_v12 = vadd.f32 %v8373_v45, %v4226_v42  ;;  %vm4266_vm10 = vcmp.ge.f32.partialorder %v4262_v1, 0.0 }
 0x9a8   : > { %v4271_v16 = vmul.f32 0.01, %v4263_v5  ;;  %v4265_v46 = vadd.f32 %v8377_v52, %v4227_v6  ;;  %vm4267_vm7 = vcmp.ge.f32.partialorder %v4263_v5, 0.0 }
 0x9a9   : > { %vm4268_vm6 = vcmp.ge.f32.partialorder %v4264_v12, 0.0  ;;  %v4272_v32 = vmul.f32 0.01, %v4264_v12  ;;  %v4274_v19 = vsel %vm4266_vm10, %v4262_v1, %v4270_v11 }
 0x9aa   : > { %vm4269_vm4 = vcmp.ge.f32.partialorder %v4265_v46, 0.0  ;;  %v4273_v18 = vmul.f32 0.01, %v4265_v46  ;;  %v4275_v20 = vsel %vm4267_vm7, %v4263_v5, %v4271_v16  ;;  %vm4408_vm7 = vsmask.f32 5376 }
 0x9ab   : > { %v4276_v34 = vsel %vm4268_vm6, %v4264_v12, %v4272_v32  ;;  %vm4432_vm6 = vcmask 1047552  }
 0x9ac   : > { %v8389_v9 = vpack.c.bf16 %v4276_v34, %v4274_v19  ;;  %v4277_v21 = vsel %vm4269_vm4, %v4265_v46, %v4273_v18  ;;  %vm4582_vm4 = vcmask 654336  }
 0x9ad   : > { %v8391_v14 = vpack.c.bf16 %v4277_v21, %v4275_v20 }
 0x9ae   : > { %v8402_v48 = vshrl.u32 %v8389_v9, 16  ;;  %v4322_v36 = vrot.slane %v8389_v9, 7  ;;  %v4334_v49 = vrot.slane %v8389_v9, 6  ;;  %v4346_v54 = vrot.slane %v8389_v9, 5 }
 0x9af   : > { %v8410_v61 = vshrl.u32 %v8391_v14, 16  ;;  %v4323_v47 = vrot.slane %v8391_v14, 7  ;;  %v4347_v0 = vrot.slane %v8391_v14, 5  ;;  %v4437_v19 = vrot.slane %v8391_v14, 4 }
 0x9b0   : > { %v4309_v58 = vrot.slane %v8402_v48, 7  ;;  %v4340_v11 = vrot.slane %v8402_v48, 5  ;;  %v4451_v20 = vrot.slane %v8391_v14, 3 }
 0x9b1   : > { %v4313_v16 = vrot.slane %v8410_v61, 7  ;;  %v4329_v46 = vrot.slane %v8410_v61, 6  ;;  %v4341_v32 = vrot.slane %v8410_v61, 5  ;;  %v4445_v34 = vrot.slane %v8410_v61, 3 }
 0x9b7   : > { %v3965_v22 = vpop.f32.mrb[44].mxu0 }
 0x9b8   : > { %v3967_v15 = vpop.f32.mrb[45].mxu0 }
 0x9b9   : > { %v3969_v23 = vpop.f32.mrb[46].mxu0 }
 0x9ba   : > { %v3971_v24 = vpop.f32.mrb[47].mxu0  ;;  %v4228_v13 = vsel %vm1352_vm13, %v3969_v23, 0.0  ;;  %v4450_v23 = vrot.slane %v8389_v9, 3 }
 0x9bb   : > { %v4229_v31 = vsel %vm1352_vm13, %v3971_v24, 0.0 }
 0x9cf   : > { %v4197_v3 = vpop.f32.mrb[48].mxu0 }
 0x9d0   : > { %v4234_v25 = vrot.slane %v4197_v3, 7  ;;  %v4199_v53 = vpop.f32.mrb[49].mxu0 }
 0x9d1   : > { %v4235_v10 = vrot.slane %v4199_v53, 7  ;;  %v4201_v29 = vpop.f32.mrb[50].mxu0 }
 0x9d2   : > { %v4244_v30 = vsel %vm1328_vm11, 0.0, %v4234_v25  ;;  %v4236_v57 = vrot.slane %v4201_v29, 7  ;;  %v4203_v7 = vpop.f32.mrb[51].mxu0 }
 0x9d3   : > { %v4246_v37 = vadd.f32 %v4244_v30, %v3965_v22  ;;  %v4245_v41 = vsel %vm1328_vm11, 0.0, %v4235_v10  ;;  %v4238_v33 = vrot.slane %v4203_v7, 7  ;;  %v4436_v22 = vrot.slane %v8389_v9, 4 }
 0x9d4   : > { %v4247_v38 = vadd.f32 %v4245_v41, %v3967_v15  ;;  %v4237_v35 = vsel %vm1328_vm11, %v4234_v25, %v4236_v57  ;;  %v4444_v15 = vrot.slane %v8402_v48, 3 }
 0x9d5   : > { %v4280_v39 = vadd.f32 %v8373_v45, %v4246_v37  ;;  %v4248_v43 = vadd.f32 %v4237_v35, %v4228_v13  ;;  %v4239_v26 = vsel %vm1328_vm11, %v4235_v10, %v4238_v33 }
 0x9d6   : > { %v4281_v4 = vadd.f32 %v8377_v52, %v4247_v38  ;;  %v4249_v44 = vadd.f32 %v4239_v26, %v4229_v31 }
 0x9d7   : > { %v4288_v50 = vmul.f32 0.01, %v4280_v39  ;;  %v4282_v28 = vadd.f32 %v8373_v45, %v4248_v43  ;;  %vm4284_vm0 = vcmp.ge.f32.partialorder %v4280_v39, 0.0  ;;  %v4335_v45 = vrot.slane %v8391_v14, 6 }
 0x9d8   : > { %v4289_v55 = vmul.f32 0.01, %v4281_v4  ;;  %v4283_v60 = vadd.f32 %v8377_v52, %v4249_v44  ;;  %vm4285_vm8 = vcmp.ge.f32.partialorder %v4281_v4, 0.0  ;;  %v4328_v52 = vrot.slane %v8402_v48, 6 }
 0x9d9   : > { %vm4286_vm14 = vcmp.ge.f32.partialorder %v4282_v28, 0.0  ;;  %v4290_v51 = vmul.f32 0.01, %v4282_v28  ;;  %v4292_v1 = vsel %vm4284_vm0, %v4280_v39, %v4288_v50  ;;  %vm8983_vm0 = vcmask 1042432  }
 0x9da   : > { %vm4287_vm10 = vcmp.ge.f32.partialorder %v4283_v60, 0.0  ;;  %v4291_v59 = vmul.f32 0.01, %v4283_v60  ;;  %v4293_v62 = vsel %vm4285_vm8, %v4281_v4, %v4289_v55  ;;  %vm8984_vm8 = vmmov %vm8983_vm0 }
 0x9db   : > { %v4294_v42 = vsel %vm4286_vm14, %v4282_v28, %v4290_v51  ;;  %vm8985_vm14 = vcmask 1045504  }
 0x9dc   : > { %v8417_v5 = vpack.c.bf16 %v4294_v42, %v4292_v1  ;;  %v4295_v6 = vsel %vm4287_vm10, %v4283_v60, %v4291_v59  ;;  %vm8485_vm10 = vmand %vm8985_vm14, %vm4408_vm7 }
 0x9dd   : > { %v8420_v12 = vpack.c.bf16 %v4295_v6, %v4293_v62  ;;  %v6740_v62 = vld [vmem:[%s8892_s17 + $0x1b8] sm:$0xff]  }
 0x9de   : > { %v8426_v18 = vshll.u32 %v8417_v5, 16  ;;  %v4316_v24 = vrot.slane %v8417_v5, 7  ;;  %v4330_v53 = vrot.slane %v8417_v5, 6  ;;  %v4446_v59 = vrot.slane %v8417_v5, 3 }
 0x9df   : > { %v8432_v21 = vshll.u32 %v8420_v12, 16  ;;  %v4317_v3 = vrot.slane %v8420_v12, 7  ;;  %v4331_v25 = vrot.slane %v8420_v12, 6  ;;  %v4343_v10 = vrot.slane %v8420_v12, 5 }
 0x9e0   : > { %v4324_v30 = vrot.slane %v8426_v18, 7  ;;  %v4336_v57 = vrot.slane %v8426_v18, 6  ;;  %v4358_v41 = vsel %vm7328_vm15, %v8389_v9, %v8426_v18  ;;  %v4447_v31 = vrot.slane %v8420_v12, 3 }
 0x9e1   : > { %v4359_v29 = vsel %vm7328_vm15, %v8391_v14, %v8432_v21  ;;  %v4325_v7 = vrot.slane %v8432_v21, 7  ;;  %v4441_v33 = vrot.slane %v8432_v21, 4  ;;  %v4337_v13 = vrot.slane %v8432_v21, 6 }
 0x9e2   : > { %v4366_v37 = vsel %vm1328_vm11, %v4359_v29, %v4313_v16  ;;  %v4362_v35 = vsel %vm1328_vm11, %v4358_v41, %v4309_v58  ;;  %v4440_v4 = vrot.slane %v8426_v18, 4  ;;  %v4453_v28 = vrot.slane %v8432_v21, 3  ;;  %v6712_v29 = vld [vmem:[%s8892_s17 + $0x138] sm:$0xff]   ;;  %v6718_v41 = vld [vmem:[%s8892_s17 + $0x150] sm:$0xff]  }
 0x9e3   : > { %v4369_v38 = vsel %vm7333_vm3, %v4366_v37, %v4317_v3  ;;  %v4368_v43 = vsel %vm7333_vm3, %v4362_v35, %v4316_v24  ;;  %v4457_v26 = vsel %vm7328_vm15, %v4437_v19, %v4441_v33  ;;  %v4349_v24 = vrot.slane %v8432_v21, 5  ;;  %v6717_v37 = vld [vmem:[%s8892_s17 + $0xe8] sm:$0xff]   ;;  %v6719_v33 = vld [vmem:[%s8892_s17 + $0xf0] sm:$0xff]   ;;  %v6722_v35 = vld [vmem:[%s8892_s17 + $0x160] sm:$0xff]  }
 0x9e4   : > { %v4376_v39 = vsel %vm1352_vm13, %v4369_v38, %v4323_v47  ;;  %v4372_v50 = vsel %vm1352_vm13, %v4368_v43, %v4322_v36  ;;  %v4464_v55 = vsel %vm1328_vm11, %v4457_v26, %v4445_v34  ;;  %v4456_v58 = vsel %vm7328_vm15, %v4436_v22, %v4440_v4  ;;  %v6721_v38 = vld [vmem:[%s8892_s17 + $0xf8] sm:$0xff]   ;;  %v6725_v43 = vld [vmem:[%s8892_s17 + $0x108] sm:$0xff]   ;;  %v6726_v26 = vld [vmem:[%s8892_s17 + $0x170] sm:$0xff]  }
 0x9e5   : > { %v4379_v44 = vsel %vm7348_vm12, %v4376_v39, %v4325_v7  ;;  %v4378_v51 = vsel %vm7348_vm12, %v4372_v50, %v4324_v30  ;;  %v4467_v47 = vsel %vm7333_vm3, %v4464_v55, %v4447_v31  ;;  %v4452_v34 = vrot.slane %v8426_v18, 3  ;;  %v6714_v30 = vld [vmem:[%s8892_s17 + $0x140] sm:$0xff]   ;;  %v6716_v7 = vld [vmem:[%s8892_s17 + $0x148] sm:$0xff]   ;;  %v6727_v4 = vld [vmem:[%s8892_s17 + $0x110] sm:$0xff]  }
 0x9e6   : > { %v4386_v60 = vsel %vm8983_vm0, %v4379_v44, %v4329_v46  ;;  %v4382_v42 = vsel %vm8984_vm8, %v4378_v51, %v4328_v52  ;;  %v4474_v36 = vsel %vm1352_vm13, %v4467_v47, %v4451_v20  ;;  %v4460_v52 = vsel %vm1328_vm11, %v4456_v58, %v4444_v15  ;;  %v6723_v31 = vld [vmem:[%s8892_s17 + $0x100] sm:$0xff]   ;;  %v6724_v39 = vld [vmem:[%s8892_s17 + $0x168] sm:$0xff]   ;;  %v6728_v44 = vld [vmem:[%s8892_s17 + $0x178] sm:$0xff]  }
 0x9e7   : > { %v4389_v1 = vsel %vm7363_vm1, %v4386_v60, %v4331_v25  ;;  %v4388_v16 = vsel %vm7363_vm1, %v4382_v42, %v4330_v53  ;;  %v8494_v46 = vsel %vm7348_vm12, %v4474_v36, %v4453_v28  ;;  %vm8988_vm15 = vsmask.f32 6400  ;;  %v6729_v50 = vld [vmem:[%s8892_s17 + $0x118] sm:$0xff]   ;;  %v6730_v28 = vld [vmem:[%s8892_s17 + $0x180] sm:$0xff]   ;;  %v6732_v60 = vld [vmem:[%s8892_s17 + $0x188] sm:$0xff]  }
 0x9e8   : > { %v4396_v6 = vsel %vm1399_vm2, %v4389_v1, %v4335_v45  ;;  %v4392_v19 = vsel %vm1399_vm2, %v4388_v16, %v4334_v49  ;;  %v4466_v45 = vsel %vm7333_vm3, %v4460_v52, %v4446_v59  ;;  %vm8989_vm1 = vcmask 1046528   ;;  %v6731_v55 = vld [vmem:[%s8892_s17 + $0x120] sm:$0xff]   ;;  %v6733_v51 = vld [vmem:[%s8892_s17 + $0x128] sm:$0xff]   ;;  %v6734_v47 = vld [vmem:[%s8892_s17 + $0x190] sm:$0xff]  }
 0x9e9   : > { %v4399_v63 = vsel %vm7382_vm9, %v4396_v6, %v4337_v13  ;;  %vm8507_vm7 = vmand %vm8989_vm1, %vm8988_vm15  ;;  %vm8992_vm0 = vcmask 1044480   ;;  %v4342_v22 = vrot.slane %v8417_v5, 5  ;;  %v4398_v15 = vsel %vm7382_vm9, %v4392_v19, %v4336_v57  ;;  %v6715_v57 = vld [vmem:[%s8892_s17 + $0xe0] sm:$0xff]   ;;  %v6720_v13 = vld [vmem:[%s8892_s17 + $0x158] sm:$0xff]  }
 0x9ea   : > { %v4406_v20 = vsel %vm8992_vm0, %v4399_v63, %v4341_v32  ;;  %v4470_v49 = vsel %vm1352_vm13, %v4466_v45, %v4450_v23  ;;  %vm8993_vm3 = vmmov %vm8992_vm0  ;;  %vm8994_vm8 = vsmask.f32 7424  ;;  %v4353_v32 = vrot.slane %v8410_v61, 4  ;;  %v6735_v59 = vld [vmem:[%s8892_s17 + $0x130] sm:$0xff]   ;;  %v6736_v1 = vld [vmem:[%s8892_s17 + $0x198] sm:$0xff]  }
 0x9eb   : > { %v4411_v2 = vsel %vm8485_vm10, %v4406_v20, %v4343_v10  ;;  %v4402_v3 = vsel %vm8993_vm3, %v4398_v15, %v4340_v11  ;;  %v8524_v25 = vsel %vm7348_vm12, %v4470_v49, %v4452_v34  ;;  %vm8528_vm14 = vmand %vm4432_vm6, %vm8994_vm8  ;;  %vm8997_vm9 = vcmask 1045504   ;;  %v6737_v42 = vld [vmem:[%s8892_s17 + $0x1a0] sm:$0xff]   ;;  %v6738_v36 = vld [vmem:[%s8892_s17 + $0x1a8] sm:$0xff]  }
 0x9ec   : > { %v4419_v21 = vsel %vm8997_vm9, %v4411_v2, %v4347_v0  ;;  %v4348_v23 = vrot.slane %v8426_v18, 5  ;;  %v4410_v11 = vsel %vm8485_vm10, %v4402_v3, %v4342_v22  ;;  %v4355_v8 = vrot.slane %v8420_v12, 4  ;;  %vm8998_vm12 = vmmov %vm8997_vm9  ;;  %v6711_v12 = vld [vmem:[%s8892_s17 + $0xd0] sm:$0xff]   ;;  %v6741_v6 = vld [vmem:[%s8892_s17 + $0x1c0] sm:$0xff]  }
 0x9ed   : > { %v4423_v53 = vsel %vm8507_vm7, %v4419_v21, %v4349_v24  ;;  %v4352_v10 = vrot.slane %v8402_v48, 4  ;;  %v4415_v61 = vsel %vm8998_vm12, %v4410_v11, %v4346_v54  ;;  %vm8999_vm6 = vmmov %vm8989_vm1  ;;  %v4354_v0 = vrot.slane %v8417_v5, 4  ;;  %v6713_v5 = vld [vmem:[%s8892_s17 + $0xd8] sm:$0xff]   ;;  %v6739_v58 = vld [vmem:[%s8892_s17 + $0x1b0] sm:$0xff]  }
 0x9ee   : > { %v4430_v14 = vsel %vm8999_vm6, %v4423_v53, %v4353_v32  ;;  %v4422_v18 = vsel %vm8507_vm7, %v4415_v61, %v4348_v23  ;;  %vm9000_vm10 = vmmov %vm8989_vm1  ;;  %v6742_v16 = vld [vmem:[%s8892_s17 + $0x1c8] sm:$0xff]   ;;  %v6743_v52 = vld [vmem:[%s8892_s17 + $0x1d0] sm:$0xff]   ;;  %vm5337_vm15 = vcmask 238592  }
 0x9ef   : > { %v8558_v9 = vsel %vm8528_vm14, %v4430_v14, %v4355_v8  ;;  %v4426_v48 = vsel %vm9000_vm10, %v4422_v18, %v4352_v10  ;;  %v6744_v63 = vld [vmem:[%s8892_s17 + $0x1d8] sm:$0xff]   ;;  %v6745_v19 = vld [vmem:[%s8892_s17 + $0x1e0] sm:$0xff]   ;;  %v6746_v34 = vld [vmem:[%s8892_s17 + $0x1e8] sm:$0xff]  }
 0x9f0   : > { %5880 = vmatprep.mubr.msk.bf16.mxu1 %vm4582_vm4, %v8558_v9  ;;  %5921 = vmatprep.mubr.msk.bf16.mxu0 %vm4582_vm4, %v8558_v9  ;;  %v8567_v54 = vsel %vm8528_vm14, %v4426_v48, %v4354_v0  ;;  %v6747_v45 = vld [vmem:[%s8892_s17 + $0x1f0] sm:$0xff]   ;;  %v6749_v20 = vld [vmem:[%s8892_s17 + $0x200] sm:$0xff]   ;;  %v5340_v15 = vld [vmem:[%s7048_s19 + $0x8] sm:$0xff] }
 0x9f1   : > { %4622 = vmatmul.mubr.bf16.vlgmr.msra.gmra.mrb[40].mxu1 %v8567_v54  ;;  %4779 = vmatmul.mubr.bf16.vlgmr.msra.gmra.mrb[52].mxu0 %v8567_v54  ;;  %v5339_v22 = vld [vmem:[%s7048_s19] sm:$0xff]  ;;  %v5342_v49 = vld [vmem:[%s7048_s19 + $0x18] sm:$0x3]  ;;  %vm5344_vm7 = vcmp.ne.f32.partialorder %v5340_v15, 0.0 }
 0x9f2   : > { %4916 = vmatpush1.bf16.msra.mxu1 %v6711_v12  ;;  %5084 = vmatpush1.bf16.msra.mxu0 %v6712_v29  ;;  %vm5343_vm1 = vcmp.ne.f32.partialorder %v5339_v22, 0.0  ;;  %vm5346_vm0 = vcmp.ne.f32.partialorder %v5342_v49, 0.0  ;;  %v6048_v24 = vsel %vm5344_vm7, 1.0, %v6855_v40 }
 0x9f3   : > { %5881 = vmatprep.mubr.msk.bf16.mxu1 %vm4582_vm4, %v8494_v46  ;;  %5922 = vmatprep.mubr.msk.bf16.mxu0 %vm4582_vm4, %v8494_v46  ;;  %v6050_v3 = vsel %vm5346_vm0, 1.0, %v6855_v40  ;;  %5356 = vst.msk [vmem:[%s8747_s18 + $0x8] sm:$0xff] %vm800_vm5, %v6048_v24 }
 0x9f4   : > { %4917 = vmatprep.subr.bf16.mxu1 %v6862_v56  ;;  %5085 = vmatprep.subr.bf16.mxu0 %v6862_v56 }
 0x9f6   : > { %4918 = vmatpush1.bf16.msra.mxu1 %v6713_v5  ;;  %5086 = vmatpush1.bf16.msra.mxu0 %v6714_v30 }
 0x9f7   : > { %4919 = vmatprep.subr.bf16.mxu1 %v6862_v56  ;;  %5087 = vmatprep.subr.bf16.mxu0 %v6862_v56 }
 0x9f9   : > { %4630 = vmatmul.mubr.bf16.gmra.mrb[44].mxu1 %v8524_v25  ;;  %4787 = vmatmul.mubr.bf16.gmra.mrb[56].mxu0 %v8524_v25 }
 0x9fa   : > { %4920 = vmatpush1.bf16.msra.mxu1 %v6715_v57  ;;  %5088 = vmatpush1.bf16.msra.mxu0 %v6716_v7 }
 0x9fb   : > { %5962 = vmatprep.mubr.msk.bf16.mxu1 %vm4582_vm4, %v8558_v9  ;;  %6003 = vmatprep.mubr.msk.bf16.mxu0 %vm4582_vm4, %v8558_v9 }
 0x9fc   : > { %4921 = vmatprep.subr.bf16.mxu1 %v6862_v56  ;;  %5089 = vmatprep.subr.bf16.mxu0 %v6862_v56 }
 0x9fe   : > { %4922 = vmatpush1.bf16.msra.mxu1 %v6717_v37  ;;  %5090 = vmatpush1.bf16.msra.mxu0 %v6718_v41 }
 0x9ff   : > { %4923 = vmatprep.subr.bf16.mxu1 %v6862_v56  ;;  %5091 = vmatprep.subr.bf16.mxu0 %v6862_v56 }
 0xa02   : > { %4924 = vmatpush1.bf16.msra.mxu1 %v6719_v33  ;;  %5092 = vmatpush1.bf16.msra.mxu0 %v6720_v13 }
 0xa03   : > { %4925 = vmatprep.subr.bf16.mxu1 %v6862_v56  ;;  %5093 = vmatprep.subr.bf16.mxu0 %v6862_v56 }
 0xa06   : > { %4926 = vmatpush1.bf16.msra.mxu1 %v6721_v38  ;;  %5094 = vmatpush1.bf16.msra.mxu0 %v6722_v35 }
 0xa07   : > { %4927 = vmatprep.subr.bf16.mxu1 %v6862_v56  ;;  %5095 = vmatprep.subr.bf16.mxu0 %v6862_v56 }
 0xa0a   : > { %4928 = vmatpush1.bf16.msra.mxu1 %v6723_v31  ;;  %5096 = vmatpush1.bf16.msra.mxu0 %v6724_v39 }
 0xa0b   : > { %4929 = vmatprep.subr.bf16.mxu1 %v6862_v56  ;;  %5097 = vmatprep.subr.bf16.mxu0 %v6862_v56 }
 0xa0e   : > { %4930 = vmatpush1.bf16.msra.mxu1 %v6725_v43  ;;  %5098 = vmatpush1.bf16.msra.mxu0 %v6726_v26 }
 0xa0f   : > { %4931 = vmatprep.subr.bf16.mxu1 %v6862_v56  ;;  %5099 = vmatprep.subr.bf16.mxu0 %v6862_v56 }
 0xa12   : > { %4932 = vmatpush1.bf16.msra.mxu1 %v6727_v4  ;;  %5100 = vmatpush1.bf16.msra.mxu0 %v6728_v44 }
 0xa13   : > { %4933 = vmatprep.subr.bf16.mxu1 %v6862_v56  ;;  %5101 = vmatprep.subr.bf16.mxu0 %v6862_v56 }
 0xa16   : > { %4934 = vmatpush1.bf16.msra.mxu1 %v6729_v50  ;;  %5102 = vmatpush1.bf16.msra.mxu0 %v6730_v28 }
 0xa17   : > { %4935 = vmatprep.subr.bf16.mxu1 %v6862_v56  ;;  %5103 = vmatprep.subr.bf16.mxu0 %v6862_v56 }
 0xa1a   : > { %4936 = vmatpush1.bf16.msra.mxu1 %v6731_v55  ;;  %5104 = vmatpush1.bf16.msra.mxu0 %v6732_v60 }
 0xa1b   : > { %4937 = vmatprep.subr.bf16.mxu1 %v6862_v56  ;;  %5105 = vmatprep.subr.bf16.mxu0 %v6862_v56 }
 0xa1e   : > { %4938 = vmatpush1.bf16.msra.mxu1 %v6733_v51  ;;  %5106 = vmatpush1.bf16.msra.mxu0 %v6734_v47 }
 0xa1f   : > { %4939 = vmatprep.subr.bf16.mxu1 %v6862_v56  ;;  %5107 = vmatprep.subr.bf16.mxu0 %v6862_v56 }
 0xa22   : > { %4940 = vmatpush1.bf16.msra.mxu1 %v6735_v59  ;;  %5108 = vmatpush1.bf16.msra.mxu0 %v6736_v1 }
 0xa23   : > { %5254 = vmatprep.subr.bf16.mxu1 %v6862_v56 }
 0xa25   : > { %4948 = vmatmul.mubr.bf16.vlgmr.msra.gmra.mrb[48].mxu1 %v8567_v54  ;;  %5116 = vmatmul.mubr.bf16.vlgmr.msra.gmra.mrb[60].mxu0 %v8567_v54 }
 0xa26   : > { %5963 = vmatprep.mubr.msk.bf16.mxu1 %vm4582_vm4, %v8494_v46  ;;  %6004 = vmatprep.mubr.msk.bf16.mxu0 %vm4582_vm4, %v8494_v46 }
 0xa27   : > { %5255 = vmatpush1.bf16.msra.mxu1 %v6737_v42 }
 0xa28   : > { %5256 = vmatprep.subr.bf16.mxu1 %v6862_v56 }
 0xa2b   : > { %5257 = vmatpush1.bf16.msra.mxu1 %v6738_v36 }
 0xa2c   : > { %5258 = vmatprep.subr.bf16.mxu1 %v6862_v56 }
 0xa2d   : > { %4956 = vmatmul.mubr.bf16.gmra.mrb[52].mxu1 %v8524_v25  ;;  %5124 = vmatmul.mubr.bf16.gmra.mrb[64].mxu0 %v8524_v25 }
 0xa2e   : > { %6044 = vmatprep.mubr.msk.bf16.mxu1 %vm4582_vm4, %v8558_v9 }
 0xa2f   : > { %5259 = vmatpush1.bf16.msra.mxu1 %v6739_v58 }
 0xa30   : > { %5260 = vmatprep.subr.bf16.mxu1 %v6862_v56 }
 0xa33   : > { %5261 = vmatpush1.bf16.msra.mxu1 %v6740_v62 }
 0xa34   : > { %5262 = vmatprep.subr.bf16.mxu1 %v6862_v56 }
 0xa37   : > { %5263 = vmatpush1.bf16.msra.mxu1 %v6741_v6 }
 0xa38   : > { %5264 = vmatprep.subr.bf16.mxu1 %v6862_v56 }
 0xa3b   : > { %5265 = vmatpush1.bf16.msra.mxu1 %v6742_v16 }
 0xa3c   : > { %5266 = vmatprep.subr.bf16.mxu1 %v6862_v56 }
 0xa3f   : > { %5267 = vmatpush1.bf16.msra.mxu1 %v6743_v52 }
 0xa40   : > { %5268 = vmatprep.subr.bf16.mxu1 %v6862_v56 }
 0xa43   : > { %5269 = vmatpush1.bf16.msra.mxu1 %v6744_v63 }
 0xa44   : > { %5270 = vmatprep.subr.bf16.mxu1 %v6862_v56 }
 0xa47   : > { %5271 = vmatpush1.bf16.msra.mxu1 %v6745_v19 }
 0xa48   : > { %5272 = vmatprep.subr.bf16.mxu1 %v6862_v56 }
 0xa4b   : > { %5273 = vmatpush1.bf16.msra.mxu1 %v6746_v34 }
 0xa4c   : > { %5274 = vmatprep.subr.bf16.mxu1 %v6862_v56 }
 0xa4f   : > { %5275 = vmatpush1.bf16.msra.mxu1 %v6747_v45 }
 0xa50   : > { %5276 = vmatprep.subr.bf16.mxu1 %v6862_v56 }
 0xa53   : > { %5277 = vmatpush1.bf16.msra.mxu1 %v6748_v17 }
 0xa54   : > { %5278 = vmatprep.subr.bf16.mxu1 %v6862_v56  ;;  %v5341_v56 = vld [vmem:[%s7048_s19 + $0x10] sm:$0xff]  ;;  %s5365_s19 = scalar_lea.sflag [#allocation3], %s8019_s21 }
 0xa57   : > { %5279 = vmatpush1.bf16.msra.mxu1 %v6749_v20 }
 0xa5a   : > { %5287 = vmatmul.mubr.bf16.vlgmr.msra.gmra.mrb[56].mxu1 %v8567_v54 }
 0xa5b   : > { %6045 = vmatprep.mubr.msk.bf16.mxu1 %vm4582_vm4, %v8494_v46  ;;  %vm5345_vm4 = vcmp.ne.f32.partialorder %v5341_v56, 0.0  ;;  %v6047_v46 = vsel %vm5343_vm1, 1.0, %v6855_v40 }
 0xa5c   : > { %v6049_v2 = vsel %vm5345_vm4, 1.0, %v6855_v40  ;;  %5355 = vst.msk [vmem:[%s8747_s18] sm:$0xff] %vm800_vm5, %v6047_v46 }
 0xa5d   : > { %5357 = vst.msk [vmem:[%s8747_s18 + $0x10] sm:$0xff] %vm800_vm5, %v6049_v2 }
 0xa62   : > { %5295 = vmatmul.mubr.bf16.gmra.mrb[60].mxu1 %v8524_v25 }
 0xa63   : > { %6765 = shalt.err (!%p6762_p3)
}
 0xa64   : > { %s6766_s24 = scalar_lea.hbm %s8759_s3, 16  ;;  %s6770_s6 = scalar_lea.hbm %s9003_s20, 32 }
 0xa65   : > { %p6767_p4 = scmp.ne.s32.totalorder %s8759_s3, %s6766_s24  ;;  %p6771_p9 = scmp.lt.u32.totalorder %s8759_s3, %s9003_s20 }
 0xa66   : > { %p6772_p10 = scmp.lt.u32.totalorder %s6770_s6, %s6766_s24  ;;  %p6774_p12 = scmp.lt.u32.totalorder %s6766_s24, %s8759_s3 }
 0xa67   : > { %p6768_p7 = pnand %p6767_p4, %p7018_p5 }
 0xa68   : > { %p6773_p11 = por %p6772_p10, %p6771_p9 }
 0xa69   : > { %p6769_p8 = pneg %p6768_p7 }
 0xa6a   : > { %p6775_p13 = por %p6774_p12, %p6773_p11 }
 0xa6c   : > { %p6776_p0 = pnand %p6775_p13, %p6769_p8 }
 0xa6e   : > { %6779 = shalt.err (!%p6776_p0)
}
 0xa6f   : > { %6351 = dma.vmem_to_hbm [thread:$0]  (%p7018_p5), %s8766_s2, 16, %s8759_s3, %s5365_s19   ;;  %5358 = vst.msk [vmem:[%s8747_s18 + $0x18] sm:$0x3] %vm5337_vm15, %v6050_v3 }
 0xa70   : > { %s9004_s26 = sshll.u32 %s7001_s4, 4  ;;  %s9005_s25 = sld [smem:[#allocation25_spill]] }
 0xa71   : > { %s9006_s30 = scalar_lea.vmem [#allocation4], %s8019_s21  ;;  %s5369_s3 = scalar_lea.sflag [#allocation5], %s8019_s21 }
 0xa72   : > { %s5402_s6 = sshll.u32 %s9006_s30, 4  ;;  %s6864_s4 = smov [#allocation4]   ;;  %s8808_s6 = int_to_ptr.vmem [resolvable:$true] %s5402_s6 }
 0xa73   : > { %s6780_s18 = scalar_lea.vmem %s8808_s6, 16  ;;  %s6784_s2 = sshll.u32 %s6864_s4, 4  ;;  %s6785_s2 = int_to_ptr.vmem [resolvable:$false] %s6784_s2 }
 0xa74   : > { %p6781_p1 = scmp.ne.s32.totalorder %s8808_s6, %s6780_s18  ;;  %s6786_s19 = scalar_lea.vmem %s6785_s2, 32 }
 0xa75   : > { %p6787_p4 = scmp.lt.s32.totalorder %s8808_s6, %s6785_s2  ;;  %p6788_p7 = scmp.lt.s32.totalorder %s6786_s19, %s6780_s18 }
 0xa76   : > { %s8804_s24 = scalar_lea.hbm %s9005_s25, %s9004_s26  ;;  %p6782_p2 = pnand %p6781_p1, %p7018_p5 }
 0xa77   : > { %p6789_p8 = por %p6788_p7, %p6787_p4 }
 0xa78   : > { %p6783_p3 = pneg %p6782_p2 }
 0xa7a   : > { %p6790_p9 = pnand %p6789_p8, %p6783_p3 }
 0xac4   : > { %v4623_v40 = vpop.f32.mrb[40].mxu1  ;;  %v4780_v25 = vpop.f32.mrb[52].mxu0 }
 0xac5   : > { %v4797_v27 = vrot.slane %v4780_v25, 7  ;;  %v4625_v32 = vpop.f32.mrb[41].mxu1  ;;  %v4782_v21 = vpop.f32.mrb[53].mxu0 }
 0xac6   : > { %6793 = shalt.err (!%p6790_p9)
}
 0xac7   : > { %s6794_s21 = scalar_lea.hbm %s8804_s24, 16  ;;  %s6798_s23 = scalar_lea.hbm %s9005_s25, 32 }
 0xac8   : > { %p6795_p10 = scmp.ne.s32.totalorder %s8804_s24, %s6794_s21  ;;  %p6799_p13 = scmp.lt.u32.totalorder %s8804_s24, %s9005_s25 }
 0xac9   : > { %p6800_p0 = scmp.lt.u32.totalorder %s6798_s23, %s6794_s21  ;;  %p6802_p2 = scmp.lt.u32.totalorder %s6794_s21, %s8804_s24 }
 0xaca   : > { %p6796_p11 = pnand %p6795_p10, %p7018_p5 }
 0xacb   : > { %p6801_p1 = por %p6800_p0, %p6799_p13 }
 0xacc   : > { %p6797_p12 = pneg %p6796_p11 }
 0xacd   : > { %p6803_p3 = por %p6802_p2, %p6801_p1 }
 0xacf   : > { %p6804_p4 = pnand %p6803_p3, %p6797_p12 }
 0xad1   : > { %6807 = shalt.err (!%p6804_p4)
}
 0xad2   : > { %6352 = dma.vmem_to_hbm [thread:$0]  (%p7018_p5), %s8808_s6, 16, %s8804_s24, %s5369_s3   ;;  %v4626_v23 = vpop.f32.mrb[42].mxu1  ;;  %v4783_v11 = vpop.f32.mrb[54].mxu0  ;;  %v4805_v8 = vsel %vm1328_vm11, 0.0, %v4797_v27  ;;  %vm9007_vm3 = vmmov %vm8997_vm9  ;;  %vm9009_vm14 = vcmask 1042432  }
 0xad3   : > { %v4798_v53 = vrot.slane %v4783_v11, 7  ;;  %v4628_v10 = vpop.f32.mrb[43].mxu1  ;;  %v4785_v61 = vpop.f32.mrb[55].mxu0  ;;  %v4807_v14 = vadd.f32 %v4805_v8, %v4623_v40  ;;  %vm9008_vm8 = vmmov %vm8999_vm6  ;;  %s9012_s6 = sld [smem:[#allocation22_spill]]  ;;  %s9013_s4 = sld [smem:[#allocation23_spill]] }
 0xad4   : > { %v4631_v12 = vpop.f32.mrb[44].mxu1  ;;  %v4788_v29 = vpop.f32.mrb[56].mxu0  ;;  %vm9010_vm9 = vmmov %vm9009_vm14 }
 0xad5   : > { %v4799_v0 = vsel %vm1328_vm11, %v4797_v27, %v4798_v53  ;;  %v4800_v9 = vrot.slane %v4788_v29, 7  ;;  %v4633_v48 = vpop.f32.mrb[45].mxu1  ;;  %v4790_v54 = vpop.f32.mrb[57].mxu0  ;;  %v4637_v41 = vsel %vm9007_vm3, %v4631_v12, 0.0  ;;  %vm9011_vm12 = vmmov %vm9010_vm9 }
 0xad6   : > { %v4808_v18 = vadd.f32 %v4799_v0, %v4626_v23  ;;  %v4634_v5 = vpop.f32.mrb[46].mxu1  ;;  %v4791_v30 = vpop.f32.mrb[58].mxu0 }
 0xad7   : > { %v4801_v57 = vsel %vm1328_vm11, %v4798_v53, %v4800_v9  ;;  %v4635_v7 = vpop.f32.mrb[47].mxu1  ;;  %v4792_v37 = vpop.f32.mrb[59].mxu0 }
 0xad8   : > { %v4806_v33 = vsel %vm9008_vm8, %v4801_v57, 0.0 }
 0xad9   : > { %v4809_v13 = vadd.f32 %v4806_v33, %v4637_v41  ;;  %v6046_v27 = vld [vmem:[%s9012_s6] ss:$0 sm:$0xff]  ;;  %s737_s2 = scalar_lea.vmem %s9013_s4, %s7036_s1 }
 0xaf8   : > { %v4949_v38 = vpop.f32.mrb[48].mxu1  ;;  %v5117_v35 = vpop.f32.mrb[60].mxu0 }
 0xaf9   : > { %v4966_v31 = vrot.slane %v4949_v38, 6  ;;  %v5134_v39 = vrot.slane %v5117_v35, 5  ;;  %v4951_v43 = vpop.f32.mrb[49].mxu1  ;;  %v5119_v26 = vpop.f32.mrb[61].mxu0 }
 0xafa   : > { %v4952_v4 = vpop.f32.mrb[50].mxu1  ;;  %v5120_v44 = vpop.f32.mrb[62].mxu0 }
 0xafb   : > { %v4974_v50 = vsel %vm1352_vm13, 0.0, %v4966_v31  ;;  %v4967_v28 = vrot.slane %v4952_v4, 6  ;;  %v5135_v55 = vrot.slane %v5120_v44, 5  ;;  %v4954_v60 = vpop.f32.mrb[51].mxu1  ;;  %v5122_v51 = vpop.f32.mrb[63].mxu0  ;;  %v5143_v59 = vsel %vm9009_vm14, 0.0, %v5134_v39 }
 0xafc   : > { %v4975_v47 = vadd.f32 %v4974_v50, %v4807_v14 }
 0xafd   : > { %v4968_v1 = vsel %vm1352_vm13, %v4966_v31, %v4967_v28  ;;  %v5136_v42 = vsel %vm9010_vm9, %v5134_v39, %v5135_v55 }
 0xafe   : > { %v5145_v36 = vadd.f32 %v5143_v59, %v4975_v47  ;;  %v4976_v58 = vadd.f32 %v4968_v1, %v4808_v18 }
 0xb00   : > { %v5146_v62 = vadd.f32 %v5136_v42, %v4976_v58  ;;  %v4957_v6 = vpop.f32.mrb[52].mxu1  ;;  %v5125_v16 = vpop.f32.mrb[64].mxu0 }
 0xb01   : > { %v4969_v52 = vrot.slane %v4957_v6, 6  ;;  %v5137_v63 = vrot.slane %v5125_v16, 5  ;;  %v4959_v19 = vpop.f32.mrb[53].mxu1  ;;  %v5127_v34 = vpop.f32.mrb[65].mxu0 }
 0xb02   : > { %v4960_v45 = vpop.f32.mrb[54].mxu1  ;;  %v5128_v17 = vpop.f32.mrb[66].mxu0 }
 0xb03   : > { %v4970_v20 = vsel %vm1352_vm13, %v4967_v28, %v4969_v52  ;;  %v5138_v22 = vsel %vm9011_vm12, %v5135_v55, %v5137_v63  ;;  %v4961_v15 = vpop.f32.mrb[55].mxu1  ;;  %v5129_v56 = vpop.f32.mrb[67].mxu0  ;;  %v5144_v12 = vsel %vm1328_vm11, %v5137_v63, 0.0 }
 0xb04   : > { %v4977_v49 = vadd.f32 %v4970_v20, %v4809_v13 }
 0xb06   : > { %v5147_v46 = vadd.f32 %v5138_v22, %v4977_v49 }
 0xb2d   : > { %v5288_v24 = vpop.f32.mrb[56].mxu1 }
 0xb2e   : > { %v5305_v2 = vrot.slane %v5288_v24, 4  ;;  %v5290_v3 = vpop.f32.mrb[57].mxu1 }
 0xb2f   : > { %v5291_v40 = vpop.f32.mrb[58].mxu1 }
 0xb30   : > { %v5314_v25 = vsel %vm1399_vm2, 0.0, %v5305_v2  ;;  %v5306_v32 = vrot.slane %v5291_v40, 4  ;;  %v5293_v21 = vpop.f32.mrb[59].mxu1 }
 0xb31   : > { %v5315_v23 = vadd.f32 %v5314_v25, %v5145_v36 }
 0xb32   : > { %v5307_v11 = vsel %vm1399_vm2, %v5305_v2, %v5306_v32 }
 0xb33   : > { %v5326_v8 = vadd.f32 %v6046_v27, %v5315_v23  ;;  %v5316_v53 = vadd.f32 %v5307_v11, %v5146_v62 }
 0xb35   : > { %v5330_v10 = vmax.f32 %v5326_v8, 0.0  ;;  %v5327_v61 = vadd.f32 %v6046_v27, %v5316_v53  ;;  %v5296_v14 = vpop.f32.mrb[60].mxu1 }
 0xb36   : > { %v5308_v0 = vrot.slane %v5296_v14, 4  ;;  %v5298_v18 = vpop.f32.mrb[61].mxu1 }
 0xb37   : > { %5334 = vst.msk [vmem:[%s737_s2] sm:$0xff] %vm800_vm5, %v5330_v10  ;;  %v5331_v29 = vmax.f32 %v5327_v61, 0.0  ;;  %v5299_v9 = vpop.f32.mrb[62].mxu1 }
 0xb38   : > { %v5309_v48 = vsel %vm1399_vm2, %v5306_v32, %v5308_v0  ;;  %v5318_v54 = vadd.f32 %v5308_v0, %v5144_v12  ;;  %v5300_v5 = vpop.f32.mrb[63].mxu1 }
 0xb39   : > { %5335 = vst.msk [vmem:[%s737_s2 + $0x8] sm:$0xff] %vm800_vm5, %v5331_v29  ;;  %v5317_v30 = vadd.f32 %v5309_v48, %v5147_v46 }
 0xb3a   : > { %v5329_v57 = vadd.f32 %v6046_v27, %v5318_v54 }
 0xb3b   : > { %v5328_v7 = vadd.f32 %v6046_v27, %v5317_v30 }
 0xb3c   : > { %v5333_v37 = vmax.f32 %v5329_v57, 0.0 }
 0xb3d   : > { %v5332_v41 = vmax.f32 %v5328_v7, 0.0 }
 0xb3e   : > { %5338 = vst.msk [vmem:[%s737_s2 + $0x18] sm:$0x3] %vm5337_vm15, %v5333_v37 }
 0xb3f   : > { %5336 = vst.msk [vmem:[%s737_s2 + $0x10] sm:$0xff] %vm800_vm5, %v5332_v41 }
 0xb40 PF: > { %s9014_s1 = sld [smem:[#allocation10_spill]]  ;;  %s9015_s19 = sld [smem:[#allocation8_spill]] }
 0xb46   : > { %p6362_p5 = scmp.ge.s32.totalorder %s9014_s1, 2  ;;  %s5425_s27 = sand.u32 1, %s9015_s19  }
 0xb47   : > { %s5426_s26 = scalar_lea.sflag [#allocation3], %s5425_s27 }
 0xb48   : > { %p6356_p7 = pnand %p6362_p5, %p7022_p6 }
 0xb4a   : > { %6825 = dma.done.wait (!%p6356_p7), %s5426_s26, 16  }
 0xb4b   : > { %6827 = vsyncadd (!%p6356_p7), %s5426_s26, 4294967280  ;;  %s5434_s23 = scalar_lea.sflag [#allocation5], %s5425_s27 }
 0xb4c   : > { %6829 = dma.done.wait (!%p6356_p7), %s5434_s23, 16  }
 0xb4d   : > { %6831 = vsyncadd (!%p6356_p7), %s5434_s23, 4294967280  ;;  %s9017_s30 = sld [smem:[#allocation11_spill]]  ;;  %s9018_s29 = sld [smem:[#allocation9_spill]] }
 0xb4e   : > { %s9019_s0 = sld [smem:[#allocation12_spill]]  ;;  %s9020_s3 = smov %s6838_s28 }
 0xb53   : > { %p36_p8 = scmp.ge.s32.totalorder %s9017_s30, 4   ;;  %s9021_s28 = smov %s9018_s29 }
 0xb54   : > { %s9022_s29 = smov %s9019_s0 }
 0xb55   :  { %38 = sbr.rel (!%p36_p8) target bundleno = 17 (0x11), region = 188 }
 0xb5c   :  { %5446 = vsyncpa [#allocation3], 1 }
 0xb5d   :  { %5448 = vsyncpa [#allocation3 + $0x1], 1 }
 0xb5e   :  { %5449 = vsyncpa [#allocation5], 1 }
 0xb5f   :  { %5451 = vsyncpa [#allocation5 + $0x1], 1 }

</bundles_post_ra>
